<compile_context>
chip_gen: v7x
topology: tpu7x:2x2x1
jax: 0.10.0
libtpu: 0.0.40
codegen_flags: <defaults>
</compile_context>

<pallas_src>
import functools

import jax
import jax.numpy as jnp
from jax.experimental import pallas as pl
from jax.experimental.pallas import tpu as pltpu


K = 32  # config.k


def _issue_row_gather(ids_ref, emb_hbm, buf, sem, n_rows):
    """Issue n_rows single-row HBM->VMEM DMAs (one per id). Returns copy descs."""
    D = emb_hbm.shape[0]
    copies = []
    for i in range(n_rows):  # n_rows is small & static -> unrolled at trace time
        # PyTorch nn.Embedding raises on out-of-range ids; we clamp instead so an
        # OOB id can never turn into an out-of-bounds DMA.
        idx = jnp.clip(ids_ref[i], 0, D - 1)
        cp = pltpu.make_async_copy(
            emb_hbm.at[pl.ds(idx, 1), :],   # (1, k) row in HBM
            buf.at[pl.ds(i, 1), :],         # (1, k) slot in VMEM scratch
            sem.at[i],
        )
        cp.start()
        copies.append(cp)
    return copies


def _reduce_rows(buf, out_ref, R, N):
    """out[r, :] = sum_j buf[r*N + j, :]; single full-block store."""
    rows = [buf[pl.ds(r * N, N), :].sum(axis=0, keepdims=True) for r in range(R)]
    out_ref[...] = jnp.concatenate(rows, axis=0)


def _fused_kernel(Ru, Nu, Rv, Nv,
                  u_ids_ref, v_ids_ref,          # scalar-prefetch (SMEM), 1D
                  emb_u_hbm, emb_v_hbm,          # HBM-resident tables (pl.ANY)
                  p_ref, q_ref,                  # outputs (VMEM)
                  u_buf, v_buf, u_sem, v_sem):   # scratch
    # Issue every row DMA for both towers before waiting on any of them.
    copies = _issue_row_gather(u_ids_ref, emb_u_hbm, u_buf, u_sem, Ru * Nu)
    copies += _issue_row_gather(v_ids_ref, emb_v_hbm, v_buf, v_sem, Rv * Nv)
    for cp in copies:
        cp.wait()
    _reduce_rows(u_buf, p_ref, Ru, Nu)
    _reduce_rows(v_buf, q_ref, Rv, Nv)


def _single_kernel(R, N,
                   ids_ref, emb_hbm, out_ref, buf, sem):
    copies = _issue_row_gather(ids_ref, emb_hbm, buf, sem, R * N)
    for cp in copies:
        cp.wait()
    _reduce_rows(buf, out_ref, R, N)


def _embed_sum_fused(U, V, emb_u, emb_v):
    Ru, Nu = U.shape
    Rv, Nv = V.shape
    k = emb_u.shape[1]
    nnz = Ru * Nu + Rv * Nv
    kernel = functools.partial(_fused_kernel, Ru, Nu, Rv, Nv)
    grid_spec = pltpu.PrefetchScalarGridSpec(
        num_scalar_prefetch=2,        # flat U ids, flat V ids -> SMEM
        grid=(1,),
        in_specs=[
            pl.BlockSpec(memory_space=pl.ANY),   # emb_u stays in HBM
            pl.BlockSpec(memory_space=pl.ANY),   # emb_v stays in HBM
        ],
        out_specs=[
            pl.BlockSpec((Ru, k), lambda i, u, v: (0, 0)),
            pl.BlockSpec((Rv, k), lambda i, u, v: (0, 0)),
        ],
        scratch_shapes=[
            pltpu.VMEM((Ru * Nu, k), jnp.float32),
            pltpu.VMEM((Rv * Nv, k), jnp.float32),
            pltpu.SemaphoreType.DMA((Ru * Nu,)),
            pltpu.SemaphoreType.DMA((Rv * Nv,)),
        ],
    )
    return pl.pallas_call(
        kernel,
        grid_spec=grid_spec,
        out_shape=(
            jax.ShapeDtypeStruct((Ru, k), jnp.float32),
            jax.ShapeDtypeStruct((Rv, k), jnp.float32),
        ),
        compiler_params=pltpu.CompilerParams(
            dimension_semantics=("arbitrary",)),
        cost_estimate=pl.CostEstimate(
            flops=2 * nnz * k,
            transcendentals=0,
            bytes_accessed=nnz * k * 4 + (Ru + Rv) * k * 4 + nnz * 4),
    )(U.reshape(-1).astype(jnp.int32), V.reshape(-1).astype(jnp.int32),
      emb_u, emb_v)


def _embed_sum_single(ids, emb):
    R, N = ids.shape
    k = emb.shape[1]
    nnz = R * N
    kernel = functools.partial(_single_kernel, R, N)
    grid_spec = pltpu.PrefetchScalarGridSpec(
        num_scalar_prefetch=1,
        grid=(1,),
        in_specs=[pl.BlockSpec(memory_space=pl.ANY)],   # table stays in HBM
        out_specs=pl.BlockSpec((R, k), lambda i, s: (0, 0)),
        scratch_shapes=[
            pltpu.VMEM((nnz, k), jnp.float32),
            pltpu.SemaphoreType.DMA((nnz,)),
        ],
    )
    return pl.pallas_call(
        kernel,
        grid_spec=grid_spec,
        out_shape=jax.ShapeDtypeStruct((R, k), jnp.float32),
        compiler_params=pltpu.CompilerParams(
            dimension_semantics=("arbitrary",)),
        cost_estimate=pl.CostEstimate(
            flops=2 * nnz * k,
            transcendentals=0,
            bytes_accessed=nnz * k * 4 + R * k * 4 + nnz * 4),
    )(ids.reshape(-1).astype(jnp.int32), emb)


class FM2Tower:
    """JAX/Pallas port of the PyTorch FM2Tower forward pass."""

    def __init__(self, k=K, D_u=6038, D_v=3514):
        self.k = k
        # reset_parameters(): torch.nn.init.constant_(weight, 0.1) overwrites
        # every row, including padding_idx=0, so forward reads 0.1 everywhere.
        self.net_u = jnp.full((D_u, k), 0.1, dtype=jnp.float32)
        self.net_v = jnp.full((D_v, k), 0.1, dtype=jnp.float32)
        # Tables stay HBM-resident; row-gather kernel needs no padding/repack.

    def __call__(self, U, V):
        if U is not None and V is not None:
            # Fused two-tower kernel: one dispatch, all row DMAs issued together.
            return _embed_sum_fused(U, V, self.net_u, self.net_v)
        P = _embed_sum_single(U, self.net_u) if U is not None else None
        Q = _embed_sum_single(V, self.net_v) if V is not None else None
        return (P, Q)


if __name__ == "__main__":
    key = jax.random.PRNGKey(0)
    ku, kv = jax.random.split(key)

    batch_size, nnz_u = 2, 8       # U: (batch_size, nnz of context feature)
    action_num, nnz_v = 4, 6       # V: (action_num, nnz of action feature)
    D_u, D_v = 6038, 3514

    U = jax.random.randint(ku, (batch_size, nnz_u), 0, D_u, dtype=jnp.int32)
    V = jax.random.randint(kv, (action_num, nnz_v), 0, D_v, dtype=jnp.int32)

    model = FM2Tower(k=K, D_u=D_u, D_v=D_v)

    P, Q = model(U, V)
    P = jax.block_until_ready(P)
    Q = jax.block_until_ready(Q)

    # Pure-JAX reference of the PyTorch forward.
    P_ref = jnp.take(model.net_u, U, axis=0).sum(axis=-2)
    Q_ref = jnp.take(model.net_v, V, axis=0).sum(axis=-2)

    assert P.shape == (batch_size, K) and P.dtype == jnp.float32
    assert Q.shape == (action_num, K) and Q.dtype == jnp.float32
    assert jnp.allclose(P, P_ref, atol=1e-6), "P mismatch"
    assert jnp.allclose(Q, Q_ref, atol=1e-6), "Q mismatch"

    # Also exercise the single-tower (None input) code path.
    P_only, Q_none = model(U, None)
    P_only = jax.block_until_ready(P_only)
    assert Q_none is None
    assert jnp.allclose(P_only, P_ref, atol=1e-6), "P (single tower) mismatch"

    print("KERNEL_OK")
</pallas_src>

<mosaic_0001>
module attributes {stable_mosaic.version = 11 : i64} {
  func.func @_fused_kernel(%arg0: i32, %arg1: memref<16xi32, #tpu.memory_space<smem>>, %arg2: memref<24xi32, #tpu.memory_space<smem>>, %arg3: memref<6038x32xf32, #tpu.memory_space<any>>, %arg4: memref<3514x32xf32, #tpu.memory_space<any>>, %arg5: memref<2x32xf32, #tpu.memory_space<vmem>>, %arg6: memref<4x32xf32, #tpu.memory_space<vmem>>, %arg7: memref<16x32xf32, #tpu.memory_space<vmem>>, %arg8: memref<24x32xf32, #tpu.memory_space<vmem>>, %arg9: memref<16x!tpu.dma_semaphore, #tpu.memory_space<semaphore_mem>>, %arg10: memref<24x!tpu.dma_semaphore, #tpu.memory_space<semaphore_mem>>) attributes {dimension_semantics = [#tpu.dimension_semantics<arbitrary>], iteration_bounds = array<i64: 1>, scalar_prefetch = 2 : i64, scratch_operands = 4 : i64, tpu.core_type = #tpu.core_type<tc>, window_params = [{}, {}, {pipeline_mode = #tpu.pipeline_mode<synchronous>, transform_indices = @transform_2, window_bounds = array<i64: 2, 32>}, {pipeline_mode = #tpu.pipeline_mode<synchronous>, transform_indices = @transform_3, window_bounds = array<i64: 4, 32>}]} {
    %c0 = arith.constant 0 : index
    %0 = memref.load %arg1[%c0] : memref<16xi32, #tpu.memory_space<smem>>
    %c0_i32 = arith.constant 0 : i32
    %c6037_i32 = arith.constant 6037 : i32
    %1 = arith.maxsi %c0_i32, %0 : i32
    %2 = arith.minsi %c6037_i32, %1 : i32
    %c0_i32_0 = arith.constant 0 : i32
    %c0_i32_1 = arith.constant 0 : i32
    %3 = tpu.memref_slice %arg3[%2, %c0_i32_1] : memref<6038x32xf32, #tpu.memory_space<any>> -> memref<1x32xf32, #tpu.memory_space<any>>
    %c0_i32_2 = arith.constant 0 : i32
    %c0_i32_3 = arith.constant 0 : i32
    %4 = tpu.memref_slice %arg7[%c0_i32_2, %c0_i32_3] : memref<16x32xf32, #tpu.memory_space<vmem>> -> memref<1x32xf32, #tpu.memory_space<vmem>>
    %5 = tpu.memref_slice %arg9[%c0_i32_0] : memref<16x!tpu.dma_semaphore, #tpu.memory_space<semaphore_mem>> -> memref<1x!tpu.dma_semaphore, #tpu.memory_space<semaphore_mem>>
    %6 = tpu.memref_squeeze %5 : memref<1x!tpu.dma_semaphore, #tpu.memory_space<semaphore_mem>> -> memref<!tpu.dma_semaphore, #tpu.memory_space<semaphore_mem>>
    tpu.enqueue_dma source(%3 : memref<1x32xf32, #tpu.memory_space<any>>) target(%4 : memref<1x32xf32, #tpu.memory_space<vmem>>) target_semaphore(%6 : memref<!tpu.dma_semaphore, #tpu.memory_space<semaphore_mem>>)
    %c1 = arith.constant 1 : index
    %7 = memref.load %arg1[%c1] : memref<16xi32, #tpu.memory_space<smem>>
    %c0_i32_4 = arith.constant 0 : i32
    %c6037_i32_5 = arith.constant 6037 : i32
    %8 = arith.maxsi %c0_i32_4, %7 : i32
    %9 = arith.minsi %c6037_i32_5, %8 : i32
    %c1_i32 = arith.constant 1 : i32
    %c0_i32_6 = arith.constant 0 : i32
    %10 = tpu.memref_slice %arg3[%9, %c0_i32_6] : memref<6038x32xf32, #tpu.memory_space<any>> -> memref<1x32xf32, #tpu.memory_space<any>>
    %c1_i32_7 = arith.constant 1 : i32
    %c0_i32_8 = arith.constant 0 : i32
    %11 = tpu.memref_slice %arg7[%c1_i32_7, %c0_i32_8] : memref<16x32xf32, #tpu.memory_space<vmem>> -> memref<1x32xf32, #tpu.memory_space<vmem>>
    %12 = tpu.memref_slice %arg9[%c1_i32] : memref<16x!tpu.dma_semaphore, #tpu.memory_space<semaphore_mem>> -> memref<1x!tpu.dma_semaphore, #tpu.memory_space<semaphore_mem>>
    %13 = tpu.memref_squeeze %12 : memref<1x!tpu.dma_semaphore, #tpu.memory_space<semaphore_mem>> -> memref<!tpu.dma_semaphore, #tpu.memory_space<semaphore_mem>>
    tpu.enqueue_dma source(%10 : memref<1x32xf32, #tpu.memory_space<any>>) target(%11 : memref<1x32xf32, #tpu.memory_space<vmem>>) target_semaphore(%13 : memref<!tpu.dma_semaphore, #tpu.memory_space<semaphore_mem>>)
    %c2 = arith.constant 2 : index
    %14 = memref.load %arg1[%c2] : memref<16xi32, #tpu.memory_space<smem>>
    %c0_i32_9 = arith.constant 0 : i32
    %c6037_i32_10 = arith.constant 6037 : i32
    %15 = arith.maxsi %c0_i32_9, %14 : i32
    %16 = arith.minsi %c6037_i32_10, %15 : i32
    %c2_i32 = arith.constant 2 : i32
    %c0_i32_11 = arith.constant 0 : i32
    %17 = tpu.memref_slice %arg3[%16, %c0_i32_11] : memref<6038x32xf32, #tpu.memory_space<any>> -> memref<1x32xf32, #tpu.memory_space<any>>
    %c2_i32_12 = arith.constant 2 : i32
    %c0_i32_13 = arith.constant 0 : i32
    %18 = tpu.memref_slice %arg7[%c2_i32_12, %c0_i32_13] : memref<16x32xf32, #tpu.memory_space<vmem>> -> memref<1x32xf32, #tpu.memory_space<vmem>>
    %19 = tpu.memref_slice %arg9[%c2_i32] : memref<16x!tpu.dma_semaphore, #tpu.memory_space<semaphore_mem>> -> memref<1x!tpu.dma_semaphore, #tpu.memory_space<semaphore_mem>>
    %20 = tpu.memref_squeeze %19 : memref<1x!tpu.dma_semaphore, #tpu.memory_space<semaphore_mem>> -> memref<!tpu.dma_semaphore, #tpu.memory_space<semaphore_mem>>
    tpu.enqueue_dma source(%17 : memref<1x32xf32, #tpu.memory_space<any>>) target(%18 : memref<1x32xf32, #tpu.memory_space<vmem>>) target_semaphore(%20 : memref<!tpu.dma_semaphore, #tpu.memory_space<semaphore_mem>>)
    %c3 = arith.constant 3 : index
    %21 = memref.load %arg1[%c3] : memref<16xi32, #tpu.memory_space<smem>>
    %c0_i32_14 = arith.constant 0 : i32
    %c6037_i32_15 = arith.constant 6037 : i32
    %22 = arith.maxsi %c0_i32_14, %21 : i32
    %23 = arith.minsi %c6037_i32_15, %22 : i32
    %c3_i32 = arith.constant 3 : i32
    %c0_i32_16 = arith.constant 0 : i32
    %24 = tpu.memref_slice %arg3[%23, %c0_i32_16] : memref<6038x32xf32, #tpu.memory_space<any>> -> memref<1x32xf32, #tpu.memory_space<any>>
    %c3_i32_17 = arith.constant 3 : i32
    %c0_i32_18 = arith.constant 0 : i32
    %25 = tpu.memref_slice %arg7[%c3_i32_17, %c0_i32_18] : memref<16x32xf32, #tpu.memory_space<vmem>> -> memref<1x32xf32, #tpu.memory_space<vmem>>
    %26 = tpu.memref_slice %arg9[%c3_i32] : memref<16x!tpu.dma_semaphore, #tpu.memory_space<semaphore_mem>> -> memref<1x!tpu.dma_semaphore, #tpu.memory_space<semaphore_mem>>
    %27 = tpu.memref_squeeze %26 : memref<1x!tpu.dma_semaphore, #tpu.memory_space<semaphore_mem>> -> memref<!tpu.dma_semaphore, #tpu.memory_space<semaphore_mem>>
    tpu.enqueue_dma source(%24 : memref<1x32xf32, #tpu.memory_space<any>>) target(%25 : memref<1x32xf32, #tpu.memory_space<vmem>>) target_semaphore(%27 : memref<!tpu.dma_semaphore, #tpu.memory_space<semaphore_mem>>)
    %c4 = arith.constant 4 : index
    %28 = memref.load %arg1[%c4] : memref<16xi32, #tpu.memory_space<smem>>
    %c0_i32_19 = arith.constant 0 : i32
    %c6037_i32_20 = arith.constant 6037 : i32
    %29 = arith.maxsi %c0_i32_19, %28 : i32
    %30 = arith.minsi %c6037_i32_20, %29 : i32
    %c4_i32 = arith.constant 4 : i32
    %c0_i32_21 = arith.constant 0 : i32
    %31 = tpu.memref_slice %arg3[%30, %c0_i32_21] : memref<6038x32xf32, #tpu.memory_space<any>> -> memref<1x32xf32, #tpu.memory_space<any>>
    %c4_i32_22 = arith.constant 4 : i32
    %c0_i32_23 = arith.constant 0 : i32
    %32 = tpu.memref_slice %arg7[%c4_i32_22, %c0_i32_23] : memref<16x32xf32, #tpu.memory_space<vmem>> -> memref<1x32xf32, #tpu.memory_space<vmem>>
    %33 = tpu.memref_slice %arg9[%c4_i32] : memref<16x!tpu.dma_semaphore, #tpu.memory_space<semaphore_mem>> -> memref<1x!tpu.dma_semaphore, #tpu.memory_space<semaphore_mem>>
    %34 = tpu.memref_squeeze %33 : memref<1x!tpu.dma_semaphore, #tpu.memory_space<semaphore_mem>> -> memref<!tpu.dma_semaphore, #tpu.memory_space<semaphore_mem>>
    tpu.enqueue_dma source(%31 : memref<1x32xf32, #tpu.memory_space<any>>) target(%32 : memref<1x32xf32, #tpu.memory_space<vmem>>) target_semaphore(%34 : memref<!tpu.dma_semaphore, #tpu.memory_space<semaphore_mem>>)
    %c5 = arith.constant 5 : index
    %35 = memref.load %arg1[%c5] : memref<16xi32, #tpu.memory_space<smem>>
    %c0_i32_24 = arith.constant 0 : i32
    %c6037_i32_25 = arith.constant 6037 : i32
    %36 = arith.maxsi %c0_i32_24, %35 : i32
    %37 = arith.minsi %c6037_i32_25, %36 : i32
    %c5_i32 = arith.constant 5 : i32
    %c0_i32_26 = arith.constant 0 : i32
    %38 = tpu.memref_slice %arg3[%37, %c0_i32_26] : memref<6038x32xf32, #tpu.memory_space<any>> -> memref<1x32xf32, #tpu.memory_space<any>>
    %c5_i32_27 = arith.constant 5 : i32
    %c0_i32_28 = arith.constant 0 : i32
    %39 = tpu.memref_slice %arg7[%c5_i32_27, %c0_i32_28] : memref<16x32xf32, #tpu.memory_space<vmem>> -> memref<1x32xf32, #tpu.memory_space<vmem>>
    %40 = tpu.memref_slice %arg9[%c5_i32] : memref<16x!tpu.dma_semaphore, #tpu.memory_space<semaphore_mem>> -> memref<1x!tpu.dma_semaphore, #tpu.memory_space<semaphore_mem>>
    %41 = tpu.memref_squeeze %40 : memref<1x!tpu.dma_semaphore, #tpu.memory_space<semaphore_mem>> -> memref<!tpu.dma_semaphore, #tpu.memory_space<semaphore_mem>>
    tpu.enqueue_dma source(%38 : memref<1x32xf32, #tpu.memory_space<any>>) target(%39 : memref<1x32xf32, #tpu.memory_space<vmem>>) target_semaphore(%41 : memref<!tpu.dma_semaphore, #tpu.memory_space<semaphore_mem>>)
    %c6 = arith.constant 6 : index
    %42 = memref.load %arg1[%c6] : memref<16xi32, #tpu.memory_space<smem>>
    %c0_i32_29 = arith.constant 0 : i32
    %c6037_i32_30 = arith.constant 6037 : i32
    %43 = arith.maxsi %c0_i32_29, %42 : i32
    %44 = arith.minsi %c6037_i32_30, %43 : i32
    %c6_i32 = arith.constant 6 : i32
    %c0_i32_31 = arith.constant 0 : i32
    %45 = tpu.memref_slice %arg3[%44, %c0_i32_31] : memref<6038x32xf32, #tpu.memory_space<any>> -> memref<1x32xf32, #tpu.memory_space<any>>
    %c6_i32_32 = arith.constant 6 : i32
    %c0_i32_33 = arith.constant 0 : i32
    %46 = tpu.memref_slice %arg7[%c6_i32_32, %c0_i32_33] : memref<16x32xf32, #tpu.memory_space<vmem>> -> memref<1x32xf32, #tpu.memory_space<vmem>>
    %47 = tpu.memref_slice %arg9[%c6_i32] : memref<16x!tpu.dma_semaphore, #tpu.memory_space<semaphore_mem>> -> memref<1x!tpu.dma_semaphore, #tpu.memory_space<semaphore_mem>>
    %48 = tpu.memref_squeeze %47 : memref<1x!tpu.dma_semaphore, #tpu.memory_space<semaphore_mem>> -> memref<!tpu.dma_semaphore, #tpu.memory_space<semaphore_mem>>
    tpu.enqueue_dma source(%45 : memref<1x32xf32, #tpu.memory_space<any>>) target(%46 : memref<1x32xf32, #tpu.memory_space<vmem>>) target_semaphore(%48 : memref<!tpu.dma_semaphore, #tpu.memory_space<semaphore_mem>>)
    %c7 = arith.constant 7 : index
    %49 = memref.load %arg1[%c7] : memref<16xi32, #tpu.memory_space<smem>>
    %c0_i32_34 = arith.constant 0 : i32
    %c6037_i32_35 = arith.constant 6037 : i32
    %50 = arith.maxsi %c0_i32_34, %49 : i32
    %51 = arith.minsi %c6037_i32_35, %50 : i32
    %c7_i32 = arith.constant 7 : i32
    %c0_i32_36 = arith.constant 0 : i32
    %52 = tpu.memref_slice %arg3[%51, %c0_i32_36] : memref<6038x32xf32, #tpu.memory_space<any>> -> memref<1x32xf32, #tpu.memory_space<any>>
    %c7_i32_37 = arith.constant 7 : i32
    %c0_i32_38 = arith.constant 0 : i32
    %53 = tpu.memref_slice %arg7[%c7_i32_37, %c0_i32_38] : memref<16x32xf32, #tpu.memory_space<vmem>> -> memref<1x32xf32, #tpu.memory_space<vmem>>
    %54 = tpu.memref_slice %arg9[%c7_i32] : memref<16x!tpu.dma_semaphore, #tpu.memory_space<semaphore_mem>> -> memref<1x!tpu.dma_semaphore, #tpu.memory_space<semaphore_mem>>
    %55 = tpu.memref_squeeze %54 : memref<1x!tpu.dma_semaphore, #tpu.memory_space<semaphore_mem>> -> memref<!tpu.dma_semaphore, #tpu.memory_space<semaphore_mem>>
    tpu.enqueue_dma source(%52 : memref<1x32xf32, #tpu.memory_space<any>>) target(%53 : memref<1x32xf32, #tpu.memory_space<vmem>>) target_semaphore(%55 : memref<!tpu.dma_semaphore, #tpu.memory_space<semaphore_mem>>)
    %c8 = arith.constant 8 : index
    %56 = memref.load %arg1[%c8] : memref<16xi32, #tpu.memory_space<smem>>
    %c0_i32_39 = arith.constant 0 : i32
    %c6037_i32_40 = arith.constant 6037 : i32
    %57 = arith.maxsi %c0_i32_39, %56 : i32
    %58 = arith.minsi %c6037_i32_40, %57 : i32
    %c8_i32 = arith.constant 8 : i32
    %c0_i32_41 = arith.constant 0 : i32
    %59 = tpu.memref_slice %arg3[%58, %c0_i32_41] : memref<6038x32xf32, #tpu.memory_space<any>> -> memref<1x32xf32, #tpu.memory_space<any>>
    %c8_i32_42 = arith.constant 8 : i32
    %c0_i32_43 = arith.constant 0 : i32
    %60 = tpu.memref_slice %arg7[%c8_i32_42, %c0_i32_43] : memref<16x32xf32, #tpu.memory_space<vmem>> -> memref<1x32xf32, #tpu.memory_space<vmem>>
    %61 = tpu.memref_slice %arg9[%c8_i32] : memref<16x!tpu.dma_semaphore, #tpu.memory_space<semaphore_mem>> -> memref<1x!tpu.dma_semaphore, #tpu.memory_space<semaphore_mem>>
    %62 = tpu.memref_squeeze %61 : memref<1x!tpu.dma_semaphore, #tpu.memory_space<semaphore_mem>> -> memref<!tpu.dma_semaphore, #tpu.memory_space<semaphore_mem>>
    tpu.enqueue_dma source(%59 : memref<1x32xf32, #tpu.memory_space<any>>) target(%60 : memref<1x32xf32, #tpu.memory_space<vmem>>) target_semaphore(%62 : memref<!tpu.dma_semaphore, #tpu.memory_space<semaphore_mem>>)
    %c9 = arith.constant 9 : index
    %63 = memref.load %arg1[%c9] : memref<16xi32, #tpu.memory_space<smem>>
    %c0_i32_44 = arith.constant 0 : i32
    %c6037_i32_45 = arith.constant 6037 : i32
    %64 = arith.maxsi %c0_i32_44, %63 : i32
    %65 = arith.minsi %c6037_i32_45, %64 : i32
    %c9_i32 = arith.constant 9 : i32
    %c0_i32_46 = arith.constant 0 : i32
    %66 = tpu.memref_slice %arg3[%65, %c0_i32_46] : memref<6038x32xf32, #tpu.memory_space<any>> -> memref<1x32xf32, #tpu.memory_space<any>>
    %c9_i32_47 = arith.constant 9 : i32
    %c0_i32_48 = arith.constant 0 : i32
    %67 = tpu.memref_slice %arg7[%c9_i32_47, %c0_i32_48] : memref<16x32xf32, #tpu.memory_space<vmem>> -> memref<1x32xf32, #tpu.memory_space<vmem>>
    %68 = tpu.memref_slice %arg9[%c9_i32] : memref<16x!tpu.dma_semaphore, #tpu.memory_space<semaphore_mem>> -> memref<1x!tpu.dma_semaphore, #tpu.memory_space<semaphore_mem>>
    %69 = tpu.memref_squeeze %68 : memref<1x!tpu.dma_semaphore, #tpu.memory_space<semaphore_mem>> -> memref<!tpu.dma_semaphore, #tpu.memory_space<semaphore_mem>>
    tpu.enqueue_dma source(%66 : memref<1x32xf32, #tpu.memory_space<any>>) target(%67 : memref<1x32xf32, #tpu.memory_space<vmem>>) target_semaphore(%69 : memref<!tpu.dma_semaphore, #tpu.memory_space<semaphore_mem>>)
    %c10 = arith.constant 10 : index
    %70 = memref.load %arg1[%c10] : memref<16xi32, #tpu.memory_space<smem>>
    %c0_i32_49 = arith.constant 0 : i32
    %c6037_i32_50 = arith.constant 6037 : i32
    %71 = arith.maxsi %c0_i32_49, %70 : i32
    %72 = arith.minsi %c6037_i32_50, %71 : i32
    %c10_i32 = arith.constant 10 : i32
    %c0_i32_51 = arith.constant 0 : i32
    %73 = tpu.memref_slice %arg3[%72, %c0_i32_51] : memref<6038x32xf32, #tpu.memory_space<any>> -> memref<1x32xf32, #tpu.memory_space<any>>
    %c10_i32_52 = arith.constant 10 : i32
    %c0_i32_53 = arith.constant 0 : i32
    %74 = tpu.memref_slice %arg7[%c10_i32_52, %c0_i32_53] : memref<16x32xf32, #tpu.memory_space<vmem>> -> memref<1x32xf32, #tpu.memory_space<vmem>>
    %75 = tpu.memref_slice %arg9[%c10_i32] : memref<16x!tpu.dma_semaphore, #tpu.memory_space<semaphore_mem>> -> memref<1x!tpu.dma_semaphore, #tpu.memory_space<semaphore_mem>>
    %76 = tpu.memref_squeeze %75 : memref<1x!tpu.dma_semaphore, #tpu.memory_space<semaphore_mem>> -> memref<!tpu.dma_semaphore, #tpu.memory_space<semaphore_mem>>
    tpu.enqueue_dma source(%73 : memref<1x32xf32, #tpu.memory_space<any>>) target(%74 : memref<1x32xf32, #tpu.memory_space<vmem>>) target_semaphore(%76 : memref<!tpu.dma_semaphore, #tpu.memory_space<semaphore_mem>>)
    %c11 = arith.constant 11 : index
    %77 = memref.load %arg1[%c11] : memref<16xi32, #tpu.memory_space<smem>>
    %c0_i32_54 = arith.constant 0 : i32
    %c6037_i32_55 = arith.constant 6037 : i32
    %78 = arith.maxsi %c0_i32_54, %77 : i32
    %79 = arith.minsi %c6037_i32_55, %78 : i32
    %c11_i32 = arith.constant 11 : i32
    %c0_i32_56 = arith.constant 0 : i32
    %80 = tpu.memref_slice %arg3[%79, %c0_i32_56] : memref<6038x32xf32, #tpu.memory_space<any>> -> memref<1x32xf32, #tpu.memory_space<any>>
    %c11_i32_57 = arith.constant 11 : i32
    %c0_i32_58 = arith.constant 0 : i32
    %81 = tpu.memref_slice %arg7[%c11_i32_57, %c0_i32_58] : memref<16x32xf32, #tpu.memory_space<vmem>> -> memref<1x32xf32, #tpu.memory_space<vmem>>
    %82 = tpu.memref_slice %arg9[%c11_i32] : memref<16x!tpu.dma_semaphore, #tpu.memory_space<semaphore_mem>> -> memref<1x!tpu.dma_semaphore, #tpu.memory_space<semaphore_mem>>
    %83 = tpu.memref_squeeze %82 : memref<1x!tpu.dma_semaphore, #tpu.memory_space<semaphore_mem>> -> memref<!tpu.dma_semaphore, #tpu.memory_space<semaphore_mem>>
    tpu.enqueue_dma source(%80 : memref<1x32xf32, #tpu.memory_space<any>>) target(%81 : memref<1x32xf32, #tpu.memory_space<vmem>>) target_semaphore(%83 : memref<!tpu.dma_semaphore, #tpu.memory_space<semaphore_mem>>)
    %c12 = arith.constant 12 : index
    %84 = memref.load %arg1[%c12] : memref<16xi32, #tpu.memory_space<smem>>
    %c0_i32_59 = arith.constant 0 : i32
    %c6037_i32_60 = arith.constant 6037 : i32
    %85 = arith.maxsi %c0_i32_59, %84 : i32
    %86 = arith.minsi %c6037_i32_60, %85 : i32
    %c12_i32 = arith.constant 12 : i32
    %c0_i32_61 = arith.constant 0 : i32
    %87 = tpu.memref_slice %arg3[%86, %c0_i32_61] : memref<6038x32xf32, #tpu.memory_space<any>> -> memref<1x32xf32, #tpu.memory_space<any>>
    %c12_i32_62 = arith.constant 12 : i32
    %c0_i32_63 = arith.constant 0 : i32
    %88 = tpu.memref_slice %arg7[%c12_i32_62, %c0_i32_63] : memref<16x32xf32, #tpu.memory_space<vmem>> -> memref<1x32xf32, #tpu.memory_space<vmem>>
    %89 = tpu.memref_slice %arg9[%c12_i32] : memref<16x!tpu.dma_semaphore, #tpu.memory_space<semaphore_mem>> -> memref<1x!tpu.dma_semaphore, #tpu.memory_space<semaphore_mem>>
    %90 = tpu.memref_squeeze %89 : memref<1x!tpu.dma_semaphore, #tpu.memory_space<semaphore_mem>> -> memref<!tpu.dma_semaphore, #tpu.memory_space<semaphore_mem>>
    tpu.enqueue_dma source(%87 : memref<1x32xf32, #tpu.memory_space<any>>) target(%88 : memref<1x32xf32, #tpu.memory_space<vmem>>) target_semaphore(%90 : memref<!tpu.dma_semaphore, #tpu.memory_space<semaphore_mem>>)
    %c13 = arith.constant 13 : index
    %91 = memref.load %arg1[%c13] : memref<16xi32, #tpu.memory_space<smem>>
    %c0_i32_64 = arith.constant 0 : i32
    %c6037_i32_65 = arith.constant 6037 : i32
    %92 = arith.maxsi %c0_i32_64, %91 : i32
    %93 = arith.minsi %c6037_i32_65, %92 : i32
    %c13_i32 = arith.constant 13 : i32
    %c0_i32_66 = arith.constant 0 : i32
    %94 = tpu.memref_slice %arg3[%93, %c0_i32_66] : memref<6038x32xf32, #tpu.memory_space<any>> -> memref<1x32xf32, #tpu.memory_space<any>>
    %c13_i32_67 = arith.constant 13 : i32
    %c0_i32_68 = arith.constant 0 : i32
    %95 = tpu.memref_slice %arg7[%c13_i32_67, %c0_i32_68] : memref<16x32xf32, #tpu.memory_space<vmem>> -> memref<1x32xf32, #tpu.memory_space<vmem>>
    %96 = tpu.memref_slice %arg9[%c13_i32] : memref<16x!tpu.dma_semaphore, #tpu.memory_space<semaphore_mem>> -> memref<1x!tpu.dma_semaphore, #tpu.memory_space<semaphore_mem>>
    %97 = tpu.memref_squeeze %96 : memref<1x!tpu.dma_semaphore, #tpu.memory_space<semaphore_mem>> -> memref<!tpu.dma_semaphore, #tpu.memory_space<semaphore_mem>>
    tpu.enqueue_dma source(%94 : memref<1x32xf32, #tpu.memory_space<any>>) target(%95 : memref<1x32xf32, #tpu.memory_space<vmem>>) target_semaphore(%97 : memref<!tpu.dma_semaphore, #tpu.memory_space<semaphore_mem>>)
    %c14 = arith.constant 14 : index
    %98 = memref.load %arg1[%c14] : memref<16xi32, #tpu.memory_space<smem>>
    %c0_i32_69 = arith.constant 0 : i32
    %c6037_i32_70 = arith.constant 6037 : i32
    %99 = arith.maxsi %c0_i32_69, %98 : i32
    %100 = arith.minsi %c6037_i32_70, %99 : i32
    %c14_i32 = arith.constant 14 : i32
    %c0_i32_71 = arith.constant 0 : i32
    %101 = tpu.memref_slice %arg3[%100, %c0_i32_71] : memref<6038x32xf32, #tpu.memory_space<any>> -> memref<1x32xf32, #tpu.memory_space<any>>
    %c14_i32_72 = arith.constant 14 : i32
    %c0_i32_73 = arith.constant 0 : i32
    %102 = tpu.memref_slice %arg7[%c14_i32_72, %c0_i32_73] : memref<16x32xf32, #tpu.memory_space<vmem>> -> memref<1x32xf32, #tpu.memory_space<vmem>>
    %103 = tpu.memref_slice %arg9[%c14_i32] : memref<16x!tpu.dma_semaphore, #tpu.memory_space<semaphore_mem>> -> memref<1x!tpu.dma_semaphore, #tpu.memory_space<semaphore_mem>>
    %104 = tpu.memref_squeeze %103 : memref<1x!tpu.dma_semaphore, #tpu.memory_space<semaphore_mem>> -> memref<!tpu.dma_semaphore, #tpu.memory_space<semaphore_mem>>
    tpu.enqueue_dma source(%101 : memref<1x32xf32, #tpu.memory_space<any>>) target(%102 : memref<1x32xf32, #tpu.memory_space<vmem>>) target_semaphore(%104 : memref<!tpu.dma_semaphore, #tpu.memory_space<semaphore_mem>>)
    %c15 = arith.constant 15 : index
    %105 = memref.load %arg1[%c15] : memref<16xi32, #tpu.memory_space<smem>>
    %c0_i32_74 = arith.constant 0 : i32
    %c6037_i32_75 = arith.constant 6037 : i32
    %106 = arith.maxsi %c0_i32_74, %105 : i32
    %107 = arith.minsi %c6037_i32_75, %106 : i32
    %c15_i32 = arith.constant 15 : i32
    %c0_i32_76 = arith.constant 0 : i32
    %108 = tpu.memref_slice %arg3[%107, %c0_i32_76] : memref<6038x32xf32, #tpu.memory_space<any>> -> memref<1x32xf32, #tpu.memory_space<any>>
    %c15_i32_77 = arith.constant 15 : i32
    %c0_i32_78 = arith.constant 0 : i32
    %109 = tpu.memref_slice %arg7[%c15_i32_77, %c0_i32_78] : memref<16x32xf32, #tpu.memory_space<vmem>> -> memref<1x32xf32, #tpu.memory_space<vmem>>
    %110 = tpu.memref_slice %arg9[%c15_i32] : memref<16x!tpu.dma_semaphore, #tpu.memory_space<semaphore_mem>> -> memref<1x!tpu.dma_semaphore, #tpu.memory_space<semaphore_mem>>
    %111 = tpu.memref_squeeze %110 : memref<1x!tpu.dma_semaphore, #tpu.memory_space<semaphore_mem>> -> memref<!tpu.dma_semaphore, #tpu.memory_space<semaphore_mem>>
    tpu.enqueue_dma source(%108 : memref<1x32xf32, #tpu.memory_space<any>>) target(%109 : memref<1x32xf32, #tpu.memory_space<vmem>>) target_semaphore(%111 : memref<!tpu.dma_semaphore, #tpu.memory_space<semaphore_mem>>)
    %c0_79 = arith.constant 0 : index
    %112 = memref.load %arg2[%c0_79] : memref<24xi32, #tpu.memory_space<smem>>
    %c0_i32_80 = arith.constant 0 : i32
    %c3513_i32 = arith.constant 3513 : i32
    %113 = arith.maxsi %c0_i32_80, %112 : i32
    %114 = arith.minsi %c3513_i32, %113 : i32
    %c0_i32_81 = arith.constant 0 : i32
    %c0_i32_82 = arith.constant 0 : i32
    %115 = tpu.memref_slice %arg4[%114, %c0_i32_82] : memref<3514x32xf32, #tpu.memory_space<any>> -> memref<1x32xf32, #tpu.memory_space<any>>
    %c0_i32_83 = arith.constant 0 : i32
    %c0_i32_84 = arith.constant 0 : i32
    %116 = tpu.memref_slice %arg8[%c0_i32_83, %c0_i32_84] : memref<24x32xf32, #tpu.memory_space<vmem>> -> memref<1x32xf32, #tpu.memory_space<vmem>>
    %117 = tpu.memref_slice %arg10[%c0_i32_81] : memref<24x!tpu.dma_semaphore, #tpu.memory_space<semaphore_mem>> -> memref<1x!tpu.dma_semaphore, #tpu.memory_space<semaphore_mem>>
    %118 = tpu.memref_squeeze %117 : memref<1x!tpu.dma_semaphore, #tpu.memory_space<semaphore_mem>> -> memref<!tpu.dma_semaphore, #tpu.memory_space<semaphore_mem>>
    tpu.enqueue_dma source(%115 : memref<1x32xf32, #tpu.memory_space<any>>) target(%116 : memref<1x32xf32, #tpu.memory_space<vmem>>) target_semaphore(%118 : memref<!tpu.dma_semaphore, #tpu.memory_space<semaphore_mem>>)
    %c1_85 = arith.constant 1 : index
    %119 = memref.load %arg2[%c1_85] : memref<24xi32, #tpu.memory_space<smem>>
    %c0_i32_86 = arith.constant 0 : i32
    %c3513_i32_87 = arith.constant 3513 : i32
    %120 = arith.maxsi %c0_i32_86, %119 : i32
    %121 = arith.minsi %c3513_i32_87, %120 : i32
    %c1_i32_88 = arith.constant 1 : i32
    %c0_i32_89 = arith.constant 0 : i32
    %122 = tpu.memref_slice %arg4[%121, %c0_i32_89] : memref<3514x32xf32, #tpu.memory_space<any>> -> memref<1x32xf32, #tpu.memory_space<any>>
    %c1_i32_90 = arith.constant 1 : i32
    %c0_i32_91 = arith.constant 0 : i32
    %123 = tpu.memref_slice %arg8[%c1_i32_90, %c0_i32_91] : memref<24x32xf32, #tpu.memory_space<vmem>> -> memref<1x32xf32, #tpu.memory_space<vmem>>
    %124 = tpu.memref_slice %arg10[%c1_i32_88] : memref<24x!tpu.dma_semaphore, #tpu.memory_space<semaphore_mem>> -> memref<1x!tpu.dma_semaphore, #tpu.memory_space<semaphore_mem>>
    %125 = tpu.memref_squeeze %124 : memref<1x!tpu.dma_semaphore, #tpu.memory_space<semaphore_mem>> -> memref<!tpu.dma_semaphore, #tpu.memory_space<semaphore_mem>>
    tpu.enqueue_dma source(%122 : memref<1x32xf32, #tpu.memory_space<any>>) target(%123 : memref<1x32xf32, #tpu.memory_space<vmem>>) target_semaphore(%125 : memref<!tpu.dma_semaphore, #tpu.memory_space<semaphore_mem>>)
    %c2_92 = arith.constant 2 : index
    %126 = memref.load %arg2[%c2_92] : memref<24xi32, #tpu.memory_space<smem>>
    %c0_i32_93 = arith.constant 0 : i32
    %c3513_i32_94 = arith.constant 3513 : i32
    %127 = arith.maxsi %c0_i32_93, %126 : i32
    %128 = arith.minsi %c3513_i32_94, %127 : i32
    %c2_i32_95 = arith.constant 2 : i32
    %c0_i32_96 = arith.constant 0 : i32
    %129 = tpu.memref_slice %arg4[%128, %c0_i32_96] : memref<3514x32xf32, #tpu.memory_space<any>> -> memref<1x32xf32, #tpu.memory_space<any>>
    %c2_i32_97 = arith.constant 2 : i32
    %c0_i32_98 = arith.constant 0 : i32
    %130 = tpu.memref_slice %arg8[%c2_i32_97, %c0_i32_98] : memref<24x32xf32, #tpu.memory_space<vmem>> -> memref<1x32xf32, #tpu.memory_space<vmem>>
    %131 = tpu.memref_slice %arg10[%c2_i32_95] : memref<24x!tpu.dma_semaphore, #tpu.memory_space<semaphore_mem>> -> memref<1x!tpu.dma_semaphore, #tpu.memory_space<semaphore_mem>>
    %132 = tpu.memref_squeeze %131 : memref<1x!tpu.dma_semaphore, #tpu.memory_space<semaphore_mem>> -> memref<!tpu.dma_semaphore, #tpu.memory_space<semaphore_mem>>
    tpu.enqueue_dma source(%129 : memref<1x32xf32, #tpu.memory_space<any>>) target(%130 : memref<1x32xf32, #tpu.memory_space<vmem>>) target_semaphore(%132 : memref<!tpu.dma_semaphore, #tpu.memory_space<semaphore_mem>>)
    %c3_99 = arith.constant 3 : index
    %133 = memref.load %arg2[%c3_99] : memref<24xi32, #tpu.memory_space<smem>>
    %c0_i32_100 = arith.constant 0 : i32
    %c3513_i32_101 = arith.constant 3513 : i32
    %134 = arith.maxsi %c0_i32_100, %133 : i32
    %135 = arith.minsi %c3513_i32_101, %134 : i32
    %c3_i32_102 = arith.constant 3 : i32
    %c0_i32_103 = arith.constant 0 : i32
    %136 = tpu.memref_slice %arg4[%135, %c0_i32_103] : memref<3514x32xf32, #tpu.memory_space<any>> -> memref<1x32xf32, #tpu.memory_space<any>>
    %c3_i32_104 = arith.constant 3 : i32
    %c0_i32_105 = arith.constant 0 : i32
    %137 = tpu.memref_slice %arg8[%c3_i32_104, %c0_i32_105] : memref<24x32xf32, #tpu.memory_space<vmem>> -> memref<1x32xf32, #tpu.memory_space<vmem>>
    %138 = tpu.memref_slice %arg10[%c3_i32_102] : memref<24x!tpu.dma_semaphore, #tpu.memory_space<semaphore_mem>> -> memref<1x!tpu.dma_semaphore, #tpu.memory_space<semaphore_mem>>
    %139 = tpu.memref_squeeze %138 : memref<1x!tpu.dma_semaphore, #tpu.memory_space<semaphore_mem>> -> memref<!tpu.dma_semaphore, #tpu.memory_space<semaphore_mem>>
    tpu.enqueue_dma source(%136 : memref<1x32xf32, #tpu.memory_space<any>>) target(%137 : memref<1x32xf32, #tpu.memory_space<vmem>>) target_semaphore(%139 : memref<!tpu.dma_semaphore, #tpu.memory_space<semaphore_mem>>)
    %c4_106 = arith.constant 4 : index
    %140 = memref.load %arg2[%c4_106] : memref<24xi32, #tpu.memory_space<smem>>
    %c0_i32_107 = arith.constant 0 : i32
    %c3513_i32_108 = arith.constant 3513 : i32
    %141 = arith.maxsi %c0_i32_107, %140 : i32
    %142 = arith.minsi %c3513_i32_108, %141 : i32
    %c4_i32_109 = arith.constant 4 : i32
    %c0_i32_110 = arith.constant 0 : i32
    %143 = tpu.memref_slice %arg4[%142, %c0_i32_110] : memref<3514x32xf32, #tpu.memory_space<any>> -> memref<1x32xf32, #tpu.memory_space<any>>
    %c4_i32_111 = arith.constant 4 : i32
    %c0_i32_112 = arith.constant 0 : i32
    %144 = tpu.memref_slice %arg8[%c4_i32_111, %c0_i32_112] : memref<24x32xf32, #tpu.memory_space<vmem>> -> memref<1x32xf32, #tpu.memory_space<vmem>>
    %145 = tpu.memref_slice %arg10[%c4_i32_109] : memref<24x!tpu.dma_semaphore, #tpu.memory_space<semaphore_mem>> -> memref<1x!tpu.dma_semaphore, #tpu.memory_space<semaphore_mem>>
    %146 = tpu.memref_squeeze %145 : memref<1x!tpu.dma_semaphore, #tpu.memory_space<semaphore_mem>> -> memref<!tpu.dma_semaphore, #tpu.memory_space<semaphore_mem>>
    tpu.enqueue_dma source(%143 : memref<1x32xf32, #tpu.memory_space<any>>) target(%144 : memref<1x32xf32, #tpu.memory_space<vmem>>) target_semaphore(%146 : memref<!tpu.dma_semaphore, #tpu.memory_space<semaphore_mem>>)
    %c5_113 = arith.constant 5 : index
    %147 = memref.load %arg2[%c5_113] : memref<24xi32, #tpu.memory_space<smem>>
    %c0_i32_114 = arith.constant 0 : i32
    %c3513_i32_115 = arith.constant 3513 : i32
    %148 = arith.maxsi %c0_i32_114, %147 : i32
    %149 = arith.minsi %c3513_i32_115, %148 : i32
    %c5_i32_116 = arith.constant 5 : i32
    %c0_i32_117 = arith.constant 0 : i32
    %150 = tpu.memref_slice %arg4[%149, %c0_i32_117] : memref<3514x32xf32, #tpu.memory_space<any>> -> memref<1x32xf32, #tpu.memory_space<any>>
    %c5_i32_118 = arith.constant 5 : i32
    %c0_i32_119 = arith.constant 0 : i32
    %151 = tpu.memref_slice %arg8[%c5_i32_118, %c0_i32_119] : memref<24x32xf32, #tpu.memory_space<vmem>> -> memref<1x32xf32, #tpu.memory_space<vmem>>
    %152 = tpu.memref_slice %arg10[%c5_i32_116] : memref<24x!tpu.dma_semaphore, #tpu.memory_space<semaphore_mem>> -> memref<1x!tpu.dma_semaphore, #tpu.memory_space<semaphore_mem>>
    %153 = tpu.memref_squeeze %152 : memref<1x!tpu.dma_semaphore, #tpu.memory_space<semaphore_mem>> -> memref<!tpu.dma_semaphore, #tpu.memory_space<semaphore_mem>>
    tpu.enqueue_dma source(%150 : memref<1x32xf32, #tpu.memory_space<any>>) target(%151 : memref<1x32xf32, #tpu.memory_space<vmem>>) target_semaphore(%153 : memref<!tpu.dma_semaphore, #tpu.memory_space<semaphore_mem>>)
    %c6_120 = arith.constant 6 : index
    %154 = memref.load %arg2[%c6_120] : memref<24xi32, #tpu.memory_space<smem>>
    %c0_i32_121 = arith.constant 0 : i32
    %c3513_i32_122 = arith.constant 3513 : i32
    %155 = arith.maxsi %c0_i32_121, %154 : i32
    %156 = arith.minsi %c3513_i32_122, %155 : i32
    %c6_i32_123 = arith.constant 6 : i32
    %c0_i32_124 = arith.constant 0 : i32
    %157 = tpu.memref_slice %arg4[%156, %c0_i32_124] : memref<3514x32xf32, #tpu.memory_space<any>> -> memref<1x32xf32, #tpu.memory_space<any>>
    %c6_i32_125 = arith.constant 6 : i32
    %c0_i32_126 = arith.constant 0 : i32
    %158 = tpu.memref_slice %arg8[%c6_i32_125, %c0_i32_126] : memref<24x32xf32, #tpu.memory_space<vmem>> -> memref<1x32xf32, #tpu.memory_space<vmem>>
    %159 = tpu.memref_slice %arg10[%c6_i32_123] : memref<24x!tpu.dma_semaphore, #tpu.memory_space<semaphore_mem>> -> memref<1x!tpu.dma_semaphore, #tpu.memory_space<semaphore_mem>>
    %160 = tpu.memref_squeeze %159 : memref<1x!tpu.dma_semaphore, #tpu.memory_space<semaphore_mem>> -> memref<!tpu.dma_semaphore, #tpu.memory_space<semaphore_mem>>
    tpu.enqueue_dma source(%157 : memref<1x32xf32, #tpu.memory_space<any>>) target(%158 : memref<1x32xf32, #tpu.memory_space<vmem>>) target_semaphore(%160 : memref<!tpu.dma_semaphore, #tpu.memory_space<semaphore_mem>>)
    %c7_127 = arith.constant 7 : index
    %161 = memref.load %arg2[%c7_127] : memref<24xi32, #tpu.memory_space<smem>>
    %c0_i32_128 = arith.constant 0 : i32
    %c3513_i32_129 = arith.constant 3513 : i32
    %162 = arith.maxsi %c0_i32_128, %161 : i32
    %163 = arith.minsi %c3513_i32_129, %162 : i32
    %c7_i32_130 = arith.constant 7 : i32
    %c0_i32_131 = arith.constant 0 : i32
    %164 = tpu.memref_slice %arg4[%163, %c0_i32_131] : memref<3514x32xf32, #tpu.memory_space<any>> -> memref<1x32xf32, #tpu.memory_space<any>>
    %c7_i32_132 = arith.constant 7 : i32
    %c0_i32_133 = arith.constant 0 : i32
    %165 = tpu.memref_slice %arg8[%c7_i32_132, %c0_i32_133] : memref<24x32xf32, #tpu.memory_space<vmem>> -> memref<1x32xf32, #tpu.memory_space<vmem>>
    %166 = tpu.memref_slice %arg10[%c7_i32_130] : memref<24x!tpu.dma_semaphore, #tpu.memory_space<semaphore_mem>> -> memref<1x!tpu.dma_semaphore, #tpu.memory_space<semaphore_mem>>
    %167 = tpu.memref_squeeze %166 : memref<1x!tpu.dma_semaphore, #tpu.memory_space<semaphore_mem>> -> memref<!tpu.dma_semaphore, #tpu.memory_space<semaphore_mem>>
    tpu.enqueue_dma source(%164 : memref<1x32xf32, #tpu.memory_space<any>>) target(%165 : memref<1x32xf32, #tpu.memory_space<vmem>>) target_semaphore(%167 : memref<!tpu.dma_semaphore, #tpu.memory_space<semaphore_mem>>)
    %c8_134 = arith.constant 8 : index
    %168 = memref.load %arg2[%c8_134] : memref<24xi32, #tpu.memory_space<smem>>
    %c0_i32_135 = arith.constant 0 : i32
    %c3513_i32_136 = arith.constant 3513 : i32
    %169 = arith.maxsi %c0_i32_135, %168 : i32
    %170 = arith.minsi %c3513_i32_136, %169 : i32
    %c8_i32_137 = arith.constant 8 : i32
    %c0_i32_138 = arith.constant 0 : i32
    %171 = tpu.memref_slice %arg4[%170, %c0_i32_138] : memref<3514x32xf32, #tpu.memory_space<any>> -> memref<1x32xf32, #tpu.memory_space<any>>
    %c8_i32_139 = arith.constant 8 : i32
    %c0_i32_140 = arith.constant 0 : i32
    %172 = tpu.memref_slice %arg8[%c8_i32_139, %c0_i32_140] : memref<24x32xf32, #tpu.memory_space<vmem>> -> memref<1x32xf32, #tpu.memory_space<vmem>>
    %173 = tpu.memref_slice %arg10[%c8_i32_137] : memref<24x!tpu.dma_semaphore, #tpu.memory_space<semaphore_mem>> -> memref<1x!tpu.dma_semaphore, #tpu.memory_space<semaphore_mem>>
    %174 = tpu.memref_squeeze %173 : memref<1x!tpu.dma_semaphore, #tpu.memory_space<semaphore_mem>> -> memref<!tpu.dma_semaphore, #tpu.memory_space<semaphore_mem>>
    tpu.enqueue_dma source(%171 : memref<1x32xf32, #tpu.memory_space<any>>) target(%172 : memref<1x32xf32, #tpu.memory_space<vmem>>) target_semaphore(%174 : memref<!tpu.dma_semaphore, #tpu.memory_space<semaphore_mem>>)
    %c9_141 = arith.constant 9 : index
    %175 = memref.load %arg2[%c9_141] : memref<24xi32, #tpu.memory_space<smem>>
    %c0_i32_142 = arith.constant 0 : i32
    %c3513_i32_143 = arith.constant 3513 : i32
    %176 = arith.maxsi %c0_i32_142, %175 : i32
    %177 = arith.minsi %c3513_i32_143, %176 : i32
    %c9_i32_144 = arith.constant 9 : i32
    %c0_i32_145 = arith.constant 0 : i32
    %178 = tpu.memref_slice %arg4[%177, %c0_i32_145] : memref<3514x32xf32, #tpu.memory_space<any>> -> memref<1x32xf32, #tpu.memory_space<any>>
    %c9_i32_146 = arith.constant 9 : i32
    %c0_i32_147 = arith.constant 0 : i32
    %179 = tpu.memref_slice %arg8[%c9_i32_146, %c0_i32_147] : memref<24x32xf32, #tpu.memory_space<vmem>> -> memref<1x32xf32, #tpu.memory_space<vmem>>
    %180 = tpu.memref_slice %arg10[%c9_i32_144] : memref<24x!tpu.dma_semaphore, #tpu.memory_space<semaphore_mem>> -> memref<1x!tpu.dma_semaphore, #tpu.memory_space<semaphore_mem>>
    %181 = tpu.memref_squeeze %180 : memref<1x!tpu.dma_semaphore, #tpu.memory_space<semaphore_mem>> -> memref<!tpu.dma_semaphore, #tpu.memory_space<semaphore_mem>>
    tpu.enqueue_dma source(%178 : memref<1x32xf32, #tpu.memory_space<any>>) target(%179 : memref<1x32xf32, #tpu.memory_space<vmem>>) target_semaphore(%181 : memref<!tpu.dma_semaphore, #tpu.memory_space<semaphore_mem>>)
    %c10_148 = arith.constant 10 : index
    %182 = memref.load %arg2[%c10_148] : memref<24xi32, #tpu.memory_space<smem>>
    %c0_i32_149 = arith.constant 0 : i32
    %c3513_i32_150 = arith.constant 3513 : i32
    %183 = arith.maxsi %c0_i32_149, %182 : i32
    %184 = arith.minsi %c3513_i32_150, %183 : i32
    %c10_i32_151 = arith.constant 10 : i32
    %c0_i32_152 = arith.constant 0 : i32
    %185 = tpu.memref_slice %arg4[%184, %c0_i32_152] : memref<3514x32xf32, #tpu.memory_space<any>> -> memref<1x32xf32, #tpu.memory_space<any>>
    %c10_i32_153 = arith.constant 10 : i32
    %c0_i32_154 = arith.constant 0 : i32
    %186 = tpu.memref_slice %arg8[%c10_i32_153, %c0_i32_154] : memref<24x32xf32, #tpu.memory_space<vmem>> -> memref<1x32xf32, #tpu.memory_space<vmem>>
    %187 = tpu.memref_slice %arg10[%c10_i32_151] : memref<24x!tpu.dma_semaphore, #tpu.memory_space<semaphore_mem>> -> memref<1x!tpu.dma_semaphore, #tpu.memory_space<semaphore_mem>>
    %188 = tpu.memref_squeeze %187 : memref<1x!tpu.dma_semaphore, #tpu.memory_space<semaphore_mem>> -> memref<!tpu.dma_semaphore, #tpu.memory_space<semaphore_mem>>
    tpu.enqueue_dma source(%185 : memref<1x32xf32, #tpu.memory_space<any>>) target(%186 : memref<1x32xf32, #tpu.memory_space<vmem>>) target_semaphore(%188 : memref<!tpu.dma_semaphore, #tpu.memory_space<semaphore_mem>>)
    %c11_155 = arith.constant 11 : index
    %189 = memref.load %arg2[%c11_155] : memref<24xi32, #tpu.memory_space<smem>>
    %c0_i32_156 = arith.constant 0 : i32
    %c3513_i32_157 = arith.constant 3513 : i32
    %190 = arith.maxsi %c0_i32_156, %189 : i32
    %191 = arith.minsi %c3513_i32_157, %190 : i32
    %c11_i32_158 = arith.constant 11 : i32
    %c0_i32_159 = arith.constant 0 : i32
    %192 = tpu.memref_slice %arg4[%191, %c0_i32_159] : memref<3514x32xf32, #tpu.memory_space<any>> -> memref<1x32xf32, #tpu.memory_space<any>>
    %c11_i32_160 = arith.constant 11 : i32
    %c0_i32_161 = arith.constant 0 : i32
    %193 = tpu.memref_slice %arg8[%c11_i32_160, %c0_i32_161] : memref<24x32xf32, #tpu.memory_space<vmem>> -> memref<1x32xf32, #tpu.memory_space<vmem>>
    %194 = tpu.memref_slice %arg10[%c11_i32_158] : memref<24x!tpu.dma_semaphore, #tpu.memory_space<semaphore_mem>> -> memref<1x!tpu.dma_semaphore, #tpu.memory_space<semaphore_mem>>
    %195 = tpu.memref_squeeze %194 : memref<1x!tpu.dma_semaphore, #tpu.memory_space<semaphore_mem>> -> memref<!tpu.dma_semaphore, #tpu.memory_space<semaphore_mem>>
    tpu.enqueue_dma source(%192 : memref<1x32xf32, #tpu.memory_space<any>>) target(%193 : memref<1x32xf32, #tpu.memory_space<vmem>>) target_semaphore(%195 : memref<!tpu.dma_semaphore, #tpu.memory_space<semaphore_mem>>)
    %c12_162 = arith.constant 12 : index
    %196 = memref.load %arg2[%c12_162] : memref<24xi32, #tpu.memory_space<smem>>
    %c0_i32_163 = arith.constant 0 : i32
    %c3513_i32_164 = arith.constant 3513 : i32
    %197 = arith.maxsi %c0_i32_163, %196 : i32
    %198 = arith.minsi %c3513_i32_164, %197 : i32
    %c12_i32_165 = arith.constant 12 : i32
    %c0_i32_166 = arith.constant 0 : i32
    %199 = tpu.memref_slice %arg4[%198, %c0_i32_166] : memref<3514x32xf32, #tpu.memory_space<any>> -> memref<1x32xf32, #tpu.memory_space<any>>
    %c12_i32_167 = arith.constant 12 : i32
    %c0_i32_168 = arith.constant 0 : i32
    %200 = tpu.memref_slice %arg8[%c12_i32_167, %c0_i32_168] : memref<24x32xf32, #tpu.memory_space<vmem>> -> memref<1x32xf32, #tpu.memory_space<vmem>>
    %201 = tpu.memref_slice %arg10[%c12_i32_165] : memref<24x!tpu.dma_semaphore, #tpu.memory_space<semaphore_mem>> -> memref<1x!tpu.dma_semaphore, #tpu.memory_space<semaphore_mem>>
    %202 = tpu.memref_squeeze %201 : memref<1x!tpu.dma_semaphore, #tpu.memory_space<semaphore_mem>> -> memref<!tpu.dma_semaphore, #tpu.memory_space<semaphore_mem>>
    tpu.enqueue_dma source(%199 : memref<1x32xf32, #tpu.memory_space<any>>) target(%200 : memref<1x32xf32, #tpu.memory_space<vmem>>) target_semaphore(%202 : memref<!tpu.dma_semaphore, #tpu.memory_space<semaphore_mem>>)
    %c13_169 = arith.constant 13 : index
    %203 = memref.load %arg2[%c13_169] : memref<24xi32, #tpu.memory_space<smem>>
    %c0_i32_170 = arith.constant 0 : i32
    %c3513_i32_171 = arith.constant 3513 : i32
    %204 = arith.maxsi %c0_i32_170, %203 : i32
    %205 = arith.minsi %c3513_i32_171, %204 : i32
    %c13_i32_172 = arith.constant 13 : i32
    %c0_i32_173 = arith.constant 0 : i32
    %206 = tpu.memref_slice %arg4[%205, %c0_i32_173] : memref<3514x32xf32, #tpu.memory_space<any>> -> memref<1x32xf32, #tpu.memory_space<any>>
    %c13_i32_174 = arith.constant 13 : i32
    %c0_i32_175 = arith.constant 0 : i32
    %207 = tpu.memref_slice %arg8[%c13_i32_174, %c0_i32_175] : memref<24x32xf32, #tpu.memory_space<vmem>> -> memref<1x32xf32, #tpu.memory_space<vmem>>
    %208 = tpu.memref_slice %arg10[%c13_i32_172] : memref<24x!tpu.dma_semaphore, #tpu.memory_space<semaphore_mem>> -> memref<1x!tpu.dma_semaphore, #tpu.memory_space<semaphore_mem>>
    %209 = tpu.memref_squeeze %208 : memref<1x!tpu.dma_semaphore, #tpu.memory_space<semaphore_mem>> -> memref<!tpu.dma_semaphore, #tpu.memory_space<semaphore_mem>>
    tpu.enqueue_dma source(%206 : memref<1x32xf32, #tpu.memory_space<any>>) target(%207 : memref<1x32xf32, #tpu.memory_space<vmem>>) target_semaphore(%209 : memref<!tpu.dma_semaphore, #tpu.memory_space<semaphore_mem>>)
    %c14_176 = arith.constant 14 : index
    %210 = memref.load %arg2[%c14_176] : memref<24xi32, #tpu.memory_space<smem>>
    %c0_i32_177 = arith.constant 0 : i32
    %c3513_i32_178 = arith.constant 3513 : i32
    %211 = arith.maxsi %c0_i32_177, %210 : i32
    %212 = arith.minsi %c3513_i32_178, %211 : i32
    %c14_i32_179 = arith.constant 14 : i32
    %c0_i32_180 = arith.constant 0 : i32
    %213 = tpu.memref_slice %arg4[%212, %c0_i32_180] : memref<3514x32xf32, #tpu.memory_space<any>> -> memref<1x32xf32, #tpu.memory_space<any>>
    %c14_i32_181 = arith.constant 14 : i32
    %c0_i32_182 = arith.constant 0 : i32
    %214 = tpu.memref_slice %arg8[%c14_i32_181, %c0_i32_182] : memref<24x32xf32, #tpu.memory_space<vmem>> -> memref<1x32xf32, #tpu.memory_space<vmem>>
    %215 = tpu.memref_slice %arg10[%c14_i32_179] : memref<24x!tpu.dma_semaphore, #tpu.memory_space<semaphore_mem>> -> memref<1x!tpu.dma_semaphore, #tpu.memory_space<semaphore_mem>>
    %216 = tpu.memref_squeeze %215 : memref<1x!tpu.dma_semaphore, #tpu.memory_space<semaphore_mem>> -> memref<!tpu.dma_semaphore, #tpu.memory_space<semaphore_mem>>
    tpu.enqueue_dma source(%213 : memref<1x32xf32, #tpu.memory_space<any>>) target(%214 : memref<1x32xf32, #tpu.memory_space<vmem>>) target_semaphore(%216 : memref<!tpu.dma_semaphore, #tpu.memory_space<semaphore_mem>>)
    %c15_183 = arith.constant 15 : index
    %217 = memref.load %arg2[%c15_183] : memref<24xi32, #tpu.memory_space<smem>>
    %c0_i32_184 = arith.constant 0 : i32
    %c3513_i32_185 = arith.constant 3513 : i32
    %218 = arith.maxsi %c0_i32_184, %217 : i32
    %219 = arith.minsi %c3513_i32_185, %218 : i32
    %c15_i32_186 = arith.constant 15 : i32
    %c0_i32_187 = arith.constant 0 : i32
    %220 = tpu.memref_slice %arg4[%219, %c0_i32_187] : memref<3514x32xf32, #tpu.memory_space<any>> -> memref<1x32xf32, #tpu.memory_space<any>>
    %c15_i32_188 = arith.constant 15 : i32
    %c0_i32_189 = arith.constant 0 : i32
    %221 = tpu.memref_slice %arg8[%c15_i32_188, %c0_i32_189] : memref<24x32xf32, #tpu.memory_space<vmem>> -> memref<1x32xf32, #tpu.memory_space<vmem>>
    %222 = tpu.memref_slice %arg10[%c15_i32_186] : memref<24x!tpu.dma_semaphore, #tpu.memory_space<semaphore_mem>> -> memref<1x!tpu.dma_semaphore, #tpu.memory_space<semaphore_mem>>
    %223 = tpu.memref_squeeze %222 : memref<1x!tpu.dma_semaphore, #tpu.memory_space<semaphore_mem>> -> memref<!tpu.dma_semaphore, #tpu.memory_space<semaphore_mem>>
    tpu.enqueue_dma source(%220 : memref<1x32xf32, #tpu.memory_space<any>>) target(%221 : memref<1x32xf32, #tpu.memory_space<vmem>>) target_semaphore(%223 : memref<!tpu.dma_semaphore, #tpu.memory_space<semaphore_mem>>)
    %c16 = arith.constant 16 : index
    %224 = memref.load %arg2[%c16] : memref<24xi32, #tpu.memory_space<smem>>
    %c0_i32_190 = arith.constant 0 : i32
    %c3513_i32_191 = arith.constant 3513 : i32
    %225 = arith.maxsi %c0_i32_190, %224 : i32
    %226 = arith.minsi %c3513_i32_191, %225 : i32
    %c16_i32 = arith.constant 16 : i32
    %c0_i32_192 = arith.constant 0 : i32
    %227 = tpu.memref_slice %arg4[%226, %c0_i32_192] : memref<3514x32xf32, #tpu.memory_space<any>> -> memref<1x32xf32, #tpu.memory_space<any>>
    %c16_i32_193 = arith.constant 16 : i32
    %c0_i32_194 = arith.constant 0 : i32
    %228 = tpu.memref_slice %arg8[%c16_i32_193, %c0_i32_194] : memref<24x32xf32, #tpu.memory_space<vmem>> -> memref<1x32xf32, #tpu.memory_space<vmem>>
    %229 = tpu.memref_slice %arg10[%c16_i32] : memref<24x!tpu.dma_semaphore, #tpu.memory_space<semaphore_mem>> -> memref<1x!tpu.dma_semaphore, #tpu.memory_space<semaphore_mem>>
    %230 = tpu.memref_squeeze %229 : memref<1x!tpu.dma_semaphore, #tpu.memory_space<semaphore_mem>> -> memref<!tpu.dma_semaphore, #tpu.memory_space<semaphore_mem>>
    tpu.enqueue_dma source(%227 : memref<1x32xf32, #tpu.memory_space<any>>) target(%228 : memref<1x32xf32, #tpu.memory_space<vmem>>) target_semaphore(%230 : memref<!tpu.dma_semaphore, #tpu.memory_space<semaphore_mem>>)
    %c17 = arith.constant 17 : index
    %231 = memref.load %arg2[%c17] : memref<24xi32, #tpu.memory_space<smem>>
    %c0_i32_195 = arith.constant 0 : i32
    %c3513_i32_196 = arith.constant 3513 : i32
    %232 = arith.maxsi %c0_i32_195, %231 : i32
    %233 = arith.minsi %c3513_i32_196, %232 : i32
    %c17_i32 = arith.constant 17 : i32
    %c0_i32_197 = arith.constant 0 : i32
    %234 = tpu.memref_slice %arg4[%233, %c0_i32_197] : memref<3514x32xf32, #tpu.memory_space<any>> -> memref<1x32xf32, #tpu.memory_space<any>>
    %c17_i32_198 = arith.constant 17 : i32
    %c0_i32_199 = arith.constant 0 : i32
    %235 = tpu.memref_slice %arg8[%c17_i32_198, %c0_i32_199] : memref<24x32xf32, #tpu.memory_space<vmem>> -> memref<1x32xf32, #tpu.memory_space<vmem>>
    %236 = tpu.memref_slice %arg10[%c17_i32] : memref<24x!tpu.dma_semaphore, #tpu.memory_space<semaphore_mem>> -> memref<1x!tpu.dma_semaphore, #tpu.memory_space<semaphore_mem>>
    %237 = tpu.memref_squeeze %236 : memref<1x!tpu.dma_semaphore, #tpu.memory_space<semaphore_mem>> -> memref<!tpu.dma_semaphore, #tpu.memory_space<semaphore_mem>>
    tpu.enqueue_dma source(%234 : memref<1x32xf32, #tpu.memory_space<any>>) target(%235 : memref<1x32xf32, #tpu.memory_space<vmem>>) target_semaphore(%237 : memref<!tpu.dma_semaphore, #tpu.memory_space<semaphore_mem>>)
    %c18 = arith.constant 18 : index
    %238 = memref.load %arg2[%c18] : memref<24xi32, #tpu.memory_space<smem>>
    %c0_i32_200 = arith.constant 0 : i32
    %c3513_i32_201 = arith.constant 3513 : i32
    %239 = arith.maxsi %c0_i32_200, %238 : i32
    %240 = arith.minsi %c3513_i32_201, %239 : i32
    %c18_i32 = arith.constant 18 : i32
    %c0_i32_202 = arith.constant 0 : i32
    %241 = tpu.memref_slice %arg4[%240, %c0_i32_202] : memref<3514x32xf32, #tpu.memory_space<any>> -> memref<1x32xf32, #tpu.memory_space<any>>
    %c18_i32_203 = arith.constant 18 : i32
    %c0_i32_204 = arith.constant 0 : i32
    %242 = tpu.memref_slice %arg8[%c18_i32_203, %c0_i32_204] : memref<24x32xf32, #tpu.memory_space<vmem>> -> memref<1x32xf32, #tpu.memory_space<vmem>>
    %243 = tpu.memref_slice %arg10[%c18_i32] : memref<24x!tpu.dma_semaphore, #tpu.memory_space<semaphore_mem>> -> memref<1x!tpu.dma_semaphore, #tpu.memory_space<semaphore_mem>>
    %244 = tpu.memref_squeeze %243 : memref<1x!tpu.dma_semaphore, #tpu.memory_space<semaphore_mem>> -> memref<!tpu.dma_semaphore, #tpu.memory_space<semaphore_mem>>
    tpu.enqueue_dma source(%241 : memref<1x32xf32, #tpu.memory_space<any>>) target(%242 : memref<1x32xf32, #tpu.memory_space<vmem>>) target_semaphore(%244 : memref<!tpu.dma_semaphore, #tpu.memory_space<semaphore_mem>>)
    %c19 = arith.constant 19 : index
    %245 = memref.load %arg2[%c19] : memref<24xi32, #tpu.memory_space<smem>>
    %c0_i32_205 = arith.constant 0 : i32
    %c3513_i32_206 = arith.constant 3513 : i32
    %246 = arith.maxsi %c0_i32_205, %245 : i32
    %247 = arith.minsi %c3513_i32_206, %246 : i32
    %c19_i32 = arith.constant 19 : i32
    %c0_i32_207 = arith.constant 0 : i32
    %248 = tpu.memref_slice %arg4[%247, %c0_i32_207] : memref<3514x32xf32, #tpu.memory_space<any>> -> memref<1x32xf32, #tpu.memory_space<any>>
    %c19_i32_208 = arith.constant 19 : i32
    %c0_i32_209 = arith.constant 0 : i32
    %249 = tpu.memref_slice %arg8[%c19_i32_208, %c0_i32_209] : memref<24x32xf32, #tpu.memory_space<vmem>> -> memref<1x32xf32, #tpu.memory_space<vmem>>
    %250 = tpu.memref_slice %arg10[%c19_i32] : memref<24x!tpu.dma_semaphore, #tpu.memory_space<semaphore_mem>> -> memref<1x!tpu.dma_semaphore, #tpu.memory_space<semaphore_mem>>
    %251 = tpu.memref_squeeze %250 : memref<1x!tpu.dma_semaphore, #tpu.memory_space<semaphore_mem>> -> memref<!tpu.dma_semaphore, #tpu.memory_space<semaphore_mem>>
    tpu.enqueue_dma source(%248 : memref<1x32xf32, #tpu.memory_space<any>>) target(%249 : memref<1x32xf32, #tpu.memory_space<vmem>>) target_semaphore(%251 : memref<!tpu.dma_semaphore, #tpu.memory_space<semaphore_mem>>)
    %c20 = arith.constant 20 : index
    %252 = memref.load %arg2[%c20] : memref<24xi32, #tpu.memory_space<smem>>
    %c0_i32_210 = arith.constant 0 : i32
    %c3513_i32_211 = arith.constant 3513 : i32
    %253 = arith.maxsi %c0_i32_210, %252 : i32
    %254 = arith.minsi %c3513_i32_211, %253 : i32
    %c20_i32 = arith.constant 20 : i32
    %c0_i32_212 = arith.constant 0 : i32
    %255 = tpu.memref_slice %arg4[%254, %c0_i32_212] : memref<3514x32xf32, #tpu.memory_space<any>> -> memref<1x32xf32, #tpu.memory_space<any>>
    %c20_i32_213 = arith.constant 20 : i32
    %c0_i32_214 = arith.constant 0 : i32
    %256 = tpu.memref_slice %arg8[%c20_i32_213, %c0_i32_214] : memref<24x32xf32, #tpu.memory_space<vmem>> -> memref<1x32xf32, #tpu.memory_space<vmem>>
    %257 = tpu.memref_slice %arg10[%c20_i32] : memref<24x!tpu.dma_semaphore, #tpu.memory_space<semaphore_mem>> -> memref<1x!tpu.dma_semaphore, #tpu.memory_space<semaphore_mem>>
    %258 = tpu.memref_squeeze %257 : memref<1x!tpu.dma_semaphore, #tpu.memory_space<semaphore_mem>> -> memref<!tpu.dma_semaphore, #tpu.memory_space<semaphore_mem>>
    tpu.enqueue_dma source(%255 : memref<1x32xf32, #tpu.memory_space<any>>) target(%256 : memref<1x32xf32, #tpu.memory_space<vmem>>) target_semaphore(%258 : memref<!tpu.dma_semaphore, #tpu.memory_space<semaphore_mem>>)
    %c21 = arith.constant 21 : index
    %259 = memref.load %arg2[%c21] : memref<24xi32, #tpu.memory_space<smem>>
    %c0_i32_215 = arith.constant 0 : i32
    %c3513_i32_216 = arith.constant 3513 : i32
    %260 = arith.maxsi %c0_i32_215, %259 : i32
    %261 = arith.minsi %c3513_i32_216, %260 : i32
    %c21_i32 = arith.constant 21 : i32
    %c0_i32_217 = arith.constant 0 : i32
    %262 = tpu.memref_slice %arg4[%261, %c0_i32_217] : memref<3514x32xf32, #tpu.memory_space<any>> -> memref<1x32xf32, #tpu.memory_space<any>>
    %c21_i32_218 = arith.constant 21 : i32
    %c0_i32_219 = arith.constant 0 : i32
    %263 = tpu.memref_slice %arg8[%c21_i32_218, %c0_i32_219] : memref<24x32xf32, #tpu.memory_space<vmem>> -> memref<1x32xf32, #tpu.memory_space<vmem>>
    %264 = tpu.memref_slice %arg10[%c21_i32] : memref<24x!tpu.dma_semaphore, #tpu.memory_space<semaphore_mem>> -> memref<1x!tpu.dma_semaphore, #tpu.memory_space<semaphore_mem>>
    %265 = tpu.memref_squeeze %264 : memref<1x!tpu.dma_semaphore, #tpu.memory_space<semaphore_mem>> -> memref<!tpu.dma_semaphore, #tpu.memory_space<semaphore_mem>>
    tpu.enqueue_dma source(%262 : memref<1x32xf32, #tpu.memory_space<any>>) target(%263 : memref<1x32xf32, #tpu.memory_space<vmem>>) target_semaphore(%265 : memref<!tpu.dma_semaphore, #tpu.memory_space<semaphore_mem>>)
    %c22 = arith.constant 22 : index
    %266 = memref.load %arg2[%c22] : memref<24xi32, #tpu.memory_space<smem>>
    %c0_i32_220 = arith.constant 0 : i32
    %c3513_i32_221 = arith.constant 3513 : i32
    %267 = arith.maxsi %c0_i32_220, %266 : i32
    %268 = arith.minsi %c3513_i32_221, %267 : i32
    %c22_i32 = arith.constant 22 : i32
    %c0_i32_222 = arith.constant 0 : i32
    %269 = tpu.memref_slice %arg4[%268, %c0_i32_222] : memref<3514x32xf32, #tpu.memory_space<any>> -> memref<1x32xf32, #tpu.memory_space<any>>
    %c22_i32_223 = arith.constant 22 : i32
    %c0_i32_224 = arith.constant 0 : i32
    %270 = tpu.memref_slice %arg8[%c22_i32_223, %c0_i32_224] : memref<24x32xf32, #tpu.memory_space<vmem>> -> memref<1x32xf32, #tpu.memory_space<vmem>>
    %271 = tpu.memref_slice %arg10[%c22_i32] : memref<24x!tpu.dma_semaphore, #tpu.memory_space<semaphore_mem>> -> memref<1x!tpu.dma_semaphore, #tpu.memory_space<semaphore_mem>>
    %272 = tpu.memref_squeeze %271 : memref<1x!tpu.dma_semaphore, #tpu.memory_space<semaphore_mem>> -> memref<!tpu.dma_semaphore, #tpu.memory_space<semaphore_mem>>
    tpu.enqueue_dma source(%269 : memref<1x32xf32, #tpu.memory_space<any>>) target(%270 : memref<1x32xf32, #tpu.memory_space<vmem>>) target_semaphore(%272 : memref<!tpu.dma_semaphore, #tpu.memory_space<semaphore_mem>>)
    %c23 = arith.constant 23 : index
    %273 = memref.load %arg2[%c23] : memref<24xi32, #tpu.memory_space<smem>>
    %c0_i32_225 = arith.constant 0 : i32
    %c3513_i32_226 = arith.constant 3513 : i32
    %274 = arith.maxsi %c0_i32_225, %273 : i32
    %275 = arith.minsi %c3513_i32_226, %274 : i32
    %c23_i32 = arith.constant 23 : i32
    %c0_i32_227 = arith.constant 0 : i32
    %276 = tpu.memref_slice %arg4[%275, %c0_i32_227] : memref<3514x32xf32, #tpu.memory_space<any>> -> memref<1x32xf32, #tpu.memory_space<any>>
    %c23_i32_228 = arith.constant 23 : i32
    %c0_i32_229 = arith.constant 0 : i32
    %277 = tpu.memref_slice %arg8[%c23_i32_228, %c0_i32_229] : memref<24x32xf32, #tpu.memory_space<vmem>> -> memref<1x32xf32, #tpu.memory_space<vmem>>
    %278 = tpu.memref_slice %arg10[%c23_i32] : memref<24x!tpu.dma_semaphore, #tpu.memory_space<semaphore_mem>> -> memref<1x!tpu.dma_semaphore, #tpu.memory_space<semaphore_mem>>
    %279 = tpu.memref_squeeze %278 : memref<1x!tpu.dma_semaphore, #tpu.memory_space<semaphore_mem>> -> memref<!tpu.dma_semaphore, #tpu.memory_space<semaphore_mem>>
    tpu.enqueue_dma source(%276 : memref<1x32xf32, #tpu.memory_space<any>>) target(%277 : memref<1x32xf32, #tpu.memory_space<vmem>>) target_semaphore(%279 : memref<!tpu.dma_semaphore, #tpu.memory_space<semaphore_mem>>)
    %c0_i32_230 = arith.constant 0 : i32
    %c0_i32_231 = arith.constant 0 : i32
    %280 = tpu.memref_slice %arg3[%2, %c0_i32_231] : memref<6038x32xf32, #tpu.memory_space<any>> -> memref<1x32xf32, #tpu.memory_space<any>>
    %c0_i32_232 = arith.constant 0 : i32
    %c0_i32_233 = arith.constant 0 : i32
    %281 = tpu.memref_slice %arg7[%c0_i32_232, %c0_i32_233] : memref<16x32xf32, #tpu.memory_space<vmem>> -> memref<1x32xf32, #tpu.memory_space<vmem>>
    %282 = tpu.memref_slice %arg9[%c0_i32_230] : memref<16x!tpu.dma_semaphore, #tpu.memory_space<semaphore_mem>> -> memref<1x!tpu.dma_semaphore, #tpu.memory_space<semaphore_mem>>
    %283 = tpu.memref_squeeze %282 : memref<1x!tpu.dma_semaphore, #tpu.memory_space<semaphore_mem>> -> memref<!tpu.dma_semaphore, #tpu.memory_space<semaphore_mem>>
    tpu.wait_dma2 semaphore(%283 : memref<!tpu.dma_semaphore, #tpu.memory_space<semaphore_mem>>) src(%280 : memref<1x32xf32, #tpu.memory_space<any>>) dst(%281 : memref<1x32xf32, #tpu.memory_space<vmem>>)
    %c1_i32_234 = arith.constant 1 : i32
    %c0_i32_235 = arith.constant 0 : i32
    %284 = tpu.memref_slice %arg3[%9, %c0_i32_235] : memref<6038x32xf32, #tpu.memory_space<any>> -> memref<1x32xf32, #tpu.memory_space<any>>
    %c1_i32_236 = arith.constant 1 : i32
    %c0_i32_237 = arith.constant 0 : i32
    %285 = tpu.memref_slice %arg7[%c1_i32_236, %c0_i32_237] : memref<16x32xf32, #tpu.memory_space<vmem>> -> memref<1x32xf32, #tpu.memory_space<vmem>>
    %286 = tpu.memref_slice %arg9[%c1_i32_234] : memref<16x!tpu.dma_semaphore, #tpu.memory_space<semaphore_mem>> -> memref<1x!tpu.dma_semaphore, #tpu.memory_space<semaphore_mem>>
    %287 = tpu.memref_squeeze %286 : memref<1x!tpu.dma_semaphore, #tpu.memory_space<semaphore_mem>> -> memref<!tpu.dma_semaphore, #tpu.memory_space<semaphore_mem>>
    tpu.wait_dma2 semaphore(%287 : memref<!tpu.dma_semaphore, #tpu.memory_space<semaphore_mem>>) src(%284 : memref<1x32xf32, #tpu.memory_space<any>>) dst(%285 : memref<1x32xf32, #tpu.memory_space<vmem>>)
    %c2_i32_238 = arith.constant 2 : i32
    %c0_i32_239 = arith.constant 0 : i32
    %288 = tpu.memref_slice %arg3[%16, %c0_i32_239] : memref<6038x32xf32, #tpu.memory_space<any>> -> memref<1x32xf32, #tpu.memory_space<any>>
    %c2_i32_240 = arith.constant 2 : i32
    %c0_i32_241 = arith.constant 0 : i32
    %289 = tpu.memref_slice %arg7[%c2_i32_240, %c0_i32_241] : memref<16x32xf32, #tpu.memory_space<vmem>> -> memref<1x32xf32, #tpu.memory_space<vmem>>
    %290 = tpu.memref_slice %arg9[%c2_i32_238] : memref<16x!tpu.dma_semaphore, #tpu.memory_space<semaphore_mem>> -> memref<1x!tpu.dma_semaphore, #tpu.memory_space<semaphore_mem>>
    %291 = tpu.memref_squeeze %290 : memref<1x!tpu.dma_semaphore, #tpu.memory_space<semaphore_mem>> -> memref<!tpu.dma_semaphore, #tpu.memory_space<semaphore_mem>>
    tpu.wait_dma2 semaphore(%291 : memref<!tpu.dma_semaphore, #tpu.memory_space<semaphore_mem>>) src(%288 : memref<1x32xf32, #tpu.memory_space<any>>) dst(%289 : memref<1x32xf32, #tpu.memory_space<vmem>>)
    %c3_i32_242 = arith.constant 3 : i32
    %c0_i32_243 = arith.constant 0 : i32
    %292 = tpu.memref_slice %arg3[%23, %c0_i32_243] : memref<6038x32xf32, #tpu.memory_space<any>> -> memref<1x32xf32, #tpu.memory_space<any>>
    %c3_i32_244 = arith.constant 3 : i32
    %c0_i32_245 = arith.constant 0 : i32
    %293 = tpu.memref_slice %arg7[%c3_i32_244, %c0_i32_245] : memref<16x32xf32, #tpu.memory_space<vmem>> -> memref<1x32xf32, #tpu.memory_space<vmem>>
    %294 = tpu.memref_slice %arg9[%c3_i32_242] : memref<16x!tpu.dma_semaphore, #tpu.memory_space<semaphore_mem>> -> memref<1x!tpu.dma_semaphore, #tpu.memory_space<semaphore_mem>>
    %295 = tpu.memref_squeeze %294 : memref<1x!tpu.dma_semaphore, #tpu.memory_space<semaphore_mem>> -> memref<!tpu.dma_semaphore, #tpu.memory_space<semaphore_mem>>
    tpu.wait_dma2 semaphore(%295 : memref<!tpu.dma_semaphore, #tpu.memory_space<semaphore_mem>>) src(%292 : memref<1x32xf32, #tpu.memory_space<any>>) dst(%293 : memref<1x32xf32, #tpu.memory_space<vmem>>)
    %c4_i32_246 = arith.constant 4 : i32
    %c0_i32_247 = arith.constant 0 : i32
    %296 = tpu.memref_slice %arg3[%30, %c0_i32_247] : memref<6038x32xf32, #tpu.memory_space<any>> -> memref<1x32xf32, #tpu.memory_space<any>>
    %c4_i32_248 = arith.constant 4 : i32
    %c0_i32_249 = arith.constant 0 : i32
    %297 = tpu.memref_slice %arg7[%c4_i32_248, %c0_i32_249] : memref<16x32xf32, #tpu.memory_space<vmem>> -> memref<1x32xf32, #tpu.memory_space<vmem>>
    %298 = tpu.memref_slice %arg9[%c4_i32_246] : memref<16x!tpu.dma_semaphore, #tpu.memory_space<semaphore_mem>> -> memref<1x!tpu.dma_semaphore, #tpu.memory_space<semaphore_mem>>
    %299 = tpu.memref_squeeze %298 : memref<1x!tpu.dma_semaphore, #tpu.memory_space<semaphore_mem>> -> memref<!tpu.dma_semaphore, #tpu.memory_space<semaphore_mem>>
    tpu.wait_dma2 semaphore(%299 : memref<!tpu.dma_semaphore, #tpu.memory_space<semaphore_mem>>) src(%296 : memref<1x32xf32, #tpu.memory_space<any>>) dst(%297 : memref<1x32xf32, #tpu.memory_space<vmem>>)
    %c5_i32_250 = arith.constant 5 : i32
    %c0_i32_251 = arith.constant 0 : i32
    %300 = tpu.memref_slice %arg3[%37, %c0_i32_251] : memref<6038x32xf32, #tpu.memory_space<any>> -> memref<1x32xf32, #tpu.memory_space<any>>
    %c5_i32_252 = arith.constant 5 : i32
    %c0_i32_253 = arith.constant 0 : i32
    %301 = tpu.memref_slice %arg7[%c5_i32_252, %c0_i32_253] : memref<16x32xf32, #tpu.memory_space<vmem>> -> memref<1x32xf32, #tpu.memory_space<vmem>>
    %302 = tpu.memref_slice %arg9[%c5_i32_250] : memref<16x!tpu.dma_semaphore, #tpu.memory_space<semaphore_mem>> -> memref<1x!tpu.dma_semaphore, #tpu.memory_space<semaphore_mem>>
    %303 = tpu.memref_squeeze %302 : memref<1x!tpu.dma_semaphore, #tpu.memory_space<semaphore_mem>> -> memref<!tpu.dma_semaphore, #tpu.memory_space<semaphore_mem>>
    tpu.wait_dma2 semaphore(%303 : memref<!tpu.dma_semaphore, #tpu.memory_space<semaphore_mem>>) src(%300 : memref<1x32xf32, #tpu.memory_space<any>>) dst(%301 : memref<1x32xf32, #tpu.memory_space<vmem>>)
    %c6_i32_254 = arith.constant 6 : i32
    %c0_i32_255 = arith.constant 0 : i32
    %304 = tpu.memref_slice %arg3[%44, %c0_i32_255] : memref<6038x32xf32, #tpu.memory_space<any>> -> memref<1x32xf32, #tpu.memory_space<any>>
    %c6_i32_256 = arith.constant 6 : i32
    %c0_i32_257 = arith.constant 0 : i32
    %305 = tpu.memref_slice %arg7[%c6_i32_256, %c0_i32_257] : memref<16x32xf32, #tpu.memory_space<vmem>> -> memref<1x32xf32, #tpu.memory_space<vmem>>
    %306 = tpu.memref_slice %arg9[%c6_i32_254] : memref<16x!tpu.dma_semaphore, #tpu.memory_space<semaphore_mem>> -> memref<1x!tpu.dma_semaphore, #tpu.memory_space<semaphore_mem>>
    %307 = tpu.memref_squeeze %306 : memref<1x!tpu.dma_semaphore, #tpu.memory_space<semaphore_mem>> -> memref<!tpu.dma_semaphore, #tpu.memory_space<semaphore_mem>>
    tpu.wait_dma2 semaphore(%307 : memref<!tpu.dma_semaphore, #tpu.memory_space<semaphore_mem>>) src(%304 : memref<1x32xf32, #tpu.memory_space<any>>) dst(%305 : memref<1x32xf32, #tpu.memory_space<vmem>>)
    %c7_i32_258 = arith.constant 7 : i32
    %c0_i32_259 = arith.constant 0 : i32
    %308 = tpu.memref_slice %arg3[%51, %c0_i32_259] : memref<6038x32xf32, #tpu.memory_space<any>> -> memref<1x32xf32, #tpu.memory_space<any>>
    %c7_i32_260 = arith.constant 7 : i32
    %c0_i32_261 = arith.constant 0 : i32
    %309 = tpu.memref_slice %arg7[%c7_i32_260, %c0_i32_261] : memref<16x32xf32, #tpu.memory_space<vmem>> -> memref<1x32xf32, #tpu.memory_space<vmem>>
    %310 = tpu.memref_slice %arg9[%c7_i32_258] : memref<16x!tpu.dma_semaphore, #tpu.memory_space<semaphore_mem>> -> memref<1x!tpu.dma_semaphore, #tpu.memory_space<semaphore_mem>>
    %311 = tpu.memref_squeeze %310 : memref<1x!tpu.dma_semaphore, #tpu.memory_space<semaphore_mem>> -> memref<!tpu.dma_semaphore, #tpu.memory_space<semaphore_mem>>
    tpu.wait_dma2 semaphore(%311 : memref<!tpu.dma_semaphore, #tpu.memory_space<semaphore_mem>>) src(%308 : memref<1x32xf32, #tpu.memory_space<any>>) dst(%309 : memref<1x32xf32, #tpu.memory_space<vmem>>)
    %c8_i32_262 = arith.constant 8 : i32
    %c0_i32_263 = arith.constant 0 : i32
    %312 = tpu.memref_slice %arg3[%58, %c0_i32_263] : memref<6038x32xf32, #tpu.memory_space<any>> -> memref<1x32xf32, #tpu.memory_space<any>>
    %c8_i32_264 = arith.constant 8 : i32
    %c0_i32_265 = arith.constant 0 : i32
    %313 = tpu.memref_slice %arg7[%c8_i32_264, %c0_i32_265] : memref<16x32xf32, #tpu.memory_space<vmem>> -> memref<1x32xf32, #tpu.memory_space<vmem>>
    %314 = tpu.memref_slice %arg9[%c8_i32_262] : memref<16x!tpu.dma_semaphore, #tpu.memory_space<semaphore_mem>> -> memref<1x!tpu.dma_semaphore, #tpu.memory_space<semaphore_mem>>
    %315 = tpu.memref_squeeze %314 : memref<1x!tpu.dma_semaphore, #tpu.memory_space<semaphore_mem>> -> memref<!tpu.dma_semaphore, #tpu.memory_space<semaphore_mem>>
    tpu.wait_dma2 semaphore(%315 : memref<!tpu.dma_semaphore, #tpu.memory_space<semaphore_mem>>) src(%312 : memref<1x32xf32, #tpu.memory_space<any>>) dst(%313 : memref<1x32xf32, #tpu.memory_space<vmem>>)
    %c9_i32_266 = arith.constant 9 : i32
    %c0_i32_267 = arith.constant 0 : i32
    %316 = tpu.memref_slice %arg3[%65, %c0_i32_267] : memref<6038x32xf32, #tpu.memory_space<any>> -> memref<1x32xf32, #tpu.memory_space<any>>
    %c9_i32_268 = arith.constant 9 : i32
    %c0_i32_269 = arith.constant 0 : i32
    %317 = tpu.memref_slice %arg7[%c9_i32_268, %c0_i32_269] : memref<16x32xf32, #tpu.memory_space<vmem>> -> memref<1x32xf32, #tpu.memory_space<vmem>>
    %318 = tpu.memref_slice %arg9[%c9_i32_266] : memref<16x!tpu.dma_semaphore, #tpu.memory_space<semaphore_mem>> -> memref<1x!tpu.dma_semaphore, #tpu.memory_space<semaphore_mem>>
    %319 = tpu.memref_squeeze %318 : memref<1x!tpu.dma_semaphore, #tpu.memory_space<semaphore_mem>> -> memref<!tpu.dma_semaphore, #tpu.memory_space<semaphore_mem>>
    tpu.wait_dma2 semaphore(%319 : memref<!tpu.dma_semaphore, #tpu.memory_space<semaphore_mem>>) src(%316 : memref<1x32xf32, #tpu.memory_space<any>>) dst(%317 : memref<1x32xf32, #tpu.memory_space<vmem>>)
    %c10_i32_270 = arith.constant 10 : i32
    %c0_i32_271 = arith.constant 0 : i32
    %320 = tpu.memref_slice %arg3[%72, %c0_i32_271] : memref<6038x32xf32, #tpu.memory_space<any>> -> memref<1x32xf32, #tpu.memory_space<any>>
    %c10_i32_272 = arith.constant 10 : i32
    %c0_i32_273 = arith.constant 0 : i32
    %321 = tpu.memref_slice %arg7[%c10_i32_272, %c0_i32_273] : memref<16x32xf32, #tpu.memory_space<vmem>> -> memref<1x32xf32, #tpu.memory_space<vmem>>
    %322 = tpu.memref_slice %arg9[%c10_i32_270] : memref<16x!tpu.dma_semaphore, #tpu.memory_space<semaphore_mem>> -> memref<1x!tpu.dma_semaphore, #tpu.memory_space<semaphore_mem>>
    %323 = tpu.memref_squeeze %322 : memref<1x!tpu.dma_semaphore, #tpu.memory_space<semaphore_mem>> -> memref<!tpu.dma_semaphore, #tpu.memory_space<semaphore_mem>>
    tpu.wait_dma2 semaphore(%323 : memref<!tpu.dma_semaphore, #tpu.memory_space<semaphore_mem>>) src(%320 : memref<1x32xf32, #tpu.memory_space<any>>) dst(%321 : memref<1x32xf32, #tpu.memory_space<vmem>>)
    %c11_i32_274 = arith.constant 11 : i32
    %c0_i32_275 = arith.constant 0 : i32
    %324 = tpu.memref_slice %arg3[%79, %c0_i32_275] : memref<6038x32xf32, #tpu.memory_space<any>> -> memref<1x32xf32, #tpu.memory_space<any>>
    %c11_i32_276 = arith.constant 11 : i32
    %c0_i32_277 = arith.constant 0 : i32
    %325 = tpu.memref_slice %arg7[%c11_i32_276, %c0_i32_277] : memref<16x32xf32, #tpu.memory_space<vmem>> -> memref<1x32xf32, #tpu.memory_space<vmem>>
    %326 = tpu.memref_slice %arg9[%c11_i32_274] : memref<16x!tpu.dma_semaphore, #tpu.memory_space<semaphore_mem>> -> memref<1x!tpu.dma_semaphore, #tpu.memory_space<semaphore_mem>>
    %327 = tpu.memref_squeeze %326 : memref<1x!tpu.dma_semaphore, #tpu.memory_space<semaphore_mem>> -> memref<!tpu.dma_semaphore, #tpu.memory_space<semaphore_mem>>
    tpu.wait_dma2 semaphore(%327 : memref<!tpu.dma_semaphore, #tpu.memory_space<semaphore_mem>>) src(%324 : memref<1x32xf32, #tpu.memory_space<any>>) dst(%325 : memref<1x32xf32, #tpu.memory_space<vmem>>)
    %c12_i32_278 = arith.constant 12 : i32
    %c0_i32_279 = arith.constant 0 : i32
    %328 = tpu.memref_slice %arg3[%86, %c0_i32_279] : memref<6038x32xf32, #tpu.memory_space<any>> -> memref<1x32xf32, #tpu.memory_space<any>>
    %c12_i32_280 = arith.constant 12 : i32
    %c0_i32_281 = arith.constant 0 : i32
    %329 = tpu.memref_slice %arg7[%c12_i32_280, %c0_i32_281] : memref<16x32xf32, #tpu.memory_space<vmem>> -> memref<1x32xf32, #tpu.memory_space<vmem>>
    %330 = tpu.memref_slice %arg9[%c12_i32_278] : memref<16x!tpu.dma_semaphore, #tpu.memory_space<semaphore_mem>> -> memref<1x!tpu.dma_semaphore, #tpu.memory_space<semaphore_mem>>
    %331 = tpu.memref_squeeze %330 : memref<1x!tpu.dma_semaphore, #tpu.memory_space<semaphore_mem>> -> memref<!tpu.dma_semaphore, #tpu.memory_space<semaphore_mem>>
    tpu.wait_dma2 semaphore(%331 : memref<!tpu.dma_semaphore, #tpu.memory_space<semaphore_mem>>) src(%328 : memref<1x32xf32, #tpu.memory_space<any>>) dst(%329 : memref<1x32xf32, #tpu.memory_space<vmem>>)
    %c13_i32_282 = arith.constant 13 : i32
    %c0_i32_283 = arith.constant 0 : i32
    %332 = tpu.memref_slice %arg3[%93, %c0_i32_283] : memref<6038x32xf32, #tpu.memory_space<any>> -> memref<1x32xf32, #tpu.memory_space<any>>
    %c13_i32_284 = arith.constant 13 : i32
    %c0_i32_285 = arith.constant 0 : i32
    %333 = tpu.memref_slice %arg7[%c13_i32_284, %c0_i32_285] : memref<16x32xf32, #tpu.memory_space<vmem>> -> memref<1x32xf32, #tpu.memory_space<vmem>>
    %334 = tpu.memref_slice %arg9[%c13_i32_282] : memref<16x!tpu.dma_semaphore, #tpu.memory_space<semaphore_mem>> -> memref<1x!tpu.dma_semaphore, #tpu.memory_space<semaphore_mem>>
    %335 = tpu.memref_squeeze %334 : memref<1x!tpu.dma_semaphore, #tpu.memory_space<semaphore_mem>> -> memref<!tpu.dma_semaphore, #tpu.memory_space<semaphore_mem>>
    tpu.wait_dma2 semaphore(%335 : memref<!tpu.dma_semaphore, #tpu.memory_space<semaphore_mem>>) src(%332 : memref<1x32xf32, #tpu.memory_space<any>>) dst(%333 : memref<1x32xf32, #tpu.memory_space<vmem>>)
    %c14_i32_286 = arith.constant 14 : i32
    %c0_i32_287 = arith.constant 0 : i32
    %336 = tpu.memref_slice %arg3[%100, %c0_i32_287] : memref<6038x32xf32, #tpu.memory_space<any>> -> memref<1x32xf32, #tpu.memory_space<any>>
    %c14_i32_288 = arith.constant 14 : i32
    %c0_i32_289 = arith.constant 0 : i32
    %337 = tpu.memref_slice %arg7[%c14_i32_288, %c0_i32_289] : memref<16x32xf32, #tpu.memory_space<vmem>> -> memref<1x32xf32, #tpu.memory_space<vmem>>
    %338 = tpu.memref_slice %arg9[%c14_i32_286] : memref<16x!tpu.dma_semaphore, #tpu.memory_space<semaphore_mem>> -> memref<1x!tpu.dma_semaphore, #tpu.memory_space<semaphore_mem>>
    %339 = tpu.memref_squeeze %338 : memref<1x!tpu.dma_semaphore, #tpu.memory_space<semaphore_mem>> -> memref<!tpu.dma_semaphore, #tpu.memory_space<semaphore_mem>>
    tpu.wait_dma2 semaphore(%339 : memref<!tpu.dma_semaphore, #tpu.memory_space<semaphore_mem>>) src(%336 : memref<1x32xf32, #tpu.memory_space<any>>) dst(%337 : memref<1x32xf32, #tpu.memory_space<vmem>>)
    %c15_i32_290 = arith.constant 15 : i32
    %c0_i32_291 = arith.constant 0 : i32
    %340 = tpu.memref_slice %arg3[%107, %c0_i32_291] : memref<6038x32xf32, #tpu.memory_space<any>> -> memref<1x32xf32, #tpu.memory_space<any>>
    %c15_i32_292 = arith.constant 15 : i32
    %c0_i32_293 = arith.constant 0 : i32
    %341 = tpu.memref_slice %arg7[%c15_i32_292, %c0_i32_293] : memref<16x32xf32, #tpu.memory_space<vmem>> -> memref<1x32xf32, #tpu.memory_space<vmem>>
    %342 = tpu.memref_slice %arg9[%c15_i32_290] : memref<16x!tpu.dma_semaphore, #tpu.memory_space<semaphore_mem>> -> memref<1x!tpu.dma_semaphore, #tpu.memory_space<semaphore_mem>>
    %343 = tpu.memref_squeeze %342 : memref<1x!tpu.dma_semaphore, #tpu.memory_space<semaphore_mem>> -> memref<!tpu.dma_semaphore, #tpu.memory_space<semaphore_mem>>
    tpu.wait_dma2 semaphore(%343 : memref<!tpu.dma_semaphore, #tpu.memory_space<semaphore_mem>>) src(%340 : memref<1x32xf32, #tpu.memory_space<any>>) dst(%341 : memref<1x32xf32, #tpu.memory_space<vmem>>)
    %c0_i32_294 = arith.constant 0 : i32
    %c0_i32_295 = arith.constant 0 : i32
    %344 = tpu.memref_slice %arg4[%114, %c0_i32_295] : memref<3514x32xf32, #tpu.memory_space<any>> -> memref<1x32xf32, #tpu.memory_space<any>>
    %c0_i32_296 = arith.constant 0 : i32
    %c0_i32_297 = arith.constant 0 : i32
    %345 = tpu.memref_slice %arg8[%c0_i32_296, %c0_i32_297] : memref<24x32xf32, #tpu.memory_space<vmem>> -> memref<1x32xf32, #tpu.memory_space<vmem>>
    %346 = tpu.memref_slice %arg10[%c0_i32_294] : memref<24x!tpu.dma_semaphore, #tpu.memory_space<semaphore_mem>> -> memref<1x!tpu.dma_semaphore, #tpu.memory_space<semaphore_mem>>
    %347 = tpu.memref_squeeze %346 : memref<1x!tpu.dma_semaphore, #tpu.memory_space<semaphore_mem>> -> memref<!tpu.dma_semaphore, #tpu.memory_space<semaphore_mem>>
    tpu.wait_dma2 semaphore(%347 : memref<!tpu.dma_semaphore, #tpu.memory_space<semaphore_mem>>) src(%344 : memref<1x32xf32, #tpu.memory_space<any>>) dst(%345 : memref<1x32xf32, #tpu.memory_space<vmem>>)
    %c1_i32_298 = arith.constant 1 : i32
    %c0_i32_299 = arith.constant 0 : i32
    %348 = tpu.memref_slice %arg4[%121, %c0_i32_299] : memref<3514x32xf32, #tpu.memory_space<any>> -> memref<1x32xf32, #tpu.memory_space<any>>
    %c1_i32_300 = arith.constant 1 : i32
    %c0_i32_301 = arith.constant 0 : i32
    %349 = tpu.memref_slice %arg8[%c1_i32_300, %c0_i32_301] : memref<24x32xf32, #tpu.memory_space<vmem>> -> memref<1x32xf32, #tpu.memory_space<vmem>>
    %350 = tpu.memref_slice %arg10[%c1_i32_298] : memref<24x!tpu.dma_semaphore, #tpu.memory_space<semaphore_mem>> -> memref<1x!tpu.dma_semaphore, #tpu.memory_space<semaphore_mem>>
    %351 = tpu.memref_squeeze %350 : memref<1x!tpu.dma_semaphore, #tpu.memory_space<semaphore_mem>> -> memref<!tpu.dma_semaphore, #tpu.memory_space<semaphore_mem>>
    tpu.wait_dma2 semaphore(%351 : memref<!tpu.dma_semaphore, #tpu.memory_space<semaphore_mem>>) src(%348 : memref<1x32xf32, #tpu.memory_space<any>>) dst(%349 : memref<1x32xf32, #tpu.memory_space<vmem>>)
    %c2_i32_302 = arith.constant 2 : i32
    %c0_i32_303 = arith.constant 0 : i32
    %352 = tpu.memref_slice %arg4[%128, %c0_i32_303] : memref<3514x32xf32, #tpu.memory_space<any>> -> memref<1x32xf32, #tpu.memory_space<any>>
    %c2_i32_304 = arith.constant 2 : i32
    %c0_i32_305 = arith.constant 0 : i32
    %353 = tpu.memref_slice %arg8[%c2_i32_304, %c0_i32_305] : memref<24x32xf32, #tpu.memory_space<vmem>> -> memref<1x32xf32, #tpu.memory_space<vmem>>
    %354 = tpu.memref_slice %arg10[%c2_i32_302] : memref<24x!tpu.dma_semaphore, #tpu.memory_space<semaphore_mem>> -> memref<1x!tpu.dma_semaphore, #tpu.memory_space<semaphore_mem>>
    %355 = tpu.memref_squeeze %354 : memref<1x!tpu.dma_semaphore, #tpu.memory_space<semaphore_mem>> -> memref<!tpu.dma_semaphore, #tpu.memory_space<semaphore_mem>>
    tpu.wait_dma2 semaphore(%355 : memref<!tpu.dma_semaphore, #tpu.memory_space<semaphore_mem>>) src(%352 : memref<1x32xf32, #tpu.memory_space<any>>) dst(%353 : memref<1x32xf32, #tpu.memory_space<vmem>>)
    %c3_i32_306 = arith.constant 3 : i32
    %c0_i32_307 = arith.constant 0 : i32
    %356 = tpu.memref_slice %arg4[%135, %c0_i32_307] : memref<3514x32xf32, #tpu.memory_space<any>> -> memref<1x32xf32, #tpu.memory_space<any>>
    %c3_i32_308 = arith.constant 3 : i32
    %c0_i32_309 = arith.constant 0 : i32
    %357 = tpu.memref_slice %arg8[%c3_i32_308, %c0_i32_309] : memref<24x32xf32, #tpu.memory_space<vmem>> -> memref<1x32xf32, #tpu.memory_space<vmem>>
    %358 = tpu.memref_slice %arg10[%c3_i32_306] : memref<24x!tpu.dma_semaphore, #tpu.memory_space<semaphore_mem>> -> memref<1x!tpu.dma_semaphore, #tpu.memory_space<semaphore_mem>>
    %359 = tpu.memref_squeeze %358 : memref<1x!tpu.dma_semaphore, #tpu.memory_space<semaphore_mem>> -> memref<!tpu.dma_semaphore, #tpu.memory_space<semaphore_mem>>
    tpu.wait_dma2 semaphore(%359 : memref<!tpu.dma_semaphore, #tpu.memory_space<semaphore_mem>>) src(%356 : memref<1x32xf32, #tpu.memory_space<any>>) dst(%357 : memref<1x32xf32, #tpu.memory_space<vmem>>)
    %c4_i32_310 = arith.constant 4 : i32
    %c0_i32_311 = arith.constant 0 : i32
    %360 = tpu.memref_slice %arg4[%142, %c0_i32_311] : memref<3514x32xf32, #tpu.memory_space<any>> -> memref<1x32xf32, #tpu.memory_space<any>>
    %c4_i32_312 = arith.constant 4 : i32
    %c0_i32_313 = arith.constant 0 : i32
    %361 = tpu.memref_slice %arg8[%c4_i32_312, %c0_i32_313] : memref<24x32xf32, #tpu.memory_space<vmem>> -> memref<1x32xf32, #tpu.memory_space<vmem>>
    %362 = tpu.memref_slice %arg10[%c4_i32_310] : memref<24x!tpu.dma_semaphore, #tpu.memory_space<semaphore_mem>> -> memref<1x!tpu.dma_semaphore, #tpu.memory_space<semaphore_mem>>
    %363 = tpu.memref_squeeze %362 : memref<1x!tpu.dma_semaphore, #tpu.memory_space<semaphore_mem>> -> memref<!tpu.dma_semaphore, #tpu.memory_space<semaphore_mem>>
    tpu.wait_dma2 semaphore(%363 : memref<!tpu.dma_semaphore, #tpu.memory_space<semaphore_mem>>) src(%360 : memref<1x32xf32, #tpu.memory_space<any>>) dst(%361 : memref<1x32xf32, #tpu.memory_space<vmem>>)
    %c5_i32_314 = arith.constant 5 : i32
    %c0_i32_315 = arith.constant 0 : i32
    %364 = tpu.memref_slice %arg4[%149, %c0_i32_315] : memref<3514x32xf32, #tpu.memory_space<any>> -> memref<1x32xf32, #tpu.memory_space<any>>
    %c5_i32_316 = arith.constant 5 : i32
    %c0_i32_317 = arith.constant 0 : i32
    %365 = tpu.memref_slice %arg8[%c5_i32_316, %c0_i32_317] : memref<24x32xf32, #tpu.memory_space<vmem>> -> memref<1x32xf32, #tpu.memory_space<vmem>>
    %366 = tpu.memref_slice %arg10[%c5_i32_314] : memref<24x!tpu.dma_semaphore, #tpu.memory_space<semaphore_mem>> -> memref<1x!tpu.dma_semaphore, #tpu.memory_space<semaphore_mem>>
    %367 = tpu.memref_squeeze %366 : memref<1x!tpu.dma_semaphore, #tpu.memory_space<semaphore_mem>> -> memref<!tpu.dma_semaphore, #tpu.memory_space<semaphore_mem>>
    tpu.wait_dma2 semaphore(%367 : memref<!tpu.dma_semaphore, #tpu.memory_space<semaphore_mem>>) src(%364 : memref<1x32xf32, #tpu.memory_space<any>>) dst(%365 : memref<1x32xf32, #tpu.memory_space<vmem>>)
    %c6_i32_318 = arith.constant 6 : i32
    %c0_i32_319 = arith.constant 0 : i32
    %368 = tpu.memref_slice %arg4[%156, %c0_i32_319] : memref<3514x32xf32, #tpu.memory_space<any>> -> memref<1x32xf32, #tpu.memory_space<any>>
    %c6_i32_320 = arith.constant 6 : i32
    %c0_i32_321 = arith.constant 0 : i32
    %369 = tpu.memref_slice %arg8[%c6_i32_320, %c0_i32_321] : memref<24x32xf32, #tpu.memory_space<vmem>> -> memref<1x32xf32, #tpu.memory_space<vmem>>
    %370 = tpu.memref_slice %arg10[%c6_i32_318] : memref<24x!tpu.dma_semaphore, #tpu.memory_space<semaphore_mem>> -> memref<1x!tpu.dma_semaphore, #tpu.memory_space<semaphore_mem>>
    %371 = tpu.memref_squeeze %370 : memref<1x!tpu.dma_semaphore, #tpu.memory_space<semaphore_mem>> -> memref<!tpu.dma_semaphore, #tpu.memory_space<semaphore_mem>>
    tpu.wait_dma2 semaphore(%371 : memref<!tpu.dma_semaphore, #tpu.memory_space<semaphore_mem>>) src(%368 : memref<1x32xf32, #tpu.memory_space<any>>) dst(%369 : memref<1x32xf32, #tpu.memory_space<vmem>>)
    %c7_i32_322 = arith.constant 7 : i32
    %c0_i32_323 = arith.constant 0 : i32
    %372 = tpu.memref_slice %arg4[%163, %c0_i32_323] : memref<3514x32xf32, #tpu.memory_space<any>> -> memref<1x32xf32, #tpu.memory_space<any>>
    %c7_i32_324 = arith.constant 7 : i32
    %c0_i32_325 = arith.constant 0 : i32
    %373 = tpu.memref_slice %arg8[%c7_i32_324, %c0_i32_325] : memref<24x32xf32, #tpu.memory_space<vmem>> -> memref<1x32xf32, #tpu.memory_space<vmem>>
    %374 = tpu.memref_slice %arg10[%c7_i32_322] : memref<24x!tpu.dma_semaphore, #tpu.memory_space<semaphore_mem>> -> memref<1x!tpu.dma_semaphore, #tpu.memory_space<semaphore_mem>>
    %375 = tpu.memref_squeeze %374 : memref<1x!tpu.dma_semaphore, #tpu.memory_space<semaphore_mem>> -> memref<!tpu.dma_semaphore, #tpu.memory_space<semaphore_mem>>
    tpu.wait_dma2 semaphore(%375 : memref<!tpu.dma_semaphore, #tpu.memory_space<semaphore_mem>>) src(%372 : memref<1x32xf32, #tpu.memory_space<any>>) dst(%373 : memref<1x32xf32, #tpu.memory_space<vmem>>)
    %c8_i32_326 = arith.constant 8 : i32
    %c0_i32_327 = arith.constant 0 : i32
    %376 = tpu.memref_slice %arg4[%170, %c0_i32_327] : memref<3514x32xf32, #tpu.memory_space<any>> -> memref<1x32xf32, #tpu.memory_space<any>>
    %c8_i32_328 = arith.constant 8 : i32
    %c0_i32_329 = arith.constant 0 : i32
    %377 = tpu.memref_slice %arg8[%c8_i32_328, %c0_i32_329] : memref<24x32xf32, #tpu.memory_space<vmem>> -> memref<1x32xf32, #tpu.memory_space<vmem>>
    %378 = tpu.memref_slice %arg10[%c8_i32_326] : memref<24x!tpu.dma_semaphore, #tpu.memory_space<semaphore_mem>> -> memref<1x!tpu.dma_semaphore, #tpu.memory_space<semaphore_mem>>
    %379 = tpu.memref_squeeze %378 : memref<1x!tpu.dma_semaphore, #tpu.memory_space<semaphore_mem>> -> memref<!tpu.dma_semaphore, #tpu.memory_space<semaphore_mem>>
    tpu.wait_dma2 semaphore(%379 : memref<!tpu.dma_semaphore, #tpu.memory_space<semaphore_mem>>) src(%376 : memref<1x32xf32, #tpu.memory_space<any>>) dst(%377 : memref<1x32xf32, #tpu.memory_space<vmem>>)
    %c9_i32_330 = arith.constant 9 : i32
    %c0_i32_331 = arith.constant 0 : i32
    %380 = tpu.memref_slice %arg4[%177, %c0_i32_331] : memref<3514x32xf32, #tpu.memory_space<any>> -> memref<1x32xf32, #tpu.memory_space<any>>
    %c9_i32_332 = arith.constant 9 : i32
    %c0_i32_333 = arith.constant 0 : i32
    %381 = tpu.memref_slice %arg8[%c9_i32_332, %c0_i32_333] : memref<24x32xf32, #tpu.memory_space<vmem>> -> memref<1x32xf32, #tpu.memory_space<vmem>>
    %382 = tpu.memref_slice %arg10[%c9_i32_330] : memref<24x!tpu.dma_semaphore, #tpu.memory_space<semaphore_mem>> -> memref<1x!tpu.dma_semaphore, #tpu.memory_space<semaphore_mem>>
    %383 = tpu.memref_squeeze %382 : memref<1x!tpu.dma_semaphore, #tpu.memory_space<semaphore_mem>> -> memref<!tpu.dma_semaphore, #tpu.memory_space<semaphore_mem>>
    tpu.wait_dma2 semaphore(%383 : memref<!tpu.dma_semaphore, #tpu.memory_space<semaphore_mem>>) src(%380 : memref<1x32xf32, #tpu.memory_space<any>>) dst(%381 : memref<1x32xf32, #tpu.memory_space<vmem>>)
    %c10_i32_334 = arith.constant 10 : i32
    %c0_i32_335 = arith.constant 0 : i32
    %384 = tpu.memref_slice %arg4[%184, %c0_i32_335] : memref<3514x32xf32, #tpu.memory_space<any>> -> memref<1x32xf32, #tpu.memory_space<any>>
    %c10_i32_336 = arith.constant 10 : i32
    %c0_i32_337 = arith.constant 0 : i32
    %385 = tpu.memref_slice %arg8[%c10_i32_336, %c0_i32_337] : memref<24x32xf32, #tpu.memory_space<vmem>> -> memref<1x32xf32, #tpu.memory_space<vmem>>
    %386 = tpu.memref_slice %arg10[%c10_i32_334] : memref<24x!tpu.dma_semaphore, #tpu.memory_space<semaphore_mem>> -> memref<1x!tpu.dma_semaphore, #tpu.memory_space<semaphore_mem>>
    %387 = tpu.memref_squeeze %386 : memref<1x!tpu.dma_semaphore, #tpu.memory_space<semaphore_mem>> -> memref<!tpu.dma_semaphore, #tpu.memory_space<semaphore_mem>>
    tpu.wait_dma2 semaphore(%387 : memref<!tpu.dma_semaphore, #tpu.memory_space<semaphore_mem>>) src(%384 : memref<1x32xf32, #tpu.memory_space<any>>) dst(%385 : memref<1x32xf32, #tpu.memory_space<vmem>>)
    %c11_i32_338 = arith.constant 11 : i32
    %c0_i32_339 = arith.constant 0 : i32
    %388 = tpu.memref_slice %arg4[%191, %c0_i32_339] : memref<3514x32xf32, #tpu.memory_space<any>> -> memref<1x32xf32, #tpu.memory_space<any>>
    %c11_i32_340 = arith.constant 11 : i32
    %c0_i32_341 = arith.constant 0 : i32
    %389 = tpu.memref_slice %arg8[%c11_i32_340, %c0_i32_341] : memref<24x32xf32, #tpu.memory_space<vmem>> -> memref<1x32xf32, #tpu.memory_space<vmem>>
    %390 = tpu.memref_slice %arg10[%c11_i32_338] : memref<24x!tpu.dma_semaphore, #tpu.memory_space<semaphore_mem>> -> memref<1x!tpu.dma_semaphore, #tpu.memory_space<semaphore_mem>>
    %391 = tpu.memref_squeeze %390 : memref<1x!tpu.dma_semaphore, #tpu.memory_space<semaphore_mem>> -> memref<!tpu.dma_semaphore, #tpu.memory_space<semaphore_mem>>
    tpu.wait_dma2 semaphore(%391 : memref<!tpu.dma_semaphore, #tpu.memory_space<semaphore_mem>>) src(%388 : memref<1x32xf32, #tpu.memory_space<any>>) dst(%389 : memref<1x32xf32, #tpu.memory_space<vmem>>)
    %c12_i32_342 = arith.constant 12 : i32
    %c0_i32_343 = arith.constant 0 : i32
    %392 = tpu.memref_slice %arg4[%198, %c0_i32_343] : memref<3514x32xf32, #tpu.memory_space<any>> -> memref<1x32xf32, #tpu.memory_space<any>>
    %c12_i32_344 = arith.constant 12 : i32
    %c0_i32_345 = arith.constant 0 : i32
    %393 = tpu.memref_slice %arg8[%c12_i32_344, %c0_i32_345] : memref<24x32xf32, #tpu.memory_space<vmem>> -> memref<1x32xf32, #tpu.memory_space<vmem>>
    %394 = tpu.memref_slice %arg10[%c12_i32_342] : memref<24x!tpu.dma_semaphore, #tpu.memory_space<semaphore_mem>> -> memref<1x!tpu.dma_semaphore, #tpu.memory_space<semaphore_mem>>
    %395 = tpu.memref_squeeze %394 : memref<1x!tpu.dma_semaphore, #tpu.memory_space<semaphore_mem>> -> memref<!tpu.dma_semaphore, #tpu.memory_space<semaphore_mem>>
    tpu.wait_dma2 semaphore(%395 : memref<!tpu.dma_semaphore, #tpu.memory_space<semaphore_mem>>) src(%392 : memref<1x32xf32, #tpu.memory_space<any>>) dst(%393 : memref<1x32xf32, #tpu.memory_space<vmem>>)
    %c13_i32_346 = arith.constant 13 : i32
    %c0_i32_347 = arith.constant 0 : i32
    %396 = tpu.memref_slice %arg4[%205, %c0_i32_347] : memref<3514x32xf32, #tpu.memory_space<any>> -> memref<1x32xf32, #tpu.memory_space<any>>
    %c13_i32_348 = arith.constant 13 : i32
    %c0_i32_349 = arith.constant 0 : i32
    %397 = tpu.memref_slice %arg8[%c13_i32_348, %c0_i32_349] : memref<24x32xf32, #tpu.memory_space<vmem>> -> memref<1x32xf32, #tpu.memory_space<vmem>>
    %398 = tpu.memref_slice %arg10[%c13_i32_346] : memref<24x!tpu.dma_semaphore, #tpu.memory_space<semaphore_mem>> -> memref<1x!tpu.dma_semaphore, #tpu.memory_space<semaphore_mem>>
    %399 = tpu.memref_squeeze %398 : memref<1x!tpu.dma_semaphore, #tpu.memory_space<semaphore_mem>> -> memref<!tpu.dma_semaphore, #tpu.memory_space<semaphore_mem>>
    tpu.wait_dma2 semaphore(%399 : memref<!tpu.dma_semaphore, #tpu.memory_space<semaphore_mem>>) src(%396 : memref<1x32xf32, #tpu.memory_space<any>>) dst(%397 : memref<1x32xf32, #tpu.memory_space<vmem>>)
    %c14_i32_350 = arith.constant 14 : i32
    %c0_i32_351 = arith.constant 0 : i32
    %400 = tpu.memref_slice %arg4[%212, %c0_i32_351] : memref<3514x32xf32, #tpu.memory_space<any>> -> memref<1x32xf32, #tpu.memory_space<any>>
    %c14_i32_352 = arith.constant 14 : i32
    %c0_i32_353 = arith.constant 0 : i32
    %401 = tpu.memref_slice %arg8[%c14_i32_352, %c0_i32_353] : memref<24x32xf32, #tpu.memory_space<vmem>> -> memref<1x32xf32, #tpu.memory_space<vmem>>
    %402 = tpu.memref_slice %arg10[%c14_i32_350] : memref<24x!tpu.dma_semaphore, #tpu.memory_space<semaphore_mem>> -> memref<1x!tpu.dma_semaphore, #tpu.memory_space<semaphore_mem>>
    %403 = tpu.memref_squeeze %402 : memref<1x!tpu.dma_semaphore, #tpu.memory_space<semaphore_mem>> -> memref<!tpu.dma_semaphore, #tpu.memory_space<semaphore_mem>>
    tpu.wait_dma2 semaphore(%403 : memref<!tpu.dma_semaphore, #tpu.memory_space<semaphore_mem>>) src(%400 : memref<1x32xf32, #tpu.memory_space<any>>) dst(%401 : memref<1x32xf32, #tpu.memory_space<vmem>>)
    %c15_i32_354 = arith.constant 15 : i32
    %c0_i32_355 = arith.constant 0 : i32
    %404 = tpu.memref_slice %arg4[%219, %c0_i32_355] : memref<3514x32xf32, #tpu.memory_space<any>> -> memref<1x32xf32, #tpu.memory_space<any>>
    %c15_i32_356 = arith.constant 15 : i32
    %c0_i32_357 = arith.constant 0 : i32
    %405 = tpu.memref_slice %arg8[%c15_i32_356, %c0_i32_357] : memref<24x32xf32, #tpu.memory_space<vmem>> -> memref<1x32xf32, #tpu.memory_space<vmem>>
    %406 = tpu.memref_slice %arg10[%c15_i32_354] : memref<24x!tpu.dma_semaphore, #tpu.memory_space<semaphore_mem>> -> memref<1x!tpu.dma_semaphore, #tpu.memory_space<semaphore_mem>>
    %407 = tpu.memref_squeeze %406 : memref<1x!tpu.dma_semaphore, #tpu.memory_space<semaphore_mem>> -> memref<!tpu.dma_semaphore, #tpu.memory_space<semaphore_mem>>
    tpu.wait_dma2 semaphore(%407 : memref<!tpu.dma_semaphore, #tpu.memory_space<semaphore_mem>>) src(%404 : memref<1x32xf32, #tpu.memory_space<any>>) dst(%405 : memref<1x32xf32, #tpu.memory_space<vmem>>)
    %c16_i32_358 = arith.constant 16 : i32
    %c0_i32_359 = arith.constant 0 : i32
    %408 = tpu.memref_slice %arg4[%226, %c0_i32_359] : memref<3514x32xf32, #tpu.memory_space<any>> -> memref<1x32xf32, #tpu.memory_space<any>>
    %c16_i32_360 = arith.constant 16 : i32
    %c0_i32_361 = arith.constant 0 : i32
    %409 = tpu.memref_slice %arg8[%c16_i32_360, %c0_i32_361] : memref<24x32xf32, #tpu.memory_space<vmem>> -> memref<1x32xf32, #tpu.memory_space<vmem>>
    %410 = tpu.memref_slice %arg10[%c16_i32_358] : memref<24x!tpu.dma_semaphore, #tpu.memory_space<semaphore_mem>> -> memref<1x!tpu.dma_semaphore, #tpu.memory_space<semaphore_mem>>
    %411 = tpu.memref_squeeze %410 : memref<1x!tpu.dma_semaphore, #tpu.memory_space<semaphore_mem>> -> memref<!tpu.dma_semaphore, #tpu.memory_space<semaphore_mem>>
    tpu.wait_dma2 semaphore(%411 : memref<!tpu.dma_semaphore, #tpu.memory_space<semaphore_mem>>) src(%408 : memref<1x32xf32, #tpu.memory_space<any>>) dst(%409 : memref<1x32xf32, #tpu.memory_space<vmem>>)
    %c17_i32_362 = arith.constant 17 : i32
    %c0_i32_363 = arith.constant 0 : i32
    %412 = tpu.memref_slice %arg4[%233, %c0_i32_363] : memref<3514x32xf32, #tpu.memory_space<any>> -> memref<1x32xf32, #tpu.memory_space<any>>
    %c17_i32_364 = arith.constant 17 : i32
    %c0_i32_365 = arith.constant 0 : i32
    %413 = tpu.memref_slice %arg8[%c17_i32_364, %c0_i32_365] : memref<24x32xf32, #tpu.memory_space<vmem>> -> memref<1x32xf32, #tpu.memory_space<vmem>>
    %414 = tpu.memref_slice %arg10[%c17_i32_362] : memref<24x!tpu.dma_semaphore, #tpu.memory_space<semaphore_mem>> -> memref<1x!tpu.dma_semaphore, #tpu.memory_space<semaphore_mem>>
    %415 = tpu.memref_squeeze %414 : memref<1x!tpu.dma_semaphore, #tpu.memory_space<semaphore_mem>> -> memref<!tpu.dma_semaphore, #tpu.memory_space<semaphore_mem>>
    tpu.wait_dma2 semaphore(%415 : memref<!tpu.dma_semaphore, #tpu.memory_space<semaphore_mem>>) src(%412 : memref<1x32xf32, #tpu.memory_space<any>>) dst(%413 : memref<1x32xf32, #tpu.memory_space<vmem>>)
    %c18_i32_366 = arith.constant 18 : i32
    %c0_i32_367 = arith.constant 0 : i32
    %416 = tpu.memref_slice %arg4[%240, %c0_i32_367] : memref<3514x32xf32, #tpu.memory_space<any>> -> memref<1x32xf32, #tpu.memory_space<any>>
    %c18_i32_368 = arith.constant 18 : i32
    %c0_i32_369 = arith.constant 0 : i32
    %417 = tpu.memref_slice %arg8[%c18_i32_368, %c0_i32_369] : memref<24x32xf32, #tpu.memory_space<vmem>> -> memref<1x32xf32, #tpu.memory_space<vmem>>
    %418 = tpu.memref_slice %arg10[%c18_i32_366] : memref<24x!tpu.dma_semaphore, #tpu.memory_space<semaphore_mem>> -> memref<1x!tpu.dma_semaphore, #tpu.memory_space<semaphore_mem>>
    %419 = tpu.memref_squeeze %418 : memref<1x!tpu.dma_semaphore, #tpu.memory_space<semaphore_mem>> -> memref<!tpu.dma_semaphore, #tpu.memory_space<semaphore_mem>>
    tpu.wait_dma2 semaphore(%419 : memref<!tpu.dma_semaphore, #tpu.memory_space<semaphore_mem>>) src(%416 : memref<1x32xf32, #tpu.memory_space<any>>) dst(%417 : memref<1x32xf32, #tpu.memory_space<vmem>>)
    %c19_i32_370 = arith.constant 19 : i32
    %c0_i32_371 = arith.constant 0 : i32
    %420 = tpu.memref_slice %arg4[%247, %c0_i32_371] : memref<3514x32xf32, #tpu.memory_space<any>> -> memref<1x32xf32, #tpu.memory_space<any>>
    %c19_i32_372 = arith.constant 19 : i32
    %c0_i32_373 = arith.constant 0 : i32
    %421 = tpu.memref_slice %arg8[%c19_i32_372, %c0_i32_373] : memref<24x32xf32, #tpu.memory_space<vmem>> -> memref<1x32xf32, #tpu.memory_space<vmem>>
    %422 = tpu.memref_slice %arg10[%c19_i32_370] : memref<24x!tpu.dma_semaphore, #tpu.memory_space<semaphore_mem>> -> memref<1x!tpu.dma_semaphore, #tpu.memory_space<semaphore_mem>>
    %423 = tpu.memref_squeeze %422 : memref<1x!tpu.dma_semaphore, #tpu.memory_space<semaphore_mem>> -> memref<!tpu.dma_semaphore, #tpu.memory_space<semaphore_mem>>
    tpu.wait_dma2 semaphore(%423 : memref<!tpu.dma_semaphore, #tpu.memory_space<semaphore_mem>>) src(%420 : memref<1x32xf32, #tpu.memory_space<any>>) dst(%421 : memref<1x32xf32, #tpu.memory_space<vmem>>)
    %c20_i32_374 = arith.constant 20 : i32
    %c0_i32_375 = arith.constant 0 : i32
    %424 = tpu.memref_slice %arg4[%254, %c0_i32_375] : memref<3514x32xf32, #tpu.memory_space<any>> -> memref<1x32xf32, #tpu.memory_space<any>>
    %c20_i32_376 = arith.constant 20 : i32
    %c0_i32_377 = arith.constant 0 : i32
    %425 = tpu.memref_slice %arg8[%c20_i32_376, %c0_i32_377] : memref<24x32xf32, #tpu.memory_space<vmem>> -> memref<1x32xf32, #tpu.memory_space<vmem>>
    %426 = tpu.memref_slice %arg10[%c20_i32_374] : memref<24x!tpu.dma_semaphore, #tpu.memory_space<semaphore_mem>> -> memref<1x!tpu.dma_semaphore, #tpu.memory_space<semaphore_mem>>
    %427 = tpu.memref_squeeze %426 : memref<1x!tpu.dma_semaphore, #tpu.memory_space<semaphore_mem>> -> memref<!tpu.dma_semaphore, #tpu.memory_space<semaphore_mem>>
    tpu.wait_dma2 semaphore(%427 : memref<!tpu.dma_semaphore, #tpu.memory_space<semaphore_mem>>) src(%424 : memref<1x32xf32, #tpu.memory_space<any>>) dst(%425 : memref<1x32xf32, #tpu.memory_space<vmem>>)
    %c21_i32_378 = arith.constant 21 : i32
    %c0_i32_379 = arith.constant 0 : i32
    %428 = tpu.memref_slice %arg4[%261, %c0_i32_379] : memref<3514x32xf32, #tpu.memory_space<any>> -> memref<1x32xf32, #tpu.memory_space<any>>
    %c21_i32_380 = arith.constant 21 : i32
    %c0_i32_381 = arith.constant 0 : i32
    %429 = tpu.memref_slice %arg8[%c21_i32_380, %c0_i32_381] : memref<24x32xf32, #tpu.memory_space<vmem>> -> memref<1x32xf32, #tpu.memory_space<vmem>>
    %430 = tpu.memref_slice %arg10[%c21_i32_378] : memref<24x!tpu.dma_semaphore, #tpu.memory_space<semaphore_mem>> -> memref<1x!tpu.dma_semaphore, #tpu.memory_space<semaphore_mem>>
    %431 = tpu.memref_squeeze %430 : memref<1x!tpu.dma_semaphore, #tpu.memory_space<semaphore_mem>> -> memref<!tpu.dma_semaphore, #tpu.memory_space<semaphore_mem>>
    tpu.wait_dma2 semaphore(%431 : memref<!tpu.dma_semaphore, #tpu.memory_space<semaphore_mem>>) src(%428 : memref<1x32xf32, #tpu.memory_space<any>>) dst(%429 : memref<1x32xf32, #tpu.memory_space<vmem>>)
    %c22_i32_382 = arith.constant 22 : i32
    %c0_i32_383 = arith.constant 0 : i32
    %432 = tpu.memref_slice %arg4[%268, %c0_i32_383] : memref<3514x32xf32, #tpu.memory_space<any>> -> memref<1x32xf32, #tpu.memory_space<any>>
    %c22_i32_384 = arith.constant 22 : i32
    %c0_i32_385 = arith.constant 0 : i32
    %433 = tpu.memref_slice %arg8[%c22_i32_384, %c0_i32_385] : memref<24x32xf32, #tpu.memory_space<vmem>> -> memref<1x32xf32, #tpu.memory_space<vmem>>
    %434 = tpu.memref_slice %arg10[%c22_i32_382] : memref<24x!tpu.dma_semaphore, #tpu.memory_space<semaphore_mem>> -> memref<1x!tpu.dma_semaphore, #tpu.memory_space<semaphore_mem>>
    %435 = tpu.memref_squeeze %434 : memref<1x!tpu.dma_semaphore, #tpu.memory_space<semaphore_mem>> -> memref<!tpu.dma_semaphore, #tpu.memory_space<semaphore_mem>>
    tpu.wait_dma2 semaphore(%435 : memref<!tpu.dma_semaphore, #tpu.memory_space<semaphore_mem>>) src(%432 : memref<1x32xf32, #tpu.memory_space<any>>) dst(%433 : memref<1x32xf32, #tpu.memory_space<vmem>>)
    %c23_i32_386 = arith.constant 23 : i32
    %c0_i32_387 = arith.constant 0 : i32
    %436 = tpu.memref_slice %arg4[%275, %c0_i32_387] : memref<3514x32xf32, #tpu.memory_space<any>> -> memref<1x32xf32, #tpu.memory_space<any>>
    %c23_i32_388 = arith.constant 23 : i32
    %c0_i32_389 = arith.constant 0 : i32
    %437 = tpu.memref_slice %arg8[%c23_i32_388, %c0_i32_389] : memref<24x32xf32, #tpu.memory_space<vmem>> -> memref<1x32xf32, #tpu.memory_space<vmem>>
    %438 = tpu.memref_slice %arg10[%c23_i32_386] : memref<24x!tpu.dma_semaphore, #tpu.memory_space<semaphore_mem>> -> memref<1x!tpu.dma_semaphore, #tpu.memory_space<semaphore_mem>>
    %439 = tpu.memref_squeeze %438 : memref<1x!tpu.dma_semaphore, #tpu.memory_space<semaphore_mem>> -> memref<!tpu.dma_semaphore, #tpu.memory_space<semaphore_mem>>
    tpu.wait_dma2 semaphore(%439 : memref<!tpu.dma_semaphore, #tpu.memory_space<semaphore_mem>>) src(%436 : memref<1x32xf32, #tpu.memory_space<any>>) dst(%437 : memref<1x32xf32, #tpu.memory_space<vmem>>)
    %c0_390 = arith.constant 0 : index
    %c0_391 = arith.constant 0 : index
    %440 = vector.load %arg7[%c0_390, %c0_391] : memref<16x32xf32, #tpu.memory_space<vmem>>, vector<8x32xf32>
    %cst = arith.constant dense<0.000000e+00> : vector<32xf32>
    %441 = vector.multi_reduction <add>, %440, %cst [0] : vector<8x32xf32> to vector<32xf32>
    %442 = vector.shape_cast %441 : vector<32xf32> to vector<1x32xf32>
    %c8_392 = arith.constant 8 : index
    %c0_393 = arith.constant 0 : index
    %443 = vector.load %arg7[%c8_392, %c0_393] : memref<16x32xf32, #tpu.memory_space<vmem>>, vector<8x32xf32>
    %cst_394 = arith.constant dense<0.000000e+00> : vector<32xf32>
    %444 = vector.multi_reduction <add>, %443, %cst_394 [0] : vector<8x32xf32> to vector<32xf32>
    %445 = vector.shape_cast %444 : vector<32xf32> to vector<1x32xf32>
    %446 = tpu.concatenate %442, %445 in 0 : vector<1x32xf32>, vector<1x32xf32> -> vector<2x32xf32>
    %c0_395 = arith.constant 0 : index
    %c0_396 = arith.constant 0 : index
    %447 = vector.load %arg5[%c0_395, %c0_396] : memref<2x32xf32, #tpu.memory_space<vmem>>, vector<2x32xf32>
    tpu.vector_store %arg5[%c0_395, %c0_396], %446 {strides = array<i32>} : memref<2x32xf32, #tpu.memory_space<vmem>>, vector<2x32xf32>,
    %c0_397 = arith.constant 0 : index
    %c0_398 = arith.constant 0 : index
    %448 = vector.load %arg8[%c0_397, %c0_398] : memref<24x32xf32, #tpu.memory_space<vmem>>, vector<6x32xf32>
    %cst_399 = arith.constant dense<0.000000e+00> : vector<32xf32>
    %449 = vector.multi_reduction <add>, %448, %cst_399 [0] : vector<6x32xf32> to vector<32xf32>
    %450 = vector.shape_cast %449 : vector<32xf32> to vector<1x32xf32>
    %c6_400 = arith.constant 6 : index
    %c0_401 = arith.constant 0 : index
    %451 = vector.load %arg8[%c6_400, %c0_401] : memref<24x32xf32, #tpu.memory_space<vmem>>, vector<6x32xf32>
    %cst_402 = arith.constant dense<0.000000e+00> : vector<32xf32>
    %452 = vector.multi_reduction <add>, %451, %cst_402 [0] : vector<6x32xf32> to vector<32xf32>
    %453 = vector.shape_cast %452 : vector<32xf32> to vector<1x32xf32>
    %c12_403 = arith.constant 12 : index
    %c0_404 = arith.constant 0 : index
    %454 = vector.load %arg8[%c12_403, %c0_404] : memref<24x32xf32, #tpu.memory_space<vmem>>, vector<6x32xf32>
    %cst_405 = arith.constant dense<0.000000e+00> : vector<32xf32>
    %455 = vector.multi_reduction <add>, %454, %cst_405 [0] : vector<6x32xf32> to vector<32xf32>
    %456 = vector.shape_cast %455 : vector<32xf32> to vector<1x32xf32>
    %c18_406 = arith.constant 18 : index
    %c0_407 = arith.constant 0 : index
    %457 = vector.load %arg8[%c18_406, %c0_407] : memref<24x32xf32, #tpu.memory_space<vmem>>, vector<6x32xf32>
    %cst_408 = arith.constant dense<0.000000e+00> : vector<32xf32>
    %458 = vector.multi_reduction <add>, %457, %cst_408 [0] : vector<6x32xf32> to vector<32xf32>
    %459 = vector.shape_cast %458 : vector<32xf32> to vector<1x32xf32>
    %460 = tpu.concatenate %450, %453, %456, %459 in 0 : vector<1x32xf32>, vector<1x32xf32>, vector<1x32xf32>, vector<1x32xf32> -> vector<4x32xf32>
    %c0_409 = arith.constant 0 : index
    %c0_410 = arith.constant 0 : index
    %461 = vector.load %arg6[%c0_409, %c0_410] : memref<4x32xf32, #tpu.memory_space<vmem>>, vector<4x32xf32>
    tpu.vector_store %arg6[%c0_409, %c0_410], %460 {strides = array<i32>} : memref<4x32xf32, #tpu.memory_space<vmem>>, vector<4x32xf32>,
    return
  }
  func.func @transform_2(%arg0: i32, %arg1: memref<16xi32, #tpu.memory_space<smem>>, %arg2: memref<24xi32, #tpu.memory_space<smem>>) -> (i32, i32) {
    %c0_i32 = arith.constant 0 : i32
    %c0_i32_0 = arith.constant 0 : i32
    %c0_i32_1 = arith.constant 0 : i32
    return %c0_i32, %c0_i32_0 : i32, i32
  }
  func.func @transform_3(%arg0: i32, %arg1: memref<16xi32, #tpu.memory_space<smem>>, %arg2: memref<24xi32, #tpu.memory_space<smem>>) -> (i32, i32) {
    %c0_i32 = arith.constant 0 : i32
    %c0_i32_0 = arith.constant 0 : i32
    %c0_i32_1 = arith.constant 0 : i32
    return %c0_i32, %c0_i32_0 : i32, i32
  }
}

</mosaic_0001>

<bundles_post_ra>
// kernel: tpu_custom_call.1
= control target key start
LH: loop header
LB: loop body
LE: loop exit
PB: predicated region body
PF: predicated region fallthrough
CT: control target
= control target key end

     0   :  { %s3732_s0 = inlined_call_operand.vmem [shape: s32[16], index: 0, kind: input, shape index: {}]   ;;  %s3733_s2 = inlined_call_operand.vmem [shape: f32[6038,32], index: 2, kind: input, shape index: {}]   ;;  %s3734_s3 = inlined_call_operand.vmem [shape: f32[3514,32], index: 3, kind: input, shape index: {}]   ;;  %s3735_s4 = inlined_call_operand.hbm [shape: f32[2,32], index: 4, kind: output, shape index: {0}]   ;;  %s3736_s5 = inlined_call_operand.hbm [shape: f32[4,32], index: 5, kind: output, shape index: {1}]   ;;  %s3737_s1 = inlined_call_operand.vmem [shape: s32[24], index: 1, kind: input, shape index: {}]  }
   0x1   :  { %s11_s20 = sshll.u32 %s3732_s0, 4  ;;  %s15_s23 = sshll.u32 %s3737_s1, 4  ;;  %s12_s20 = int_to_ptr.vmem [resolvable:$true] %s11_s20  ;;  %s16_s23 = int_to_ptr.vmem [resolvable:$true] %s15_s23 }
   0x2   :  { %s3387_s24 = scalar_lea.vmem %s12_s20, 16  ;;  %p3392_p1 = scmp.lt.s32.totalorder %s12_s20, %s12_s20 }
   0x3   :  { %p3388_p0 = scmp.ne.s32.totalorder %s12_s20, %s3387_s24  ;;  %p3393_p2 = scmp.lt.s32.totalorder %s3387_s24, %s3387_s24 }
   0x5   :  { %p3394_p3 = por %p3393_p2, %p3392_p1 }
   0x7   :  { %p3395_p4 = pnand %p3394_p3, %p3388_p0 }
   0x9   :  { %3398 = shalt.err (!%p3395_p4)  }
   0xa   :  { %s3541_s25 = smov [#allocation7]   ;;  %s3399_s26 = scalar_lea.vmem %s16_s23, 16 }
   0xb   :  { %14 = dma.vmem_to_smem %s12_s20, 16, %s3541_s25, [#allocation6] }
   0xc   :  { %p3400_p5 = scmp.ne.s32.totalorder %s16_s23, %s3399_s26  ;;  %p3404_p6 = scmp.lt.s32.totalorder %s16_s23, %s16_s23 }
   0xd   :  { %p3405_p7 = scmp.lt.s32.totalorder %s3399_s26, %s3399_s26 }
   0xf   :  { %p3406_p8 = por %p3405_p7, %p3404_p6 }
  0x11   :  { %p3407_p9 = pnand %p3406_p8, %p3400_p5 }
  0x13   :  { %3410 = shalt.err (!%p3407_p9)  }
  0x14   :  { %s3542_s0 = smov [#allocation8]  }
  0x15   :  { %18 = dma.vmem_to_smem %s16_s23, 16, %s3542_s0, [#allocation6] }
  0x16   :  { %3455 = dma.done.wait [#allocation6], 32 }
  0x17   :  { %3456 = vsyncadd [#allocation6], 4294967264 }
  0x18   :  { %20 = sfence }
  0x19   :  { %21 = vsyncpa [#allocation10], 0 }
  0x1a   :  { %22 = vsyncpa [#allocation12], 0  ;;  %s23_s1 = sld [smem:[#allocation7]] }
  0x20   :  { %p24_p10 = scmp.gt.s32.totalorder %s23_s1, 0  ;;  %p3025_p11 = scmp.lt.s32.totalorder %s23_s1, 6037 }
  0x22   :  { %s3739_s1 = smov (!%p24_p10, %s23_s1), 0 }
  0x23   :  { %s3741_s1 = smov (!%p3025_p11, %s3739_s1), 6037 }
  0x24   :  { %s28_s29 = scalar_lea.vmem %s3733_s2, %s3741_s1 }
  0x25   :  { %v46_v0 = vld [vmem:[%s28_s29] sm:$0x1] }
  0x26   :  { %47 = vst [vmem:[#allocation2] sm:$0x1] %v46_v0 }
  0x27   :  { %72 = vsyncadd [#allocation4], 16  ;;  %s3030_s30 = sld [smem:[#allocation7 + $0x1]] }
  0x2d   :  { %p74_p12 = scmp.gt.s32.totalorder %s3030_s30, 0  ;;  %p3031_p13 = scmp.lt.s32.totalorder %s3030_s30, 6037 }
  0x2f   :  { %s3743_s30 = smov (!%p74_p12, %s3030_s30), 0 }
  0x30   :  { %s3745_s30 = smov (!%p3031_p13, %s3743_s30), 6037 }
  0x31   :  { %s78_s8 = scalar_lea.vmem %s3733_s2, %s3745_s30 }
  0x32   :  { %v98_v1 = vld [vmem:[%s78_s8] sm:$0x1] }
  0x33   :  { %99 = vst [vmem:[#allocation2 + $0x1] sm:$0x1] %v98_v1 }
  0x34   :  { %124 = vsyncadd [#allocation4 + $0x1], 16  ;;  %s3036_s9 = sld [smem:[#allocation7 + $0x2]] }
  0x3a   :  { %p126_p0 = scmp.gt.s32.totalorder %s3036_s9, 0  ;;  %p3037_p1 = scmp.lt.s32.totalorder %s3036_s9, 6037 }
  0x3c   :  { %s3747_s9 = smov (!%p126_p0, %s3036_s9), 0 }
  0x3d   :  { %s3749_s9 = smov (!%p3037_p1, %s3747_s9), 6037 }
  0x3e   :  { %s130_s12 = scalar_lea.vmem %s3733_s2, %s3749_s9 }
  0x3f   :  { %v150_v2 = vld [vmem:[%s130_s12] sm:$0x1] }
  0x40   :  { %151 = vst [vmem:[#allocation2 + $0x2] sm:$0x1] %v150_v2 }
  0x41   :  { %176 = vsyncadd [#allocation4 + $0x2], 16  ;;  %s3042_s13 = sld [smem:[#allocation7 + $0x3]] }
  0x47   :  { %p178_p2 = scmp.gt.s32.totalorder %s3042_s13, 0  ;;  %p3043_p3 = scmp.lt.s32.totalorder %s3042_s13, 6037 }
  0x49   :  { %s3751_s13 = smov (!%p178_p2, %s3042_s13), 0 }
  0x4a   :  { %s3753_s13 = smov (!%p3043_p3, %s3751_s13), 6037 }
  0x4b   :  { %s182_s16 = scalar_lea.vmem %s3733_s2, %s3753_s13 }
  0x4c   :  { %v202_v3 = vld [vmem:[%s182_s16] sm:$0x1] }
  0x4d   :  { %203 = vst [vmem:[#allocation2 + $0x3] sm:$0x1] %v202_v3 }
  0x4e   :  { %228 = vsyncadd [#allocation4 + $0x3], 16  ;;  %s3048_s17 = sld [smem:[#allocation7 + $0x4]] }
  0x54   :  { %p230_p4 = scmp.gt.s32.totalorder %s3048_s17, 0  ;;  %p3049_p5 = scmp.lt.s32.totalorder %s3048_s17, 6037 }
  0x56   :  { %s3755_s17 = smov (!%p230_p4, %s3048_s17), 0 }
  0x57   :  { %s3757_s17 = smov (!%p3049_p5, %s3755_s17), 6037 }
  0x58   :  { %s234_s20 = scalar_lea.vmem %s3733_s2, %s3757_s17 }
  0x59   :  { %v254_v4 = vld [vmem:[%s234_s20] sm:$0x1] }
  0x5a   :  { %255 = vst [vmem:[#allocation2 + $0x4] sm:$0x1] %v254_v4 }
  0x5b   :  { %280 = vsyncadd [#allocation4 + $0x4], 16  ;;  %s3054_s21 = sld [smem:[#allocation7 + $0x5]] }
  0x61   :  { %p282_p6 = scmp.gt.s32.totalorder %s3054_s21, 0  ;;  %p3055_p7 = scmp.lt.s32.totalorder %s3054_s21, 6037 }
  0x63   :  { %s3759_s21 = smov (!%p282_p6, %s3054_s21), 0 }
  0x64   :  { %s3761_s21 = smov (!%p3055_p7, %s3759_s21), 6037 }
  0x65   :  { %s286_s24 = scalar_lea.vmem %s3733_s2, %s3761_s21 }
  0x66   :  { %v306_v5 = vld [vmem:[%s286_s24] sm:$0x1] }
  0x67   :  { %307 = vst [vmem:[#allocation2 + $0x5] sm:$0x1] %v306_v5 }
  0x68   :  { %332 = vsyncadd [#allocation4 + $0x5], 16  ;;  %s3060_s25 = sld [smem:[#allocation7 + $0x6]] }
  0x6e   :  { %p334_p8 = scmp.gt.s32.totalorder %s3060_s25, 0  ;;  %p3061_p9 = scmp.lt.s32.totalorder %s3060_s25, 6037 }
  0x70   :  { %s3763_s25 = smov (!%p334_p8, %s3060_s25), 0 }
  0x71   :  { %s3765_s25 = smov (!%p3061_p9, %s3763_s25), 6037 }
  0x72   :  { %s338_s1 = scalar_lea.vmem %s3733_s2, %s3765_s25 }
  0x73   :  { %v358_v6 = vld [vmem:[%s338_s1] sm:$0x1] }
  0x74   :  { %359 = vst [vmem:[#allocation2 + $0x6] sm:$0x1] %v358_v6 }
  0x75   :  { %384 = vsyncadd [#allocation4 + $0x6], 16  ;;  %s3066_s27 = sld [smem:[#allocation7 + $0x7]] }
  0x7b   :  { %p386_p10 = scmp.gt.s32.totalorder %s3066_s27, 0  ;;  %p3067_p11 = scmp.lt.s32.totalorder %s3066_s27, 6037 }
  0x7d   :  { %s3767_s27 = smov (!%p386_p10, %s3066_s27), 0 }
  0x7e   :  { %s3769_s27 = smov (!%p3067_p11, %s3767_s27), 6037 }
  0x7f   :  { %s390_s30 = scalar_lea.vmem %s3733_s2, %s3769_s27 }
  0x80   :  { %v410_v7 = vld [vmem:[%s390_s30] sm:$0x1] }
  0x81   :  { %411 = vst [vmem:[#allocation2 + $0x7] sm:$0x1] %v410_v7 }
  0x82   :  { %436 = vsyncadd [#allocation4 + $0x7], 16  ;;  %s3072_s6 = sld [smem:[#allocation7 + $0x8]] }
  0x88   :  { %p438_p12 = scmp.gt.s32.totalorder %s3072_s6, 0  ;;  %p3073_p13 = scmp.lt.s32.totalorder %s3072_s6, 6037 }
  0x8a   :  { %s3771_s6 = smov (!%p438_p12, %s3072_s6), 0 }
  0x8b   :  { %s3773_s6 = smov (!%p3073_p13, %s3771_s6), 6037 }
  0x8c   :  { %s442_s9 = scalar_lea.vmem %s3733_s2, %s3773_s6 }
  0x8d   :  { %v462_v8 = vld [vmem:[%s442_s9] sm:$0x1] }
  0x8e   :  { %463 = vst [vmem:[#allocation2 + $0x8] sm:$0x1] %v462_v8 }
  0x8f   :  { %488 = vsyncadd [#allocation4 + $0x8], 16  ;;  %s3078_s10 = sld [smem:[#allocation7 + $0x9]] }
  0x95   :  { %p490_p0 = scmp.gt.s32.totalorder %s3078_s10, 0  ;;  %p3079_p1 = scmp.lt.s32.totalorder %s3078_s10, 6037 }
  0x97   :  { %s3775_s10 = smov (!%p490_p0, %s3078_s10), 0 }
  0x98   :  { %s3777_s10 = smov (!%p3079_p1, %s3775_s10), 6037 }
  0x99   :  { %s494_s13 = scalar_lea.vmem %s3733_s2, %s3777_s10 }
  0x9a   :  { %v514_v9 = vld [vmem:[%s494_s13] sm:$0x1] }
  0x9b   :  { %515 = vst [vmem:[#allocation2 + $0x9] sm:$0x1] %v514_v9 }
  0x9c   :  { %540 = vsyncadd [#allocation4 + $0x9], 16  ;;  %s3084_s14 = sld [smem:[#allocation7 + $0xa]] }
  0xa2   :  { %p542_p2 = scmp.gt.s32.totalorder %s3084_s14, 0  ;;  %p3085_p3 = scmp.lt.s32.totalorder %s3084_s14, 6037 }
  0xa4   :  { %s3779_s14 = smov (!%p542_p2, %s3084_s14), 0 }
  0xa5   :  { %s3781_s14 = smov (!%p3085_p3, %s3779_s14), 6037 }
  0xa6   :  { %s546_s17 = scalar_lea.vmem %s3733_s2, %s3781_s14 }
  0xa7   :  { %v566_v10 = vld [vmem:[%s546_s17] sm:$0x1] }
  0xa8   :  { %567 = vst [vmem:[#allocation2 + $0xa] sm:$0x1] %v566_v10 }
  0xa9   :  { %592 = vsyncadd [#allocation4 + $0xa], 16  ;;  %s3090_s18 = sld [smem:[#allocation7 + $0xb]] }
  0xaf   :  { %p594_p4 = scmp.gt.s32.totalorder %s3090_s18, 0  ;;  %p3091_p5 = scmp.lt.s32.totalorder %s3090_s18, 6037 }
  0xb1   :  { %s3783_s18 = smov (!%p594_p4, %s3090_s18), 0 }
  0xb2   :  { %s3785_s18 = smov (!%p3091_p5, %s3783_s18), 6037 }
  0xb3   :  { %s598_s21 = scalar_lea.vmem %s3733_s2, %s3785_s18 }
  0xb4   :  { %v618_v11 = vld [vmem:[%s598_s21] sm:$0x1] }
  0xb5   :  { %619 = vst [vmem:[#allocation2 + $0xb] sm:$0x1] %v618_v11 }
  0xb6   :  { %644 = vsyncadd [#allocation4 + $0xb], 16  ;;  %s3096_s22 = sld [smem:[#allocation7 + $0xc]] }
  0xbc   :  { %p646_p6 = scmp.gt.s32.totalorder %s3096_s22, 0  ;;  %p3097_p7 = scmp.lt.s32.totalorder %s3096_s22, 6037 }
  0xbe   :  { %s3787_s22 = smov (!%p646_p6, %s3096_s22), 0 }
  0xbf   :  { %s3789_s22 = smov (!%p3097_p7, %s3787_s22), 6037 }
  0xc0   :  { %s650_s25 = scalar_lea.vmem %s3733_s2, %s3789_s22 }
  0xc1   :  { %v670_v12 = vld [vmem:[%s650_s25] sm:$0x1] }
  0xc2   :  { %671 = vst [vmem:[#allocation2 + $0xc] sm:$0x1] %v670_v12 }
  0xc3   :  { %696 = vsyncadd [#allocation4 + $0xc], 16  ;;  %s3102_s26 = sld [smem:[#allocation7 + $0xd]] }
  0xc9   :  { %p698_p8 = scmp.gt.s32.totalorder %s3102_s26, 0  ;;  %p3103_p9 = scmp.lt.s32.totalorder %s3102_s26, 6037 }
  0xcb   :  { %s3791_s26 = smov (!%p698_p8, %s3102_s26), 0 }
  0xcc   :  { %s3793_s26 = smov (!%p3103_p9, %s3791_s26), 6037 }
  0xcd   :  { %s702_s27 = scalar_lea.vmem %s3733_s2, %s3793_s26 }
  0xce   :  { %v722_v13 = vld [vmem:[%s702_s27] sm:$0x1] }
  0xcf   :  { %723 = vst [vmem:[#allocation2 + $0xd] sm:$0x1] %v722_v13 }
  0xd0   :  { %748 = vsyncadd [#allocation4 + $0xd], 16  ;;  %s3108_s28 = sld [smem:[#allocation7 + $0xe]] }
  0xd6   :  { %p750_p10 = scmp.gt.s32.totalorder %s3108_s28, 0  ;;  %p3109_p11 = scmp.lt.s32.totalorder %s3108_s28, 6037 }
  0xd8   :  { %s3795_s28 = smov (!%p750_p10, %s3108_s28), 0 }
  0xd9   :  { %s3797_s28 = smov (!%p3109_p11, %s3795_s28), 6037 }
  0xda   :  { %s754_s6 = scalar_lea.vmem %s3733_s2, %s3797_s28 }
  0xdb   :  { %v774_v14 = vld [vmem:[%s754_s6] sm:$0x1] }
  0xdc   :  { %775 = vst [vmem:[#allocation2 + $0xe] sm:$0x1] %v774_v14 }
  0xdd   :  { %800 = vsyncadd [#allocation4 + $0xe], 16  ;;  %s3114_s7 = sld [smem:[#allocation7 + $0xf]] }
  0xe3   :  { %p802_p12 = scmp.gt.s32.totalorder %s3114_s7, 0  ;;  %p3115_p13 = scmp.lt.s32.totalorder %s3114_s7, 6037 }
  0xe5   :  { %s3799_s7 = smov (!%p802_p12, %s3114_s7), 0 }
  0xe6   :  { %s3801_s7 = smov (!%p3115_p13, %s3799_s7), 6037 }
  0xe7   :  { %s806_s10 = scalar_lea.vmem %s3733_s2, %s3801_s7 }
  0xe8   :  { %v826_v15 = vld [vmem:[%s806_s10] sm:$0x1] }
  0xe9   :  { %827 = vst [vmem:[#allocation2 + $0xf] sm:$0x1] %v826_v15 }
  0xea   :  { %852 = vsyncadd [#allocation4 + $0xf], 16  ;;  %s853_s11 = sld [smem:[#allocation8]] }
  0xf0   :  { %p854_p0 = scmp.gt.s32.totalorder %s853_s11, 0  ;;  %p3120_p1 = scmp.lt.s32.totalorder %s853_s11, 3513 }
  0xf2   :  { %s3803_s11 = smov (!%p854_p0, %s853_s11), 0 }
  0xf3   :  { %s3805_s11 = smov (!%p3120_p1, %s3803_s11), 3513 }
  0xf4   :  { %s858_s14 = scalar_lea.vmem %s3734_s3, %s3805_s11 }
  0xf5   :  { %v876_v16 = vld [vmem:[%s858_s14] sm:$0x1] }
  0xf6   :  { %877 = vst [vmem:[#allocation3] sm:$0x1] %v876_v16 }
  0xf7   :  { %902 = vsyncadd [#allocation5], 16  ;;  %s3125_s15 = sld [smem:[#allocation8 + $0x1]] }
  0xfd   :  { %p904_p2 = scmp.gt.s32.totalorder %s3125_s15, 0  ;;  %p3126_p3 = scmp.lt.s32.totalorder %s3125_s15, 3513 }
  0xff   :  { %s3807_s15 = smov (!%p904_p2, %s3125_s15), 0 }
 0x100   :  { %s3809_s15 = smov (!%p3126_p3, %s3807_s15), 3513 }
 0x101   :  { %s908_s17 = scalar_lea.vmem %s3734_s3, %s3809_s15 }
 0x102   :  { %v928_v17 = vld [vmem:[%s908_s17] sm:$0x1] }
 0x103   :  { %929 = vst [vmem:[#allocation3 + $0x1] sm:$0x1] %v928_v17 }
 0x104   :  { %954 = vsyncadd [#allocation5 + $0x1], 16  ;;  %s3131_s18 = sld [smem:[#allocation8 + $0x2]] }
 0x10a   :  { %p956_p4 = scmp.gt.s32.totalorder %s3131_s18, 0  ;;  %p3132_p5 = scmp.lt.s32.totalorder %s3131_s18, 3513 }
 0x10c   :  { %s3811_s18 = smov (!%p956_p4, %s3131_s18), 0 }
 0x10d   :  { %s3813_s18 = smov (!%p3132_p5, %s3811_s18), 3513 }
 0x10e   :  { %s960_s21 = scalar_lea.vmem %s3734_s3, %s3813_s18 }
 0x10f   :  { %v980_v18 = vld [vmem:[%s960_s21] sm:$0x1] }
 0x110   :  { %981 = vst [vmem:[#allocation3 + $0x2] sm:$0x1] %v980_v18 }
 0x111   :  { %1006 = vsyncadd [#allocation5 + $0x2], 16  ;;  %s3137_s22 = sld [smem:[#allocation8 + $0x3]] }
 0x117   :  { %p1008_p6 = scmp.gt.s32.totalorder %s3137_s22, 0  ;;  %p3138_p7 = scmp.lt.s32.totalorder %s3137_s22, 3513 }
 0x119   :  { %s3815_s22 = smov (!%p1008_p6, %s3137_s22), 0 }
 0x11a   :  { %s3817_s22 = smov (!%p3138_p7, %s3815_s22), 3513 }
 0x11b   :  { %s1012_s25 = scalar_lea.vmem %s3734_s3, %s3817_s22 }
 0x11c   :  { %v1032_v19 = vld [vmem:[%s1012_s25] sm:$0x1] }
 0x11d   :  { %1033 = vst [vmem:[#allocation3 + $0x3] sm:$0x1] %v1032_v19 }
 0x11e   :  { %1058 = vsyncadd [#allocation5 + $0x3], 16  ;;  %s3143_s26 = sld [smem:[#allocation8 + $0x4]] }
 0x124   :  { %p1060_p8 = scmp.gt.s32.totalorder %s3143_s26, 0  ;;  %p3144_p9 = scmp.lt.s32.totalorder %s3143_s26, 3513 }
 0x126   :  { %s3819_s26 = smov (!%p1060_p8, %s3143_s26), 0 }
 0x127   :  { %s3821_s26 = smov (!%p3144_p9, %s3819_s26), 3513 }
 0x128   :  { %s1064_s27 = scalar_lea.vmem %s3734_s3, %s3821_s26 }
 0x129   :  { %v1084_v20 = vld [vmem:[%s1064_s27] sm:$0x1] }
 0x12a   :  { %1085 = vst [vmem:[#allocation3 + $0x4] sm:$0x1] %v1084_v20 }
 0x12b   :  { %1110 = vsyncadd [#allocation5 + $0x4], 16  ;;  %s3149_s28 = sld [smem:[#allocation8 + $0x5]] }
 0x131   :  { %p1112_p10 = scmp.gt.s32.totalorder %s3149_s28, 0  ;;  %p3150_p11 = scmp.lt.s32.totalorder %s3149_s28, 3513 }
 0x133   :  { %s3823_s28 = smov (!%p1112_p10, %s3149_s28), 0 }
 0x134   :  { %s3825_s28 = smov (!%p3150_p11, %s3823_s28), 3513 }
 0x135   :  { %s1116_s6 = scalar_lea.vmem %s3734_s3, %s3825_s28 }
 0x136   :  { %v1136_v21 = vld [vmem:[%s1116_s6] sm:$0x1] }
 0x137   :  { %1137 = vst [vmem:[#allocation3 + $0x5] sm:$0x1] %v1136_v21 }
 0x138   :  { %1162 = vsyncadd [#allocation5 + $0x5], 16  ;;  %s3155_s7 = sld [smem:[#allocation8 + $0x6]] }
 0x13e   :  { %p1164_p12 = scmp.gt.s32.totalorder %s3155_s7, 0  ;;  %p3156_p13 = scmp.lt.s32.totalorder %s3155_s7, 3513 }
 0x140   :  { %s3827_s7 = smov (!%p1164_p12, %s3155_s7), 0 }
 0x141   :  { %s3829_s7 = smov (!%p3156_p13, %s3827_s7), 3513 }
 0x142   :  { %s1168_s10 = scalar_lea.vmem %s3734_s3, %s3829_s7 }
 0x143   :  { %v1188_v22 = vld [vmem:[%s1168_s10] sm:$0x1] }
 0x144   :  { %1189 = vst [vmem:[#allocation3 + $0x6] sm:$0x1] %v1188_v22 }
 0x145   :  { %1214 = vsyncadd [#allocation5 + $0x6], 16  ;;  %s3161_s11 = sld [smem:[#allocation8 + $0x7]] }
 0x14b   :  { %p1216_p0 = scmp.gt.s32.totalorder %s3161_s11, 0  ;;  %p3162_p1 = scmp.lt.s32.totalorder %s3161_s11, 3513 }
 0x14d   :  { %s3831_s11 = smov (!%p1216_p0, %s3161_s11), 0 }
 0x14e   :  { %s3833_s11 = smov (!%p3162_p1, %s3831_s11), 3513 }
 0x14f   :  { %s1220_s14 = scalar_lea.vmem %s3734_s3, %s3833_s11 }
 0x150   :  { %v1240_v23 = vld [vmem:[%s1220_s14] sm:$0x1] }
 0x151   :  { %1241 = vst [vmem:[#allocation3 + $0x7] sm:$0x1] %v1240_v23 }
 0x152   :  { %1266 = vsyncadd [#allocation5 + $0x7], 16  ;;  %s3167_s15 = sld [smem:[#allocation8 + $0x8]] }
 0x158   :  { %p1268_p2 = scmp.gt.s32.totalorder %s3167_s15, 0  ;;  %p3168_p3 = scmp.lt.s32.totalorder %s3167_s15, 3513 }
 0x15a   :  { %s3835_s15 = smov (!%p1268_p2, %s3167_s15), 0 }
 0x15b   :  { %s3837_s15 = smov (!%p3168_p3, %s3835_s15), 3513 }
 0x15c   :  { %s1272_s17 = scalar_lea.vmem %s3734_s3, %s3837_s15 }
 0x15d   :  { %v1292_v24 = vld [vmem:[%s1272_s17] sm:$0x1] }
 0x15e   :  { %1293 = vst [vmem:[#allocation3 + $0x8] sm:$0x1] %v1292_v24 }
 0x15f   :  { %1318 = vsyncadd [#allocation5 + $0x8], 16  ;;  %s3173_s18 = sld [smem:[#allocation8 + $0x9]] }
 0x165   :  { %p1320_p4 = scmp.gt.s32.totalorder %s3173_s18, 0  ;;  %p3174_p5 = scmp.lt.s32.totalorder %s3173_s18, 3513 }
 0x167   :  { %s3839_s18 = smov (!%p1320_p4, %s3173_s18), 0 }
 0x168   :  { %s3841_s18 = smov (!%p3174_p5, %s3839_s18), 3513 }
 0x169   :  { %s1324_s21 = scalar_lea.vmem %s3734_s3, %s3841_s18 }
 0x16a   :  { %v1344_v25 = vld [vmem:[%s1324_s21] sm:$0x1] }
 0x16b   :  { %1345 = vst [vmem:[#allocation3 + $0x9] sm:$0x1] %v1344_v25 }
 0x16c   :  { %1370 = vsyncadd [#allocation5 + $0x9], 16  ;;  %s3179_s22 = sld [smem:[#allocation8 + $0xa]] }
 0x172   :  { %p1372_p6 = scmp.gt.s32.totalorder %s3179_s22, 0  ;;  %p3180_p7 = scmp.lt.s32.totalorder %s3179_s22, 3513 }
 0x174   :  { %s3843_s22 = smov (!%p1372_p6, %s3179_s22), 0 }
 0x175   :  { %s3845_s22 = smov (!%p3180_p7, %s3843_s22), 3513 }
 0x176   :  { %s1376_s25 = scalar_lea.vmem %s3734_s3, %s3845_s22 }
 0x177   :  { %v1396_v26 = vld [vmem:[%s1376_s25] sm:$0x1] }
 0x178   :  { %1397 = vst [vmem:[#allocation3 + $0xa] sm:$0x1] %v1396_v26 }
 0x179   :  { %1422 = vsyncadd [#allocation5 + $0xa], 16  ;;  %s3185_s26 = sld [smem:[#allocation8 + $0xb]] }
 0x17f   :  { %p1424_p8 = scmp.gt.s32.totalorder %s3185_s26, 0  ;;  %p3186_p9 = scmp.lt.s32.totalorder %s3185_s26, 3513 }
 0x181   :  { %s3847_s26 = smov (!%p1424_p8, %s3185_s26), 0 }
 0x182   :  { %s3849_s26 = smov (!%p3186_p9, %s3847_s26), 3513 }
 0x183   :  { %s1428_s27 = scalar_lea.vmem %s3734_s3, %s3849_s26 }
 0x184   :  { %v1448_v27 = vld [vmem:[%s1428_s27] sm:$0x1] }
 0x185   :  { %1449 = vst [vmem:[#allocation3 + $0xb] sm:$0x1] %v1448_v27 }
 0x186   :  { %1474 = vsyncadd [#allocation5 + $0xb], 16  ;;  %s3191_s28 = sld [smem:[#allocation8 + $0xc]] }
 0x18c   :  { %p1476_p10 = scmp.gt.s32.totalorder %s3191_s28, 0  ;;  %p3192_p11 = scmp.lt.s32.totalorder %s3191_s28, 3513 }
 0x18e   :  { %s3851_s28 = smov (!%p1476_p10, %s3191_s28), 0 }
 0x18f   :  { %s3853_s28 = smov (!%p3192_p11, %s3851_s28), 3513 }
 0x190   :  { %s1480_s6 = scalar_lea.vmem %s3734_s3, %s3853_s28 }
 0x191   :  { %v1500_v28 = vld [vmem:[%s1480_s6] sm:$0x1] }
 0x192   :  { %1501 = vst [vmem:[#allocation3 + $0xc] sm:$0x1] %v1500_v28 }
 0x193   :  { %1526 = vsyncadd [#allocation5 + $0xc], 16  ;;  %s3197_s7 = sld [smem:[#allocation8 + $0xd]] }
 0x199   :  { %p1528_p12 = scmp.gt.s32.totalorder %s3197_s7, 0  ;;  %p3198_p13 = scmp.lt.s32.totalorder %s3197_s7, 3513 }
 0x19b   :  { %s3855_s7 = smov (!%p1528_p12, %s3197_s7), 0 }
 0x19c   :  { %s3857_s7 = smov (!%p3198_p13, %s3855_s7), 3513 }
 0x19d   :  { %s1532_s10 = scalar_lea.vmem %s3734_s3, %s3857_s7 }
 0x19e   :  { %v1552_v29 = vld [vmem:[%s1532_s10] sm:$0x1] }
 0x19f   :  { %1553 = vst [vmem:[#allocation3 + $0xd] sm:$0x1] %v1552_v29 }
 0x1a0   :  { %1578 = vsyncadd [#allocation5 + $0xd], 16  ;;  %s3203_s11 = sld [smem:[#allocation8 + $0xe]] }
 0x1a6   :  { %p1580_p0 = scmp.gt.s32.totalorder %s3203_s11, 0  ;;  %p3204_p1 = scmp.lt.s32.totalorder %s3203_s11, 3513 }
 0x1a8   :  { %s3859_s11 = smov (!%p1580_p0, %s3203_s11), 0 }
 0x1a9   :  { %s3861_s11 = smov (!%p3204_p1, %s3859_s11), 3513 }
 0x1aa   :  { %s1584_s14 = scalar_lea.vmem %s3734_s3, %s3861_s11 }
 0x1ab   :  { %v1604_v30 = vld [vmem:[%s1584_s14] sm:$0x1] }
 0x1ac   :  { %1605 = vst [vmem:[#allocation3 + $0xe] sm:$0x1] %v1604_v30 }
 0x1ad   :  { %1630 = vsyncadd [#allocation5 + $0xe], 16  ;;  %s3209_s15 = sld [smem:[#allocation8 + $0xf]] }
 0x1b3   :  { %p1632_p2 = scmp.gt.s32.totalorder %s3209_s15, 0  ;;  %p3210_p3 = scmp.lt.s32.totalorder %s3209_s15, 3513 }
 0x1b5   :  { %s3863_s15 = smov (!%p1632_p2, %s3209_s15), 0 }
 0x1b6   :  { %s3865_s15 = smov (!%p3210_p3, %s3863_s15), 3513 }
 0x1b7   :  { %s1636_s17 = scalar_lea.vmem %s3734_s3, %s3865_s15 }
 0x1b8   :  { %v1656_v31 = vld [vmem:[%s1636_s17] sm:$0x1] }
 0x1b9   :  { %1657 = vst [vmem:[#allocation3 + $0xf] sm:$0x1] %v1656_v31 }
 0x1ba   :  { %1682 = vsyncadd [#allocation5 + $0xf], 16  ;;  %s3215_s18 = sld [smem:[#allocation8 + $0x10]] }
 0x1c0   :  { %p1684_p4 = scmp.gt.s32.totalorder %s3215_s18, 0  ;;  %p3216_p5 = scmp.lt.s32.totalorder %s3215_s18, 3513 }
 0x1c2   :  { %s3867_s18 = smov (!%p1684_p4, %s3215_s18), 0 }
 0x1c3   :  { %s3869_s18 = smov (!%p3216_p5, %s3867_s18), 3513 }
 0x1c4   :  { %s1688_s21 = scalar_lea.vmem %s3734_s3, %s3869_s18 }
 0x1c5   :  { %v1708_v32 = vld [vmem:[%s1688_s21] sm:$0x1] }
 0x1c6   :  { %1709 = vst [vmem:[#allocation3 + $0x10] sm:$0x1] %v1708_v32 }
 0x1c7   :  { %1734 = vsyncadd [#allocation5 + $0x10], 16  ;;  %s3221_s22 = sld [smem:[#allocation8 + $0x11]] }
 0x1cd   :  { %p1736_p6 = scmp.gt.s32.totalorder %s3221_s22, 0  ;;  %p3222_p7 = scmp.lt.s32.totalorder %s3221_s22, 3513 }
 0x1cf   :  { %s3871_s22 = smov (!%p1736_p6, %s3221_s22), 0 }
 0x1d0   :  { %s3873_s22 = smov (!%p3222_p7, %s3871_s22), 3513 }
 0x1d1   :  { %s1740_s25 = scalar_lea.vmem %s3734_s3, %s3873_s22 }
 0x1d2   :  { %v1760_v33 = vld [vmem:[%s1740_s25] sm:$0x1] }
 0x1d3   :  { %1761 = vst [vmem:[#allocation3 + $0x11] sm:$0x1] %v1760_v33 }
 0x1d4   :  { %1786 = vsyncadd [#allocation5 + $0x11], 16  ;;  %s3227_s26 = sld [smem:[#allocation8 + $0x12]] }
 0x1da   :  { %p1788_p8 = scmp.gt.s32.totalorder %s3227_s26, 0  ;;  %p3228_p9 = scmp.lt.s32.totalorder %s3227_s26, 3513 }
 0x1dc   :  { %s3875_s26 = smov (!%p1788_p8, %s3227_s26), 0 }
 0x1dd   :  { %s3877_s26 = smov (!%p3228_p9, %s3875_s26), 3513 }
 0x1de   :  { %s1792_s27 = scalar_lea.vmem %s3734_s3, %s3877_s26 }
 0x1df   :  { %v1812_v34 = vld [vmem:[%s1792_s27] sm:$0x1] }
 0x1e0   :  { %1813 = vst [vmem:[#allocation3 + $0x12] sm:$0x1] %v1812_v34 }
 0x1e1   :  { %1838 = vsyncadd [#allocation5 + $0x12], 16  ;;  %s3233_s28 = sld [smem:[#allocation8 + $0x13]] }
 0x1e7   :  { %p1840_p10 = scmp.gt.s32.totalorder %s3233_s28, 0  ;;  %p3234_p11 = scmp.lt.s32.totalorder %s3233_s28, 3513 }
 0x1e9   :  { %s3879_s28 = smov (!%p1840_p10, %s3233_s28), 0 }
 0x1ea   :  { %s3881_s28 = smov (!%p3234_p11, %s3879_s28), 3513 }
 0x1eb   :  { %s1844_s6 = scalar_lea.vmem %s3734_s3, %s3881_s28 }
 0x1ec   :  { %v1864_v35 = vld [vmem:[%s1844_s6] sm:$0x1] }
 0x1ed   :  { %1865 = vst [vmem:[#allocation3 + $0x13] sm:$0x1] %v1864_v35 }
 0x1ee   :  { %1890 = vsyncadd [#allocation5 + $0x13], 16  ;;  %s3239_s7 = sld [smem:[#allocation8 + $0x14]] }
 0x1f4   :  { %p1892_p12 = scmp.gt.s32.totalorder %s3239_s7, 0  ;;  %p3240_p13 = scmp.lt.s32.totalorder %s3239_s7, 3513 }
 0x1f6   :  { %s3883_s7 = smov (!%p1892_p12, %s3239_s7), 0 }
 0x1f7   :  { %s3885_s7 = smov (!%p3240_p13, %s3883_s7), 3513 }
 0x1f8   :  { %s1896_s10 = scalar_lea.vmem %s3734_s3, %s3885_s7 }
 0x1f9   :  { %v1916_v36 = vld [vmem:[%s1896_s10] sm:$0x1] }
 0x1fa   :  { %1917 = vst [vmem:[#allocation3 + $0x14] sm:$0x1] %v1916_v36 }
 0x1fb   :  { %1942 = vsyncadd [#allocation5 + $0x14], 16  ;;  %s3245_s11 = sld [smem:[#allocation8 + $0x15]] }
 0x201   :  { %p1944_p0 = scmp.gt.s32.totalorder %s3245_s11, 0  ;;  %p3246_p1 = scmp.lt.s32.totalorder %s3245_s11, 3513 }
 0x203   :  { %s3887_s11 = smov (!%p1944_p0, %s3245_s11), 0 }
 0x204   :  { %s3889_s11 = smov (!%p3246_p1, %s3887_s11), 3513 }
 0x205   :  { %s1948_s14 = scalar_lea.vmem %s3734_s3, %s3889_s11 }
 0x206   :  { %v1968_v37 = vld [vmem:[%s1948_s14] sm:$0x1] }
 0x207   :  { %1969 = vst [vmem:[#allocation3 + $0x15] sm:$0x1] %v1968_v37 }
 0x208   :  { %1994 = vsyncadd [#allocation5 + $0x15], 16  ;;  %s3251_s15 = sld [smem:[#allocation8 + $0x16]] }
 0x20e   :  { %p1996_p2 = scmp.gt.s32.totalorder %s3251_s15, 0  ;;  %p3252_p3 = scmp.lt.s32.totalorder %s3251_s15, 3513 }
 0x210   :  { %s3891_s15 = smov (!%p1996_p2, %s3251_s15), 0 }
 0x211   :  { %s3893_s15 = smov (!%p3252_p3, %s3891_s15), 3513 }
 0x212   :  { %s2000_s17 = scalar_lea.vmem %s3734_s3, %s3893_s15 }
 0x213   :  { %v2020_v38 = vld [vmem:[%s2000_s17] sm:$0x1] }
 0x214   :  { %2021 = vst [vmem:[#allocation3 + $0x16] sm:$0x1] %v2020_v38 }
 0x215   :  { %2046 = vsyncadd [#allocation5 + $0x16], 16  ;;  %s3257_s18 = sld [smem:[#allocation8 + $0x17]] }
 0x21b   :  { %p2048_p4 = scmp.gt.s32.totalorder %s3257_s18, 0  ;;  %p3258_p5 = scmp.lt.s32.totalorder %s3257_s18, 3513 }
 0x21d   :  { %s3895_s18 = smov (!%p2048_p4, %s3257_s18), 0 }
 0x21e   :  { %s3897_s18 = smov (!%p3258_p5, %s3895_s18), 3513 }
 0x21f   :  { %s2052_s21 = scalar_lea.vmem %s3734_s3, %s3897_s18 }
 0x220   :  { %v2072_v39 = vld [vmem:[%s2052_s21] sm:$0x1] }
 0x221   :  { %2073 = vst [vmem:[#allocation3 + $0x17] sm:$0x1] %v2072_v39 }
 0x222   :  { %2098 = vsyncadd [#allocation5 + $0x17], 16 }
 0x223   :  { %3457 = dma.done.wait [#allocation4], 16 }
 0x224   :  { %3458 = vsyncadd [#allocation4], 4294967280 }
 0x225   :  { %3459 = dma.done.wait [#allocation4 + $0x1], 16 }
 0x226   :  { %3460 = vsyncadd [#allocation4 + $0x1], 4294967280 }
 0x227   :  { %3461 = dma.done.wait [#allocation4 + $0x2], 16 }
 0x228   :  { %3462 = vsyncadd [#allocation4 + $0x2], 4294967280 }
 0x229   :  { %3463 = dma.done.wait [#allocation4 + $0x3], 16 }
 0x22a   :  { %3464 = vsyncadd [#allocation4 + $0x3], 4294967280 }
 0x22b   :  { %3465 = dma.done.wait [#allocation4 + $0x4], 16 }
 0x22c   :  { %3466 = vsyncadd [#allocation4 + $0x4], 4294967280 }
 0x22d   :  { %3467 = dma.done.wait [#allocation4 + $0x5], 16 }
 0x22e   :  { %3468 = vsyncadd [#allocation4 + $0x5], 4294967280 }
 0x22f   :  { %3469 = dma.done.wait [#allocation4 + $0x6], 16 }
 0x230   :  { %3470 = vsyncadd [#allocation4 + $0x6], 4294967280 }
 0x231   :  { %3471 = dma.done.wait [#allocation4 + $0x7], 16 }
 0x232   :  { %3472 = vsyncadd [#allocation4 + $0x7], 4294967280 }
 0x233   :  { %3473 = dma.done.wait [#allocation4 + $0x8], 16 }
 0x234   :  { %3474 = vsyncadd [#allocation4 + $0x8], 4294967280 }
 0x235   :  { %3475 = dma.done.wait [#allocation4 + $0x9], 16 }
 0x236   :  { %3476 = vsyncadd [#allocation4 + $0x9], 4294967280 }
 0x237   :  { %3477 = dma.done.wait [#allocation4 + $0xa], 16 }
 0x238   :  { %3478 = vsyncadd [#allocation4 + $0xa], 4294967280 }
 0x239   :  { %3479 = dma.done.wait [#allocation4 + $0xb], 16 }
 0x23a   :  { %3480 = vsyncadd [#allocation4 + $0xb], 4294967280 }
 0x23b   :  { %3481 = dma.done.wait [#allocation4 + $0xc], 16 }
 0x23c   :  { %3482 = vsyncadd [#allocation4 + $0xc], 4294967280 }
 0x23d   :  { %3483 = dma.done.wait [#allocation4 + $0xd], 16 }
 0x23e   :  { %3484 = vsyncadd [#allocation4 + $0xd], 4294967280 }
 0x23f   :  { %3485 = dma.done.wait [#allocation4 + $0xe], 16 }
 0x240   :  { %3486 = vsyncadd [#allocation4 + $0xe], 4294967280 }
 0x241   :  { %3487 = dma.done.wait [#allocation4 + $0xf], 16 }
 0x242   :  { %3488 = vsyncadd [#allocation4 + $0xf], 4294967280 }
 0x243   :  { %3489 = dma.done.wait [#allocation5], 16 }
 0x244   :  { %3490 = vsyncadd [#allocation5], 4294967280 }
 0x245   :  { %3491 = dma.done.wait [#allocation5 + $0x1], 16 }
 0x246   :  { %3492 = vsyncadd [#allocation5 + $0x1], 4294967280 }
 0x247   :  { %3493 = dma.done.wait [#allocation5 + $0x2], 16 }
 0x248   :  { %3494 = vsyncadd [#allocation5 + $0x2], 4294967280 }
 0x249   :  { %3495 = dma.done.wait [#allocation5 + $0x3], 16 }
 0x24a   :  { %3496 = vsyncadd [#allocation5 + $0x3], 4294967280 }
 0x24b   :  { %3497 = dma.done.wait [#allocation5 + $0x4], 16 }
 0x24c   :  { %3498 = vsyncadd [#allocation5 + $0x4], 4294967280 }
 0x24d   :  { %3499 = dma.done.wait [#allocation5 + $0x5], 16 }
 0x24e   :  { %3500 = vsyncadd [#allocation5 + $0x5], 4294967280 }
 0x24f   :  { %3501 = dma.done.wait [#allocation5 + $0x6], 16 }
 0x250   :  { %3502 = vsyncadd [#allocation5 + $0x6], 4294967280 }
 0x251   :  { %3503 = dma.done.wait [#allocation5 + $0x7], 16 }
 0x252   :  { %3504 = vsyncadd [#allocation5 + $0x7], 4294967280 }
 0x253   :  { %3505 = dma.done.wait [#allocation5 + $0x8], 16 }
 0x254   :  { %3506 = vsyncadd [#allocation5 + $0x8], 4294967280 }
 0x255   :  { %3507 = dma.done.wait [#allocation5 + $0x9], 16 }
 0x256   :  { %3508 = vsyncadd [#allocation5 + $0x9], 4294967280 }
 0x257   :  { %3509 = dma.done.wait [#allocation5 + $0xa], 16 }
 0x258   :  { %3510 = vsyncadd [#allocation5 + $0xa], 4294967280 }
 0x259   :  { %3511 = dma.done.wait [#allocation5 + $0xb], 16 }
 0x25a   :  { %3512 = vsyncadd [#allocation5 + $0xb], 4294967280 }
 0x25b   :  { %3513 = dma.done.wait [#allocation5 + $0xc], 16 }
 0x25c   :  { %3514 = vsyncadd [#allocation5 + $0xc], 4294967280 }
 0x25d   :  { %3515 = dma.done.wait [#allocation5 + $0xd], 16 }
 0x25e   :  { %3516 = vsyncadd [#allocation5 + $0xd], 4294967280 }
 0x25f   :  { %3517 = dma.done.wait [#allocation5 + $0xe], 16 }
 0x260   :  { %3518 = vsyncadd [#allocation5 + $0xe], 4294967280 }
 0x261   :  { %3519 = dma.done.wait [#allocation5 + $0xf], 16 }
 0x262   :  { %3520 = vsyncadd [#allocation5 + $0xf], 4294967280 }
 0x263   :  { %3521 = dma.done.wait [#allocation5 + $0x10], 16 }
 0x264   :  { %3522 = vsyncadd [#allocation5 + $0x10], 4294967280 }
 0x265   :  { %3523 = dma.done.wait [#allocation5 + $0x11], 16 }
 0x266   :  { %3524 = vsyncadd [#allocation5 + $0x11], 4294967280 }
 0x267   :  { %3525 = dma.done.wait [#allocation5 + $0x12], 16 }
 0x268   :  { %3526 = vsyncadd [#allocation5 + $0x12], 4294967280 }
 0x269   :  { %3527 = dma.done.wait [#allocation5 + $0x13], 16 }
 0x26a   :  { %3528 = vsyncadd [#allocation5 + $0x13], 4294967280 }
 0x26b   :  { %3529 = dma.done.wait [#allocation5 + $0x14], 16 }
 0x26c   :  { %3530 = vsyncadd [#allocation5 + $0x14], 4294967280 }
 0x26d   :  { %3531 = dma.done.wait [#allocation5 + $0x15], 16 }
 0x26e   :  { %3532 = vsyncadd [#allocation5 + $0x15], 4294967280 }
 0x26f   :  { %3533 = dma.done.wait [#allocation5 + $0x16], 16 }
 0x270   :  { %3534 = vsyncadd [#allocation5 + $0x16], 4294967280 }
 0x271   :  { %3535 = dma.done.wait [#allocation5 + $0x17], 16 }
 0x272   :  { %3536 = vsyncadd [#allocation5 + $0x17], 4294967280  ;;  %vm2181_vm0 = vcmask 261120   ;;  %vm2202_vm1 = vcmask 259072   ;;  %v2180_v40 = vld [vmem:[#allocation2] sm:$0xff]  ;;  %v2189_v41 = vld [vmem:[#allocation2 + $0x8] sm:$0xff] }
 0x273   :  { %v2201_v42 = vld [vmem:[#allocation3] sm:$0x3f]  ;;  %v2182_v43 = vsel %vm2181_vm0, %v2180_v40, 0.0  ;;  %v2190_v44 = vsel %vm2181_vm0, %v2189_v41, 0.0  ;;  %v2210_v46 = vld [vmem:[#allocation3 + $0x6] sm:$0x3f] }
 0x274   :  { %v2203_v45 = vsel %vm2202_vm1, %v2201_v42, 0.0  ;;  %v2183_v47 = vrot.slane %v2182_v43, 4  ;;  %v2191_v48 = vrot.slane %v2190_v44, 4  ;;  %v2211_v50 = vsel %vm2202_vm1, %v2210_v46, 0.0  ;;  %v2218_v51 = vld [vmem:[#allocation3 + $0xc] sm:$0x3f] }
 0x275   :  { %v2204_v49 = vrot.slane %v2203_v45, 4  ;;  %v2212_v52 = vrot.slane %v2211_v50, 4  ;;  %v2219_v53 = vsel %vm2202_vm1, %v2218_v51, 0.0  ;;  %v2226_v54 = vld [vmem:[#allocation3 + $0x12] sm:$0x3f]  ;;  %s3543_s3 = smov [#allocation9]  }
 0x276   :  { %v2184_v55 = vadd.f32 %v2183_v47, %v2182_v43  ;;  %v2192_v56 = vadd.f32 %v2191_v48, %v2190_v44  ;;  %v2220_v58 = vrot.slane %v2219_v53, 4  ;;  %v2227_v60 = vsel %vm2202_vm1, %v2226_v54, 0.0  ;;  %s2247_s22 = sshll.u32 %s3543_s3, 4  ;;  %s3544_s23 = smov [#allocation11]   ;;  %s2248_s22 = int_to_ptr.vmem [resolvable:$true] %s2247_s22 }
 0x277   :  { %v2205_v57 = vadd.f32 %v2204_v49, %v2203_v45  ;;  %v2213_v59 = vadd.f32 %v2212_v52, %v2211_v50  ;;  %v2228_v2 = vrot.slane %v2227_v60, 4  ;;  %vm2197_vm2 = vcmask 1040384   ;;  %s2257_s24 = sshll.u32 %s3544_s23, 4  ;;  %s3411_s25 = scalar_lea.vmem %s2248_s22, 32  ;;  %s2258_s24 = int_to_ptr.vmem [resolvable:$true] %s2257_s24 }
 0x278   :  { %v2185_v61 = vrot.slane %v2184_v55, 2  ;;  %v2193_v62 = vrot.slane %v2192_v56, 2  ;;  %v2221_v0 = vadd.f32 %v2220_v58, %v2219_v53  ;;  %vm2199_vm3 = vcmask 254976   ;;  %p3412_p6 = scmp.ne.s32.totalorder %s2248_s22, %s3411_s25  ;;  %p3416_p7 = scmp.lt.s32.totalorder %s2248_s22, %s2248_s22 }
 0x279   :  { %v2206_v63 = vrot.slane %v2205_v57, 2  ;;  %v2214_v1 = vrot.slane %v2213_v59, 2  ;;  %v2229_v8 = vadd.f32 %v2228_v2, %v2227_v60  ;;  %vm2235_vm4 = vcmask 1041408   ;;  %p3417_p8 = scmp.lt.s32.totalorder %s3411_s25, %s3411_s25 }
 0x27a   :  { %v2186_v3 = vadd.f32 %v2185_v61, %v2184_v55  ;;  %v2194_v4 = vadd.f32 %v2193_v62, %v2192_v56  ;;  %v2222_v6 = vrot.slane %v2221_v0, 2  ;;  %vm2237_vm5 = vcmask 1042432  }
 0x27b   :  { %v2207_v5 = vadd.f32 %v2206_v63, %v2205_v57  ;;  %v2215_v7 = vadd.f32 %v2214_v1, %v2213_v59  ;;  %v2230_v14 = vrot.slane %v2229_v8, 2  ;;  %p3418_p9 = por %p3417_p8, %p3416_p7 }
 0x27c   :  { %v2187_v9 = vrot.slane %v2186_v3, 1  ;;  %v2195_v10 = vrot.slane %v2194_v4, 1  ;;  %v2223_v12 = vadd.f32 %v2222_v6, %v2221_v0 }
 0x27d   :  { %v2208_v11 = vrot.slane %v2207_v5, 1  ;;  %v2216_v13 = vrot.slane %v2215_v7, 1  ;;  %v2231_v20 = vadd.f32 %v2230_v14, %v2229_v8  ;;  %p3419_p10 = pnand %p3418_p9, %p3412_p6 }
 0x27e   :  { %v2188_v15 = vadd.f32 %v2187_v9, %v2186_v3  ;;  %v2196_v16 = vadd.f32 %v2195_v10, %v2194_v4  ;;  %v2224_v18 = vrot.slane %v2223_v12, 1 }
 0x27f   :  { %v2209_v17 = vadd.f32 %v2208_v11, %v2207_v5  ;;  %v2217_v19 = vadd.f32 %v2216_v13, %v2215_v7  ;;  %v2232_v23 = vrot.slane %v2231_v20, 1 }
 0x280   :  { %v2198_v21 = vsel %vm2197_vm2, %v2188_v15, %v2196_v16  ;;  %v2225_v22 = vadd.f32 %v2224_v18, %v2223_v12 }
 0x281   :  { %2200 = vst.msk [vmem:[#allocation9] sm:$0x3] %vm2199_vm3, %v2198_v21  ;;  %v2234_v24 = vsel %vm2197_vm2, %v2209_v17, %v2217_v19 }
 0x282   :  { %v2236_v25 = vsel %vm2235_vm4, %v2234_v24, %v2225_v22 }
 0x283   :  { %3422 = shalt.err (!%p3419_p10)
}
 0x284   :  { %s3423_s1 = scalar_lea.hbm %s3735_s4, 32 }
 0x285   :  { %p3424_p11 = scmp.ne.s32.totalorder %s3735_s4, %s3423_s1  ;;  %p3427_p12 = scmp.lt.u32.totalorder %s3423_s1, %s3735_s4 }
 0x287   :  { %p3429_p13 = pnand %p3427_p12, %p3424_p11 }
 0x289   :  { %3432 = shalt.err (!%p3429_p13)
}
 0x28a   :  { %2250 = dma.vmem_to_hbm [thread:$0]  %s2248_s22, 32, %s3735_s4, [#allocation10]   ;;  %v2233_v26 = vadd.f32 %v2232_v23, %v2231_v20  ;;  %vm2239_vm6 = vcmask 257024  }
 0x28b   :  { %s3433_s8 = scalar_lea.vmem %s2258_s24, 64  ;;  %p3438_p1 = scmp.lt.s32.totalorder %s2258_s24, %s2258_s24 }
 0x28c   :  { %v2238_v27 = vsel %vm2237_vm5, %v2236_v25, %v2233_v26  ;;  %p3434_p0 = scmp.ne.s32.totalorder %s2258_s24, %s3433_s8  ;;  %p3439_p2 = scmp.lt.s32.totalorder %s3433_s8, %s3433_s8 }
 0x28d   :  { %2240 = vst.msk [vmem:[#allocation11] sm:$0xf] %vm2239_vm6, %v2238_v27 }
 0x28e   :  { %p3440_p3 = por %p3439_p2, %p3438_p1 }
 0x290   :  { %p3441_p4 = pnand %p3440_p3, %p3434_p0 }
 0x292   :  { %3444 = shalt.err (!%p3441_p4)
}
 0x293   :  { %s3445_s11 = scalar_lea.hbm %s3736_s5, 64 }
 0x294   :  { %p3446_p5 = scmp.ne.s32.totalorder %s3736_s5, %s3445_s11  ;;  %p3449_p6 = scmp.lt.u32.totalorder %s3445_s11, %s3736_s5 }
 0x296   :  { %p3451_p7 = pnand %p3449_p6, %p3446_p5 }
 0x298   :  { %3454 = shalt.err (!%p3451_p7)
}
 0x299   :  { %2260 = dma.vmem_to_hbm [thread:$0]  %s2258_s24, 64, %s3736_s5, [#allocation12]  }
 0x29a   :  { %3537 = dma.done.wait [#allocation10], 32  }
 0x29b   :  { %3538 = vsyncadd [#allocation10], 4294967264 }
 0x29c   :  { %3539 = dma.done.wait [#allocation12], 64  }
 0x29d   :  { %3540 = vsyncadd [#allocation12], 4294967232 }
 0x29e   :  { %2267 = vsyncpa [#allocation10], 1 }
 0x29f   :  { %2268 = vsyncpa [#allocation12], 1 }
 0x2a0   :  { %2269 = vsyncmov [#allocation4] }
 0x2a3   :  { %s2270_s16 = vpop.sfrf %2269 }
 0x2a4   :  { %p3263_p8 = scmp.ne.s32.totalorder %s2270_s16, 0 }
 0x2a6   :  { %2274 = shalt.err (%p3263_p8)  }
 0x2a7   :  { %2276 = vsyncmov [#allocation4 + $0x1] }
 0x2aa   :  { %s2277_s17 = vpop.sfrf %2276 }
 0x2ab   :  { %p3264_p9 = scmp.ne.s32.totalorder %s2277_s17, 0 }
 0x2ad   :  { %2281 = shalt.err (%p3264_p9)  }
 0x2ae   :  { %2283 = vsyncmov [#allocation4 + $0x2] }
 0x2b1   :  { %s2284_s18 = vpop.sfrf %2283 }
 0x2b2   :  { %p3265_p10 = scmp.ne.s32.totalorder %s2284_s18, 0 }
 0x2b4   :  { %2288 = shalt.err (%p3265_p10)  }
 0x2b5   :  { %2290 = vsyncmov [#allocation4 + $0x3] }
 0x2b8   :  { %s2291_s5 = vpop.sfrf %2290 }
 0x2b9   :  { %p3266_p11 = scmp.ne.s32.totalorder %s2291_s5, 0 }
 0x2bb   :  { %2295 = shalt.err (%p3266_p11)  }
 0x2bc   :  { %2297 = vsyncmov [#allocation4 + $0x4] }
 0x2bf   :  { %s2298_s19 = vpop.sfrf %2297 }
 0x2c0   :  { %p3267_p12 = scmp.ne.s32.totalorder %s2298_s19, 0 }
 0x2c2   :  { %2302 = shalt.err (%p3267_p12)  }
 0x2c3   :  { %2304 = vsyncmov [#allocation4 + $0x5] }
 0x2c6   :  { %s2305_s20 = vpop.sfrf %2304 }
 0x2c7   :  { %p3268_p13 = scmp.ne.s32.totalorder %s2305_s20, 0 }
 0x2c9   :  { %2309 = shalt.err (%p3268_p13)  }
 0x2ca   :  { %2311 = vsyncmov [#allocation4 + $0x6] }
 0x2cd   :  { %s2312_s21 = vpop.sfrf %2311 }
 0x2ce   :  { %p3269_p0 = scmp.ne.s32.totalorder %s2312_s21, 0 }
 0x2d0   :  { %2316 = shalt.err (%p3269_p0)  }
 0x2d1   :  { %2318 = vsyncmov [#allocation4 + $0x7] }
 0x2d4   :  { %s2319_s3 = vpop.sfrf %2318 }
 0x2d5   :  { %p3270_p1 = scmp.ne.s32.totalorder %s2319_s3, 0 }
 0x2d7   :  { %2323 = shalt.err (%p3270_p1)  }
 0x2d8   :  { %2325 = vsyncmov [#allocation4 + $0x8] }
 0x2db   :  { %s2326_s22 = vpop.sfrf %2325 }
 0x2dc   :  { %p3271_p2 = scmp.ne.s32.totalorder %s2326_s22, 0 }
 0x2de   :  { %2330 = shalt.err (%p3271_p2)  }
 0x2df   :  { %2332 = vsyncmov [#allocation4 + $0x9] }
 0x2e2   :  { %s2333_s23 = vpop.sfrf %2332 }
 0x2e3   :  { %p3272_p3 = scmp.ne.s32.totalorder %s2333_s23, 0 }
 0x2e5   :  { %2337 = shalt.err (%p3272_p3)  }
 0x2e6   :  { %2339 = vsyncmov [#allocation4 + $0xa] }
 0x2e9   :  { %s2340_s24 = vpop.sfrf %2339 }
 0x2ea   :  { %p3273_p4 = scmp.ne.s32.totalorder %s2340_s24, 0 }
 0x2ec   :  { %2344 = shalt.err (%p3273_p4)  }
 0x2ed   :  { %2346 = vsyncmov [#allocation4 + $0xb] }
 0x2f0   :  { %s2347_s25 = vpop.sfrf %2346 }
 0x2f1   :  { %p3274_p5 = scmp.ne.s32.totalorder %s2347_s25, 0 }
 0x2f3   :  { %2351 = shalt.err (%p3274_p5)  }
 0x2f4   :  { %2353 = vsyncmov [#allocation4 + $0xc] }
 0x2f7   :  { %s2354_s26 = vpop.sfrf %2353 }
 0x2f8   :  { %p3275_p6 = scmp.ne.s32.totalorder %s2354_s26, 0 }
 0x2fa   :  { %2358 = shalt.err (%p3275_p6)  }
 0x2fb   :  { %2360 = vsyncmov [#allocation4 + $0xd] }
 0x2fe   :  { %s2361_s0 = vpop.sfrf %2360 }
 0x2ff   :  { %p3276_p7 = scmp.ne.s32.totalorder %s2361_s0, 0 }
 0x301   :  { %2365 = shalt.err (%p3276_p7)  }
 0x302   :  { %2367 = vsyncmov [#allocation4 + $0xe] }
 0x305   :  { %s2368_s1 = vpop.sfrf %2367 }
 0x306   :  { %p3277_p8 = scmp.ne.s32.totalorder %s2368_s1, 0 }
 0x308   :  { %2372 = shalt.err (%p3277_p8)  }
 0x309   :  { %2374 = vsyncmov [#allocation4 + $0xf] }
 0x30c   :  { %s2375_s27 = vpop.sfrf %2374 }
 0x30d   :  { %p3278_p9 = scmp.ne.s32.totalorder %s2375_s27, 0 }
 0x30f   :  { %2379 = shalt.err (%p3278_p9)  }
 0x310   :  { %2380 = vsyncmov [#allocation5] }
 0x313   :  { %s2381_s28 = vpop.sfrf %2380 }
 0x314   :  { %p3279_p10 = scmp.ne.s32.totalorder %s2381_s28, 0 }
 0x316   :  { %2385 = shalt.err (%p3279_p10)  }
 0x317   :  { %2387 = vsyncmov [#allocation5 + $0x1] }
 0x31a   :  { %s2388_s29 = vpop.sfrf %2387 }
 0x31b   :  { %p3280_p11 = scmp.ne.s32.totalorder %s2388_s29, 0 }
 0x31d   :  { %2392 = shalt.err (%p3280_p11)  }
 0x31e   :  { %2394 = vsyncmov [#allocation5 + $0x2] }
 0x321   :  { %s2395_s30 = vpop.sfrf %2394 }
 0x322   :  { %p3281_p12 = scmp.ne.s32.totalorder %s2395_s30, 0 }
 0x324   :  { %2399 = shalt.err (%p3281_p12)  }
 0x325   :  { %2401 = vsyncmov [#allocation5 + $0x3] }
 0x328   :  { %s2402_s6 = vpop.sfrf %2401 }
 0x329   :  { %p3282_p13 = scmp.ne.s32.totalorder %s2402_s6, 0 }
 0x32b   :  { %2406 = shalt.err (%p3282_p13)  }
 0x32c   :  { %2408 = vsyncmov [#allocation5 + $0x4] }
 0x32f   :  { %s2409_s7 = vpop.sfrf %2408 }
 0x330   :  { %p3283_p0 = scmp.ne.s32.totalorder %s2409_s7, 0 }
 0x332   :  { %2413 = shalt.err (%p3283_p0)  }
 0x333   :  { %2415 = vsyncmov [#allocation5 + $0x5] }
 0x336   :  { %s2416_s8 = vpop.sfrf %2415 }
 0x337   :  { %p3284_p1 = scmp.ne.s32.totalorder %s2416_s8, 0 }
 0x339   :  { %2420 = shalt.err (%p3284_p1)  }
 0x33a   :  { %2422 = vsyncmov [#allocation5 + $0x6] }
 0x33d   :  { %s2423_s9 = vpop.sfrf %2422 }
 0x33e   :  { %p3285_p2 = scmp.ne.s32.totalorder %s2423_s9, 0 }
 0x340   :  { %2427 = shalt.err (%p3285_p2)  }
 0x341   :  { %2429 = vsyncmov [#allocation5 + $0x7] }
 0x344   :  { %s2430_s10 = vpop.sfrf %2429 }
 0x345   :  { %p3286_p3 = scmp.ne.s32.totalorder %s2430_s10, 0 }
 0x347   :  { %2434 = shalt.err (%p3286_p3)  }
 0x348   :  { %2436 = vsyncmov [#allocation5 + $0x8] }
 0x34b   :  { %s2437_s11 = vpop.sfrf %2436 }
 0x34c   :  { %p3287_p4 = scmp.ne.s32.totalorder %s2437_s11, 0 }
 0x34e   :  { %2441 = shalt.err (%p3287_p4)  }
 0x34f   :  { %2443 = vsyncmov [#allocation5 + $0x9] }
 0x352   :  { %s2444_s12 = vpop.sfrf %2443 }
 0x353   :  { %p3288_p5 = scmp.ne.s32.totalorder %s2444_s12, 0 }
 0x355   :  { %2448 = shalt.err (%p3288_p5)  }
 0x356   :  { %2450 = vsyncmov [#allocation5 + $0xa] }
 0x359   :  { %s2451_s13 = vpop.sfrf %2450 }
 0x35a   :  { %p3289_p6 = scmp.ne.s32.totalorder %s2451_s13, 0 }
 0x35c   :  { %2455 = shalt.err (%p3289_p6)  }
 0x35d   :  { %2457 = vsyncmov [#allocation5 + $0xb] }
 0x360   :  { %s2458_s4 = vpop.sfrf %2457 }
 0x361   :  { %p3290_p7 = scmp.ne.s32.totalorder %s2458_s4, 0 }
 0x363   :  { %2462 = shalt.err (%p3290_p7)  }
 0x364   :  { %2464 = vsyncmov [#allocation5 + $0xc] }
 0x367   :  { %s2465_s14 = vpop.sfrf %2464 }
 0x368   :  { %p3291_p8 = scmp.ne.s32.totalorder %s2465_s14, 0 }
 0x36a   :  { %2469 = shalt.err (%p3291_p8)  }
 0x36b   :  { %2471 = vsyncmov [#allocation5 + $0xd] }
 0x36e   :  { %s2472_s15 = vpop.sfrf %2471 }
 0x36f   :  { %p3292_p9 = scmp.ne.s32.totalorder %s2472_s15, 0 }
 0x371   :  { %2476 = shalt.err (%p3292_p9)  }
 0x372   :  { %2478 = vsyncmov [#allocation5 + $0xe] }
 0x375   :  { %s2479_s2 = vpop.sfrf %2478 }
 0x376   :  { %p3293_p10 = scmp.ne.s32.totalorder %s2479_s2, 0 }
 0x378   :  { %2483 = shalt.err (%p3293_p10)  }
 0x379   :  { %2485 = vsyncmov [#allocation5 + $0xf] }
 0x37c   :  { %s2486_s16 = vpop.sfrf %2485 }
 0x37d   :  { %p3294_p11 = scmp.ne.s32.totalorder %s2486_s16, 0 }
 0x37f   :  { %2490 = shalt.err (%p3294_p11)  }
 0x380   :  { %2492 = vsyncmov [#allocation5 + $0x10] }
 0x383   :  { %s2493_s17 = vpop.sfrf %2492 }
 0x384   :  { %p3295_p12 = scmp.ne.s32.totalorder %s2493_s17, 0 }
 0x386   :  { %2497 = shalt.err (%p3295_p12)  }
 0x387   :  { %2499 = vsyncmov [#allocation5 + $0x11] }
 0x38a   :  { %s2500_s18 = vpop.sfrf %2499 }
 0x38b   :  { %p3296_p13 = scmp.ne.s32.totalorder %s2500_s18, 0 }
 0x38d   :  { %2504 = shalt.err (%p3296_p13)  }
 0x38e   :  { %2506 = vsyncmov [#allocation5 + $0x12] }
 0x391   :  { %s2507_s5 = vpop.sfrf %2506 }
 0x392   :  { %p3297_p0 = scmp.ne.s32.totalorder %s2507_s5, 0 }
 0x394   :  { %2511 = shalt.err (%p3297_p0)  }
 0x395   :  { %2513 = vsyncmov [#allocation5 + $0x13] }
 0x398   :  { %s2514_s19 = vpop.sfrf %2513 }
 0x399   :  { %p3298_p1 = scmp.ne.s32.totalorder %s2514_s19, 0 }
 0x39b   :  { %2518 = shalt.err (%p3298_p1)  }
 0x39c   :  { %2520 = vsyncmov [#allocation5 + $0x14] }
 0x39f   :  { %s2521_s20 = vpop.sfrf %2520 }
 0x3a0   :  { %p3299_p2 = scmp.ne.s32.totalorder %s2521_s20, 0 }
 0x3a2   :  { %2525 = shalt.err (%p3299_p2)  }
 0x3a3   :  { %2527 = vsyncmov [#allocation5 + $0x15] }
 0x3a6   :  { %s2528_s21 = vpop.sfrf %2527 }
 0x3a7   :  { %p3300_p3 = scmp.ne.s32.totalorder %s2528_s21, 0 }
 0x3a9   :  { %2532 = shalt.err (%p3300_p3)  }
 0x3aa   :  { %2534 = vsyncmov [#allocation5 + $0x16] }
 0x3ad   :  { %s2535_s3 = vpop.sfrf %2534 }
 0x3ae   :  { %p3301_p4 = scmp.ne.s32.totalorder %s2535_s3, 0 }
 0x3b0   :  { %2539 = shalt.err (%p3301_p4)  }
 0x3b1   :  { %2541 = vsyncmov [#allocation5 + $0x17] }
 0x3b4   :  { %s2542_s22 = vpop.sfrf %2541 }
 0x3b5   :  { %p3302_p5 = scmp.ne.s32.totalorder %s2542_s22, 0 }
 0x3b7   :  { %2546 = shalt.err (%p3302_p5)  }

</bundles_post_ra>
